<compile_context>
chip_gen: v7x
topology: tpu7x:2x2x1
jax: 0.10.0
libtpu: 0.0.40
codegen_flags: <defaults>
</compile_context>

<pallas_src>
import jax
import jax.numpy as jnp
from jax.experimental import pallas as pl
from jax.experimental.pallas import tpu as pltpu

LANE = 128          # TPU lane width; channels are zero-padded to a multiple of this
_NEG_SLOPE = 0.01   # nn.LeakyReLU default negative_slope
_BN_EPS = 1e-5      # nn.BatchNorm2d default eps


def _round_up(x, m):
    return (x + m - 1) // m * m


def _fused_conv_block_kernel(x_ref, w1_ref, a1_ref, w2_ref, a2_ref, o_ref, xp2):
    """One image per grid step; both conv stages fused.

    x_ref : (H+2, W+2, C1p)  spatially + channel zero-padded NHWC input (bf16)
    w1_ref: (9*C1p, C2p)     stage-1 im2col weights (bf16, zero-padded channels)
    a1_ref: (2, C2p)         row 0 = BN scale, row 1 = BN shift (+conv bias folded)
    w2_ref: (9*C2p, C2p)     stage-2 im2col weights (bf16)
    a2_ref: (2, C2p)
    o_ref : (H, W, C2p)      lane-dense (channel-padded) output (f32)
    xp2   : VMEM (H+2, W+2, C2p) stage-2 halo scratch (bf16); border zeroed,
            interior overwritten every step.
    """
    H, W, c2p = o_ref.shape
    c1p = x_ref.shape[-1]

    def im2col_matmul(xpad, c, w_ref):
        # 9 shifted (H, W, c) windows -> lane-axis concat (each piece is a
        # multiple of 128 wide -> pure vreg placement) -> ONE MXU push, K = 9*c.
        taps = []
        for dy in range(3):
            for dx in range(3):
                t = xpad[dy:dy + H, dx:dx + W, :]              # (H, W, c) bf16
                taps.append(t.reshape(H * W, c))
        patches = jnp.concatenate(taps, axis=-1)               # (H*W, 9*c) bf16
        return jnp.dot(patches, w_ref[...],
                       preferred_element_type=jnp.float32)     # (H*W, C2p) f32

    def bn_lrelu(y, a_ref):
        y = y * a_ref[0:1, :] + a_ref[1:2, :]                  # folded BN (+bias), f32
        return jnp.maximum(y, _NEG_SLOPE * y)                  # LeakyReLU, single vmax

    # ---------------- stage 1: conv -> BN -> LeakyReLU ----------------
    # Input is already zero-padded (halo + channels) by the wrapper.
    y1 = bn_lrelu(im2col_matmul(x_ref[...], c1p, w1_ref), a1_ref)   # (H*W, c2p) f32

    # Dropout is identity in eval mode.
    # TODO(synk): training-mode dropout / batch-stat BN not implemented.

    # ------- stage 2: reads stage-1 result straight from VMEM (fused) -------
    # Zero only the 1-px border of the scratch (the interior is fully
    # overwritten below), instead of a full-buffer memset.
    zrow = jnp.zeros((1, W + 2, c2p), xp2.dtype)
    xp2[0:1, :, :] = zrow                                       # top halo row
    xp2[H + 1:H + 2, :, :] = zrow                               # bottom halo row
    zcol = jnp.zeros((H, 1, c2p), xp2.dtype)
    xp2[1:H + 1, 0:1, :] = zcol                                 # left halo col
    xp2[1:H + 1, W + 1:W + 2, :] = zcol                         # right halo col
    xp2[1:H + 1, 1:W + 1, :] = y1.reshape(H, W, c2p).astype(xp2.dtype)

    y2 = bn_lrelu(im2col_matmul(xp2[...], c2p, w2_ref), a2_ref)     # (H*W, c2p) f32

    o_ref[...] = y2.reshape(H, W, c2p).astype(o_ref.dtype)      # lane-dense store


def _conv_block_pallas(x_pad, w1, a1, w2, a2):
    """x_pad: (N, H+2, W+2, C1p) bf16 (halo + channel padded); weights folded."""
    N, hp2, wp2, c1p = x_pad.shape
    H, W = hp2 - 2, wp2 - 2
    c2p = w1.shape[1]

    grid_spec = pltpu.PrefetchScalarGridSpec(
        num_scalar_prefetch=0,
        grid=(N,),
        in_specs=[
            pl.BlockSpec((None, hp2, wp2, c1p), lambda n: (n, 0, 0, 0)),
            pl.BlockSpec(w1.shape, lambda n: (0, 0)),
            pl.BlockSpec(a1.shape, lambda n: (0, 0)),
            pl.BlockSpec(w2.shape, lambda n: (0, 0)),
            pl.BlockSpec(a2.shape, lambda n: (0, 0)),
        ],
        out_specs=pl.BlockSpec((None, H, W, c2p), lambda n: (n, 0, 0, 0)),
        scratch_shapes=[
            pltpu.VMEM((H + 2, W + 2, c2p), jnp.bfloat16),
        ],
    )

    return pl.pallas_call(
        _fused_conv_block_kernel,
        out_shape=jax.ShapeDtypeStruct((N, H, W, c2p), jnp.float32),
        grid_spec=grid_spec,
        compiler_params=pltpu.CompilerParams(
            dimension_semantics=("parallel",),
        ),
    )(x_pad, w1, a1, w2, a2)


def _fold_stage(p, cin_p, cout_p):
    """Fold Conv2d(bias) + BatchNorm2d(running stats) into im2col weights + affine."""
    w_oihw = p["w"]                                        # (cout, cin, 3, 3) torch layout
    cout, cin = w_oihw.shape[0], w_oihw.shape[1]
    w_hwio = jnp.transpose(w_oihw, (2, 3, 1, 0))           # (3, 3, cin, cout)
    w_pad = jnp.zeros((3, 3, cin_p, cout_p), jnp.float32)
    w_pad = w_pad.at[:, :, :cin, :cout].set(w_hwio)
    w_mat = w_pad.reshape(9 * cin_p, cout_p).astype(jnp.bfloat16)   # tap-major, matches kernel

    scale = p["gamma"] / jnp.sqrt(p["var"] + _BN_EPS)      # (cout,)
    shift = p["beta"] + (p["b"] - p["mean"]) * scale       # conv bias folded in
    affine = jnp.zeros((2, cout_p), jnp.float32)
    affine = affine.at[0, :cout].set(scale).at[1, :cout].set(shift)
    return w_mat, affine


@jax.jit
def conv_block_forward(x_nchw, params):
    """Eval-mode ConvBlock forward. NCHW in / NCHW out (PyTorch layout)."""
    p1, p2 = params
    cout = p1["w"].shape[0]
    cin = p1["w"].shape[1]
    c1p = _round_up(cin, LANE)
    c2p = _round_up(cout, LANE)

    w1, a1 = _fold_stage(p1, c1p, c2p)
    w2, a2 = _fold_stage(p2, c2p, c2p)

    # Module boundary is NCHW; the kernel wants channels on the lane axis.
    # Do the cheap spatial-halo + channel zero-pad here (fuses into the
    # transpose/cast), in bf16, so the kernel needs no stage-1 scratch and
    # reads half the input bytes.
    x_nhwc = jnp.transpose(x_nchw, (0, 2, 3, 1)).astype(jnp.bfloat16)
    x_pad = jnp.pad(x_nhwc, ((0, 0), (1, 1), (1, 1), (0, c1p - cin)))

    out_p = _conv_block_pallas(x_pad, w1, a1, w2, a2)      # (N, H, W, c2p) f32
    return jnp.transpose(out_p[..., :cout], (0, 3, 1, 2))  # strip pad, back to NCHW


def conv_block_reference(x_nchw, params):
    """Pure-JAX f32 reference (eval-mode ConvBlock)."""
    y = x_nchw
    for p in params:
        y = jax.lax.conv_general_dilated(
            y, p["w"], window_strides=(1, 1), padding=((1, 1), (1, 1)),
            dimension_numbers=("NCHW", "OIHW", "NCHW"),
            precision=jax.lax.Precision.HIGHEST)
        y = y + p["b"][None, :, None, None]
        s = p["gamma"] / jnp.sqrt(p["var"] + _BN_EPS)
        y = (y - p["mean"][None, :, None, None]) * s[None, :, None, None] \
            + p["beta"][None, :, None, None]
        y = jnp.maximum(y, _NEG_SLOPE * y)
    return y


def make_conv_block_params(key, in_channels, out_channels):
    """Deterministic synthetic parameters matching ConvBlock's shapes."""
    ks = jax.random.split(key, 12)

    def layer(k, cin, cout):
        kw, kb, kg, kbe, km, kv = k
        return dict(
            w=jax.random.normal(kw, (cout, cin, 3, 3), jnp.float32) * 0.1,   # OIHW
            b=jax.random.normal(kb, (cout,), jnp.float32) * 0.05,
            gamma=1.0 + 0.1 * jax.random.normal(kg, (cout,), jnp.float32),
            beta=0.1 * jax.random.normal(kbe, (cout,), jnp.float32),
            mean=0.05 * jax.random.normal(km, (cout,), jnp.float32),
            var=jax.random.uniform(kv, (cout,), jnp.float32, 0.5, 1.5),
        )

    return (layer(ks[0:6], in_channels, out_channels),
            layer(ks[6:12], out_channels, out_channels))


if __name__ == "__main__":
    key = jax.random.PRNGKey(0)
    k_x, k_p = jax.random.split(key)

    N, Cin, H, W = 2, 4, 16, 16
    Cout = 8
    dropout_p = 0.1   # unused: Dropout is identity in eval mode

    x = jax.random.normal(k_x, (N, Cin, H, W), jnp.float32)
    params = make_conv_block_params(k_p, Cin, Cout)

    out = conv_block_forward(x, params)
    jax.block_until_ready(out)

    assert out.shape == (N, Cout, H, W), out.shape
    assert bool(jnp.all(jnp.isfinite(out)))

    ref = conv_block_reference(x, params)
    max_err = float(jnp.max(jnp.abs(out - ref)))
    assert max_err < 5e-2, f"mismatch vs f32 reference: max_abs_err={max_err}"

    print("KERNEL_OK")
</pallas_src>

<mosaic_0001>
module attributes {stable_mosaic.version = 11 : i64} {
  func.func @_fused_conv_block_kernel(%arg0: i32, %arg1: memref<1x18x18x128xbf16, #tpu.memory_space<vmem>>, %arg2: memref<1152x128xbf16, #tpu.memory_space<vmem>>, %arg3: memref<2x128xf32, #tpu.memory_space<vmem>>, %arg4: memref<1152x128xbf16, #tpu.memory_space<vmem>>, %arg5: memref<2x128xf32, #tpu.memory_space<vmem>>, %arg6: memref<1x16x16x128xf32, #tpu.memory_space<vmem>>, %arg7: memref<18x18x128xbf16, #tpu.memory_space<vmem>>) attributes {dimension_semantics = [#tpu.dimension_semantics<parallel>], iteration_bounds = array<i64: 2>, scalar_prefetch = 0 : i64, scratch_operands = 1 : i64, tpu.core_type = #tpu.core_type<tc>, window_params = [{transform_indices = @transform_0, window_bounds = array<i64: 1, 18, 18, 128>}, {pipeline_mode = #tpu.pipeline_mode<synchronous>, transform_indices = @transform_1, window_bounds = array<i64: 1152, 128>}, {pipeline_mode = #tpu.pipeline_mode<synchronous>, transform_indices = @transform_2, window_bounds = array<i64: 2, 128>}, {pipeline_mode = #tpu.pipeline_mode<synchronous>, transform_indices = @transform_3, window_bounds = array<i64: 1152, 128>}, {pipeline_mode = #tpu.pipeline_mode<synchronous>, transform_indices = @transform_4, window_bounds = array<i64: 2, 128>}, {transform_indices = @transform_5, window_bounds = array<i64: 1, 16, 16, 128>}]} {
    %c0 = arith.constant 0 : index
    %c0_0 = arith.constant 0 : index
    %c0_1 = arith.constant 0 : index
    %c0_2 = arith.constant 0 : index
    %0 = vector.load %arg1[%c0, %c0_0, %c0_1, %c0_2] : memref<1x18x18x128xbf16, #tpu.memory_space<vmem>>, vector<1x18x18x128xbf16>
    %1 = vector.shape_cast %0 : vector<1x18x18x128xbf16> to vector<18x18x128xbf16>
    %2 = vector.extract_strided_slice %1 {offsets = [0, 0, 0], sizes = [16, 16, 128], strides = [1, 1, 1]} : vector<18x18x128xbf16> to vector<16x16x128xbf16>
    %3 = vector.shape_cast %2 : vector<16x16x128xbf16> to vector<256x128xbf16>
    %4 = vector.extract_strided_slice %1 {offsets = [0, 1, 0], sizes = [16, 16, 128], strides = [1, 1, 1]} : vector<18x18x128xbf16> to vector<16x16x128xbf16>
    %5 = vector.shape_cast %4 : vector<16x16x128xbf16> to vector<256x128xbf16>
    %6 = vector.extract_strided_slice %1 {offsets = [0, 2, 0], sizes = [16, 16, 128], strides = [1, 1, 1]} : vector<18x18x128xbf16> to vector<16x16x128xbf16>
    %7 = vector.shape_cast %6 : vector<16x16x128xbf16> to vector<256x128xbf16>
    %8 = vector.extract_strided_slice %1 {offsets = [1, 0, 0], sizes = [16, 16, 128], strides = [1, 1, 1]} : vector<18x18x128xbf16> to vector<16x16x128xbf16>
    %9 = vector.shape_cast %8 : vector<16x16x128xbf16> to vector<256x128xbf16>
    %10 = vector.extract_strided_slice %1 {offsets = [1, 1, 0], sizes = [16, 16, 128], strides = [1, 1, 1]} : vector<18x18x128xbf16> to vector<16x16x128xbf16>
    %11 = vector.shape_cast %10 : vector<16x16x128xbf16> to vector<256x128xbf16>
    %12 = vector.extract_strided_slice %1 {offsets = [1, 2, 0], sizes = [16, 16, 128], strides = [1, 1, 1]} : vector<18x18x128xbf16> to vector<16x16x128xbf16>
    %13 = vector.shape_cast %12 : vector<16x16x128xbf16> to vector<256x128xbf16>
    %14 = vector.extract_strided_slice %1 {offsets = [2, 0, 0], sizes = [16, 16, 128], strides = [1, 1, 1]} : vector<18x18x128xbf16> to vector<16x16x128xbf16>
    %15 = vector.shape_cast %14 : vector<16x16x128xbf16> to vector<256x128xbf16>
    %16 = vector.extract_strided_slice %1 {offsets = [2, 1, 0], sizes = [16, 16, 128], strides = [1, 1, 1]} : vector<18x18x128xbf16> to vector<16x16x128xbf16>
    %17 = vector.shape_cast %16 : vector<16x16x128xbf16> to vector<256x128xbf16>
    %18 = vector.extract_strided_slice %1 {offsets = [2, 2, 0], sizes = [16, 16, 128], strides = [1, 1, 1]} : vector<18x18x128xbf16> to vector<16x16x128xbf16>
    %19 = vector.shape_cast %18 : vector<16x16x128xbf16> to vector<256x128xbf16>
    %20 = tpu.concatenate %3, %5, %7, %9, %11, %13, %15, %17, %19 in 1 : vector<256x128xbf16>, vector<256x128xbf16>, vector<256x128xbf16>, vector<256x128xbf16>, vector<256x128xbf16>, vector<256x128xbf16>, vector<256x128xbf16>, vector<256x128xbf16>, vector<256x128xbf16> -> vector<256x1152xbf16>
    %c0_3 = arith.constant 0 : index
    %c0_4 = arith.constant 0 : index
    %21 = vector.load %arg2[%c0_3, %c0_4] : memref<1152x128xbf16, #tpu.memory_space<vmem>>, vector<1152x128xbf16>
    %cst = arith.constant dense<0.000000e+00> : vector<256x128xf32>
    %22 = tpu.matmul %20, %21, %cst {dimension_numbers = #tpu.dot_dimension_numbers<[1], [0], [0], [1], [0, 0, 1, 1], [], []>} : vector<256x1152xbf16>, vector<1152x128xbf16>, vector<256x128xf32> -> vector<256x128xf32>
    %c0_5 = arith.constant 0 : index
    %c0_6 = arith.constant 0 : index
    %23 = vector.load %arg3[%c0_5, %c0_6] : memref<2x128xf32, #tpu.memory_space<vmem>>, vector<1x128xf32>
    %24 = vector.broadcast %23 : vector<1x128xf32> to vector<256x128xf32>
    %25 = arith.mulf %22, %24 : vector<256x128xf32>
    %c1 = arith.constant 1 : index
    %c0_7 = arith.constant 0 : index
    %26 = vector.load %arg3[%c1, %c0_7] : memref<2x128xf32, #tpu.memory_space<vmem>>, vector<1x128xf32>
    %27 = vector.broadcast %26 : vector<1x128xf32> to vector<256x128xf32>
    %28 = arith.addf %25, %27 : vector<256x128xf32>
    %cst_8 = arith.constant 0.00999999977 : f32
    %29 = vector.broadcast %cst_8 : f32 to vector<256x128xf32>
    %30 = arith.mulf %29, %28 : vector<256x128xf32>
    %31 = arith.maximumf %28, %30 : vector<256x128xf32>
    %cst_9 = arith.constant 0.000000e+00 : bf16
    %32 = vector.broadcast %cst_9 : bf16 to vector<1x18x128xbf16>
    %c0_10 = arith.constant 0 : index
    %c0_11 = arith.constant 0 : index
    %c0_12 = arith.constant 0 : index
    %33 = vector.load %arg7[%c0_10, %c0_11, %c0_12] : memref<18x18x128xbf16, #tpu.memory_space<vmem>>, vector<1x18x128xbf16>
    tpu.vector_store %arg7[%c0_10, %c0_11, %c0_12], %32 {strides = array<i32>} : memref<18x18x128xbf16, #tpu.memory_space<vmem>>, vector<1x18x128xbf16>,
    %c17 = arith.constant 17 : index
    %c0_13 = arith.constant 0 : index
    %c0_14 = arith.constant 0 : index
    %34 = vector.load %arg7[%c17, %c0_13, %c0_14] : memref<18x18x128xbf16, #tpu.memory_space<vmem>>, vector<1x18x128xbf16>
    tpu.vector_store %arg7[%c17, %c0_13, %c0_14], %32 {strides = array<i32>} : memref<18x18x128xbf16, #tpu.memory_space<vmem>>, vector<1x18x128xbf16>,
    %cst_15 = arith.constant 0.000000e+00 : bf16
    %35 = vector.broadcast %cst_15 : bf16 to vector<16x1x128xbf16>
    %c1_16 = arith.constant 1 : index
    %c0_17 = arith.constant 0 : index
    %c0_18 = arith.constant 0 : index
    %36 = vector.load %arg7[%c1_16, %c0_17, %c0_18] : memref<18x18x128xbf16, #tpu.memory_space<vmem>>, vector<16x1x128xbf16>
    tpu.vector_store %arg7[%c1_16, %c0_17, %c0_18], %35 {strides = array<i32>} : memref<18x18x128xbf16, #tpu.memory_space<vmem>>, vector<16x1x128xbf16>,
    %c1_19 = arith.constant 1 : index
    %c17_20 = arith.constant 17 : index
    %c0_21 = arith.constant 0 : index
    %37 = vector.load %arg7[%c1_19, %c17_20, %c0_21] : memref<18x18x128xbf16, #tpu.memory_space<vmem>>, vector<16x1x128xbf16>
    tpu.vector_store %arg7[%c1_19, %c17_20, %c0_21], %35 {strides = array<i32>} : memref<18x18x128xbf16, #tpu.memory_space<vmem>>, vector<16x1x128xbf16>,
    %38 = vector.shape_cast %31 : vector<256x128xf32> to vector<16x16x128xf32>
    %39 = arith.truncf %38 : vector<16x16x128xf32> to vector<16x16x128xbf16>
    %c1_22 = arith.constant 1 : index
    %c1_23 = arith.constant 1 : index
    %c0_24 = arith.constant 0 : index
    %40 = vector.load %arg7[%c1_22, %c1_23, %c0_24] : memref<18x18x128xbf16, #tpu.memory_space<vmem>>, vector<16x16x128xbf16>
    tpu.vector_store %arg7[%c1_22, %c1_23, %c0_24], %39 {strides = array<i32>} : memref<18x18x128xbf16, #tpu.memory_space<vmem>>, vector<16x16x128xbf16>,
    %c0_25 = arith.constant 0 : index
    %c0_26 = arith.constant 0 : index
    %c0_27 = arith.constant 0 : index
    %41 = vector.load %arg7[%c0_25, %c0_26, %c0_27] : memref<18x18x128xbf16, #tpu.memory_space<vmem>>, vector<18x18x128xbf16>
    %42 = vector.extract_strided_slice %41 {offsets = [0, 0, 0], sizes = [16, 16, 128], strides = [1, 1, 1]} : vector<18x18x128xbf16> to vector<16x16x128xbf16>
    %43 = vector.shape_cast %42 : vector<16x16x128xbf16> to vector<256x128xbf16>
    %44 = vector.extract_strided_slice %41 {offsets = [0, 1, 0], sizes = [16, 16, 128], strides = [1, 1, 1]} : vector<18x18x128xbf16> to vector<16x16x128xbf16>
    %45 = vector.shape_cast %44 : vector<16x16x128xbf16> to vector<256x128xbf16>
    %46 = vector.extract_strided_slice %41 {offsets = [0, 2, 0], sizes = [16, 16, 128], strides = [1, 1, 1]} : vector<18x18x128xbf16> to vector<16x16x128xbf16>
    %47 = vector.shape_cast %46 : vector<16x16x128xbf16> to vector<256x128xbf16>
    %48 = vector.extract_strided_slice %41 {offsets = [1, 0, 0], sizes = [16, 16, 128], strides = [1, 1, 1]} : vector<18x18x128xbf16> to vector<16x16x128xbf16>
    %49 = vector.shape_cast %48 : vector<16x16x128xbf16> to vector<256x128xbf16>
    %50 = vector.extract_strided_slice %41 {offsets = [1, 1, 0], sizes = [16, 16, 128], strides = [1, 1, 1]} : vector<18x18x128xbf16> to vector<16x16x128xbf16>
    %51 = vector.shape_cast %50 : vector<16x16x128xbf16> to vector<256x128xbf16>
    %52 = vector.extract_strided_slice %41 {offsets = [1, 2, 0], sizes = [16, 16, 128], strides = [1, 1, 1]} : vector<18x18x128xbf16> to vector<16x16x128xbf16>
    %53 = vector.shape_cast %52 : vector<16x16x128xbf16> to vector<256x128xbf16>
    %54 = vector.extract_strided_slice %41 {offsets = [2, 0, 0], sizes = [16, 16, 128], strides = [1, 1, 1]} : vector<18x18x128xbf16> to vector<16x16x128xbf16>
    %55 = vector.shape_cast %54 : vector<16x16x128xbf16> to vector<256x128xbf16>
    %56 = vector.extract_strided_slice %41 {offsets = [2, 1, 0], sizes = [16, 16, 128], strides = [1, 1, 1]} : vector<18x18x128xbf16> to vector<16x16x128xbf16>
    %57 = vector.shape_cast %56 : vector<16x16x128xbf16> to vector<256x128xbf16>
    %58 = vector.extract_strided_slice %41 {offsets = [2, 2, 0], sizes = [16, 16, 128], strides = [1, 1, 1]} : vector<18x18x128xbf16> to vector<16x16x128xbf16>
    %59 = vector.shape_cast %58 : vector<16x16x128xbf16> to vector<256x128xbf16>
    %60 = tpu.concatenate %43, %45, %47, %49, %51, %53, %55, %57, %59 in 1 : vector<256x128xbf16>, vector<256x128xbf16>, vector<256x128xbf16>, vector<256x128xbf16>, vector<256x128xbf16>, vector<256x128xbf16>, vector<256x128xbf16>, vector<256x128xbf16>, vector<256x128xbf16> -> vector<256x1152xbf16>
    %c0_28 = arith.constant 0 : index
    %c0_29 = arith.constant 0 : index
    %61 = vector.load %arg4[%c0_28, %c0_29] : memref<1152x128xbf16, #tpu.memory_space<vmem>>, vector<1152x128xbf16>
    %cst_30 = arith.constant dense<0.000000e+00> : vector<256x128xf32>
    %62 = tpu.matmul %60, %61, %cst_30 {dimension_numbers = #tpu.dot_dimension_numbers<[1], [0], [0], [1], [0, 0, 1, 1], [], []>} : vector<256x1152xbf16>, vector<1152x128xbf16>, vector<256x128xf32> -> vector<256x128xf32>
    %c0_31 = arith.constant 0 : index
    %c0_32 = arith.constant 0 : index
    %63 = vector.load %arg5[%c0_31, %c0_32] : memref<2x128xf32, #tpu.memory_space<vmem>>, vector<1x128xf32>
    %64 = vector.broadcast %63 : vector<1x128xf32> to vector<256x128xf32>
    %65 = arith.mulf %62, %64 : vector<256x128xf32>
    %c1_33 = arith.constant 1 : index
    %c0_34 = arith.constant 0 : index
    %66 = vector.load %arg5[%c1_33, %c0_34] : memref<2x128xf32, #tpu.memory_space<vmem>>, vector<1x128xf32>
    %67 = vector.broadcast %66 : vector<1x128xf32> to vector<256x128xf32>
    %68 = arith.addf %65, %67 : vector<256x128xf32>
    %cst_35 = arith.constant 0.00999999977 : f32
    %69 = vector.broadcast %cst_35 : f32 to vector<256x128xf32>
    %70 = arith.mulf %69, %68 : vector<256x128xf32>
    %71 = arith.maximumf %68, %70 : vector<256x128xf32>
    %72 = vector.shape_cast %71 : vector<256x128xf32> to vector<16x16x128xf32>
    %c0_36 = arith.constant 0 : index
    %c0_37 = arith.constant 0 : index
    %c0_38 = arith.constant 0 : index
    %c0_39 = arith.constant 0 : index
    %73 = vector.load %arg6[%c0_36, %c0_37, %c0_38, %c0_39] : memref<1x16x16x128xf32, #tpu.memory_space<vmem>>, vector<1x16x16x128xf32>
    %74 = vector.shape_cast %73 : vector<1x16x16x128xf32> to vector<16x16x128xf32>
    %75 = vector.shape_cast %72 : vector<16x16x128xf32> to vector<1x16x16x128xf32>
    tpu.vector_store %arg6[%c0_36, %c0_37, %c0_38, %c0_39], %75 {strides = array<i32>} : memref<1x16x16x128xf32, #tpu.memory_space<vmem>>, vector<1x16x16x128xf32>,
    return
  }
  func.func @transform_0(%arg0: i32) -> (i32, i32, i32, i32) {
    %c0_i32 = arith.constant 0 : i32
    %c0_i32_0 = arith.constant 0 : i32
    %c0_i32_1 = arith.constant 0 : i32
    %c0_i32_2 = arith.constant 0 : i32
    return %arg0, %c0_i32, %c0_i32_0, %c0_i32_1 : i32, i32, i32, i32
  }
  func.func @transform_1(%arg0: i32) -> (i32, i32) {
    %c0_i32 = arith.constant 0 : i32
    %c0_i32_0 = arith.constant 0 : i32
    %c0_i32_1 = arith.constant 0 : i32
    return %c0_i32, %c0_i32_0 : i32, i32
  }
  func.func @transform_2(%arg0: i32) -> (i32, i32) {
    %c0_i32 = arith.constant 0 : i32
    %c0_i32_0 = arith.constant 0 : i32
    %c0_i32_1 = arith.constant 0 : i32
    return %c0_i32, %c0_i32_0 : i32, i32
  }
  func.func @transform_3(%arg0: i32) -> (i32, i32) {
    %c0_i32 = arith.constant 0 : i32
    %c0_i32_0 = arith.constant 0 : i32
    %c0_i32_1 = arith.constant 0 : i32
    return %c0_i32, %c0_i32_0 : i32, i32
  }
  func.func @transform_4(%arg0: i32) -> (i32, i32) {
    %c0_i32 = arith.constant 0 : i32
    %c0_i32_0 = arith.constant 0 : i32
    %c0_i32_1 = arith.constant 0 : i32
    return %c0_i32, %c0_i32_0 : i32, i32
  }
  func.func @transform_5(%arg0: i32) -> (i32, i32, i32, i32) {
    %c0_i32 = arith.constant 0 : i32
    %c0_i32_0 = arith.constant 0 : i32
    %c0_i32_1 = arith.constant 0 : i32
    %c0_i32_2 = arith.constant 0 : i32
    return %arg0, %c0_i32, %c0_i32_0, %c0_i32_1 : i32, i32, i32, i32
  }
}

</mosaic_0001>

<bundles_post_ra>
// kernel: conv_block_forward.1
= control target key start
LH: loop header
LB: loop body
LE: loop exit
PB: predicated region body
PF: predicated region fallthrough
CT: control target
= control target key end

     0   :  { %s7401_s18 = smov 0   ;;  %s10132_s0 = inlined_call_operand.vmem [shape: bf16[2,18,18,128], index: 0, kind: input, shape index: {}]   ;;  %s10133_s1 = inlined_call_operand.vmem [shape: bf16[1152,128], index: 1, kind: input, shape index: {}]   ;;  %s10134_s2 = inlined_call_operand.vmem [shape: f32[2,128], index: 2, kind: input, shape index: {}]   ;;  %s10135_s3 = inlined_call_operand.vmem [shape: bf16[1152,128], index: 3, kind: input, shape index: {}]   ;;  %s10136_s4 = inlined_call_operand.vmem [shape: f32[2,128], index: 4, kind: input, shape index: {}]   ;;  %s10137_s5 = inlined_call_operand.vmem [shape: f32[2,16,16,128], index: 5, kind: output, shape index: {}]  }
   0x1 LB: > { %s5762_s19 = sadd.s32 4294967295, %s7368_s18   ;;  %p5766_p0 = scmp.ge.s32.totalorder %s7368_s18, 1  ;;  %s7368_s18 = sphi %s7401_s18, %s15_s18  }
   0x2   : > { %p187_p1 = scmp.lt.s32.totalorder %s7368_s18, 3 }
   0x4   : > { %p188_p2 = pnand %p5766_p0, %p187_p1 }
   0x6   : > { %191 = sbr.rel (%p188_p2) target bundleno = 1158 (0x486), region = 40 }
   0xd   : > { %v7179_v0 = vld [vmem:[%s10133_s1 + $0x40] sm:$0xff]   ;;  %v7183_v4 = vld [vmem:[%s10133_s1 + $0x48] sm:$0xff]   ;;  %v7187_v8 = vld [vmem:[%s10133_s1 + $0x50] sm:$0xff]   ;;  %p215_p3 = scmp.lt.s32.totalorder %s5762_s19, 1  ;;  %vm715_vm0 = vcmask 1042432   ;;  %vm716_vm1 = vcmask 1046532  }
   0xe   : > { %v7180_v1 = vld [vmem:[%s10133_s1 + $0xc0] sm:$0xff]   ;;  %6129 = vmatprep.subr.bf16.mxu0 %v7179_v0  ;;  %v7184_v5 = vld [vmem:[%s10133_s1 + $0xc8] sm:$0xff]   ;;  %v7188_v9 = vld [vmem:[%s10133_s1 + $0xd0] sm:$0xff]   ;;  %vm280_vm2 = vsmask.f32 3328  ;;  %vm2641_vm6 = vcmask 1040384  }
   0xf   : > { %v7181_v2 = vld [vmem:[%s10133_s1] sm:$0xff]   ;;  %6241 = vmatprep.subr.bf16.mxu1 %v7180_v1  ;;  %v7185_v6 = vld [vmem:[%s10133_s1 + $0x8] sm:$0xff]   ;;  %v7189_v10 = vld [vmem:[%s10133_s1 + $0x10] sm:$0xff]   ;;  %s10280_s19 = smov (!%p215_p3, %s5762_s19), 1  ;;  %vm281_vm3 = vsmask.f32 7440 }
  0x10   : > { %v7182_v3 = vld [vmem:[%s10133_s1 + $0x80] sm:$0xff]   ;;  %6130 = vmatpush3.bf16.msra.mxu0 %v7181_v2  ;;  %v7186_v7 = vld [vmem:[%s10133_s1 + $0x88] sm:$0xff]   ;;  %v7190_v11 = vld [vmem:[%s10133_s1 + $0x90] sm:$0xff]   ;;  %s7169_s26 = smul.u32 216, %s10280_s19  ;;  %vm2642_vm7 = vsmask.f32 256 }
  0x11   : > { %6242 = vmatpush3.bf16.msra.mxu1 %v7182_v3  ;;  %6131 = vmatprep.subr.bf16.mxu0 %v7183_v4  ;;  %v7191_v12 = vld [vmem:[%s10133_s1 + $0x58] sm:$0xff]   ;;  %v7195_v16 = vld [vmem:[%s10133_s1 + $0x60] sm:$0xff]   ;;  %v7199_v20 = vld [vmem:[%s10133_s1 + $0x68] sm:$0xff]   ;;  %vm2692_vm9 = vsmask.f32 7938  ;;  %vm3160_vm11 = vcmask 1043456  }
  0x12   : > { %6243 = vmatprep.subr.bf16.mxu1 %v7184_v5  ;;  %v7192_v13 = vld [vmem:[%s10133_s1 + $0xd8] sm:$0xff]   ;;  %v7196_v17 = vld [vmem:[%s10133_s1 + $0xe0] sm:$0xff]   ;;  %v7200_v21 = vld [vmem:[%s10133_s1 + $0xe8] sm:$0xff]   ;;  %s7509_s12 = scalar_lea.vmem %s10132_s0, %s7169_s26  ;;  %vm2838_vm12 = vsmask.f32 4368  ;;  %s6096_s30 = sshll.u32 %s10280_s19, 8 }
  0x13   : > { %v7193_v14 = vld [vmem:[%s10133_s1 + $0x18] sm:$0xff]   ;;  %v7197_v18 = vld [vmem:[%s10133_s1 + $0x20] sm:$0xff]   ;;  %v7201_v22 = vld [vmem:[%s10133_s1 + $0x28] sm:$0xff]  }
  0x14   : > { %6132 = vmatpush3.bf16.msra.mxu0 %v7185_v6  ;;  %v7194_v15 = vld [vmem:[%s10133_s1 + $0x98] sm:$0xff]   ;;  %v7198_v19 = vld [vmem:[%s10133_s1 + $0xa0] sm:$0xff]   ;;  %v7202_v23 = vld [vmem:[%s10133_s1 + $0xa8] sm:$0xff]  }
  0x15   : > { %6244 = vmatpush3.bf16.msra.mxu1 %v7186_v7  ;;  %6133 = vmatprep.subr.bf16.mxu0 %v7187_v8  ;;  %v7203_v24 = vld [vmem:[%s10133_s1 + $0x70] sm:$0xff]   ;;  %v7207_v28 = vld [vmem:[%s10133_s1 + $0x78] sm:$0xff]   ;;  %v7518_v32 = vld [vmem:[%s7509_s12] sm:$0xf] }
  0x16   : > { %6245 = vmatprep.subr.bf16.mxu1 %v7188_v9  ;;  %v7204_v25 = vld [vmem:[%s10133_s1 + $0xf0] sm:$0xff]   ;;  %v7208_v29 = vld [vmem:[%s10133_s1 + $0xf8] sm:$0xff]   ;;  %v7521_v33 = vld [vmem:[%s7509_s12 + $0x4] sm:$0xf]  ;;  %v284_v35 = vshrl.u32 %v7518_v32, 16  ;;  %v287_v36 = vshll.u32 %v7518_v32, 16 }
  0x17   : > { %v7205_v26 = vld [vmem:[%s10133_s1 + $0x30] sm:$0xff]   ;;  %v7209_v30 = vld [vmem:[%s10133_s1 + $0x38] sm:$0xff]   ;;  %v228_v34 = vld [vmem:[%s7509_s12 + $0x8] sm:$0x1]  ;;  %v293_v37 = vshll.u32 %v7521_v33, 16  ;;  %v297_v38 = vshrl.u32 %v7521_v33, 16  ;;  %v5788_v60 = vcombine.low %v7518_v32, %v7521_v33 }
  0x18   : > { %6134 = vmatpush3.bf16.msra.mxu0 %v7189_v10  ;;  %v7206_v27 = vld [vmem:[%s10133_s1 + $0xb0] sm:$0xff]   ;;  %v7210_v31 = vld [vmem:[%s10133_s1 + $0xb8] sm:$0xff]   ;;  %v303_v39 = vshll.u32 %v228_v34, 16  ;;  %v723_v40 = vrot.slane %v228_v34, 5  ;;  %v7529_v41 = vld [vmem:[%s7509_s12 + $0xc] sm:$0xf] }
  0x19   : > { %6246 = vmatpush3.bf16.msra.mxu1 %v7190_v11  ;;  %6135 = vmatprep.subr.bf16.mxu0 %v7191_v12  ;;  %v286_v42 = vrot.slane %v284_v35, 4  ;;  %v289_v43 = vrot.slane %v287_v36, 5  ;;  %v7532_v44 = vld [vmem:[%s7509_s12 + $0x10] sm:$0xf]  ;;  %v308_v45 = vshrl.u32 %v7529_v41, 16  ;;  %v311_v46 = vshll.u32 %v7529_v41, 16  ;;  %vm7540_vm4 = vmor %vm715_vm0, %vm716_vm1 }
  0x1a   : > { %6247 = vmatprep.subr.bf16.mxu1 %v7192_v13  ;;  %v295_v47 = vrot.slane %v293_v37, 5  ;;  %v299_v48 = vrot.slane %v297_v38, 4  ;;  %v305_v49 = vrot.slane %v303_v39, 5  ;;  %v317_v50 = vshll.u32 %v7532_v44, 16  ;;  %v7213_v56 = vld [vmem:[%s10133_s1 + $0x140] sm:$0xff]   ;;  %vm7549_vm5 = vmor %vm280_vm2, %vm281_vm3  ;;  %v7353_v55 = vld [vmem:[%s10135_s3 + $0x218] sm:$0xff]  }
  0x1b   : > { %v290_v51 = vor.u32 %v289_v43, %v286_v42  ;;  %v310_v52 = vrot.slane %v308_v45, 4  ;;  %v313_v53 = vrot.slane %v311_v46, 5  ;;  %v321_v54 = vshrl.u32 %v7532_v44, 16  ;;  %v231_v1 = vld [vmem:[%s7509_s12 + $0x14] sm:$0x1]  ;;  %v7218_v42 = vld [vmem:[%s10133_s1 + $0x108] sm:$0xff]   ;;  %vm8498_vm8 = vmand %vm2641_vm6, %vm2642_vm7 }
  0x1c   : > { %6136 = vmatpush3.bf16.msra.mxu0 %v7193_v14  ;;  %v300_v58 = vor.u32 %v299_v48, %v295_v47  ;;  %v7555_v59 = vcombine.low %v7529_v41, %v7532_v44  ;;  %v5770_v61 = vrot.slane %v7518_v32, 9  ;;  %v720_v0 = vrot.slane %v7521_v33, 5  ;;  %v7564_v6 = vld [vmem:[%s7509_s12 + $0x18] sm:$0xf]  ;;  %v233_v12 = vld [vmem:[%s7509_s12 + $0x1c] sm:$0xf]  ;;  %vm8505_vm10 = vmand %vm2641_vm6, %vm2692_vm9 }
  0x1d   : > { %6248 = vmatpush3.bf16.msra.mxu1 %v7194_v15  ;;  %6137 = vmatprep.subr.bf16.mxu0 %v7195_v16  ;;  %v291_v62 = vrot.slane %v290_v51, 4  ;;  %v323_v63 = vrot.slane %v321_v54, 4  ;;  %v314_v2 = vor.u32 %v313_v53, %v310_v52  ;;  %v319_v4 = vrot.slane %v317_v50, 5  ;;  %v7214_v14 = vld [vmem:[%s10133_s1 + $0x100] sm:$0xff]   ;;  %v7600_v37 = vld [vmem:[%s7509_s12 + $0x28] sm:$0xf]  ;;  %vm8788_vm13 = vmand %vm3160_vm11, %vm2692_vm9 }
  0x1e   : > { %6249 = vmatprep.subr.bf16.mxu1 %v7196_v17  ;;  %v301_v3 = vrot.slane %v300_v58, 4  ;;  %1883 = vmatprep.mubr.bf16.mxu1 %v7555_v59  ;;  %v327_v5 = vshll.u32 %v231_v1, 16  ;;  %v5771_v7 = vrot.slane %v7529_v41, 9  ;;  %v721_v9 = vsel %vm7540_vm4, %v5770_v61, %v720_v0  ;;  %v7594_v32 = vld [vmem:[%s7509_s12 + $0x24] sm:$0xf]  ;;  %v7221_v48 = vld [vmem:[%s10133_s1 + $0x150] sm:$0xff]   ;;  %vm8797_vm14 = vmor %vm2642_vm7, %vm2838_vm12 }
  0x1f   : > { %v296_v8 = vsel %vm7549_vm5, %v291_v62, %v295_v47  ;;  %v722_v10 = vrot.slane %v720_v0, 4  ;;  %v315_v11 = vrot.slane %v314_v2, 4  ;;  %v324_v15 = vor.u32 %v323_v63, %v319_v4  ;;  %v7613_v47 = vld [vmem:[%s7509_s12 + $0x2c] sm:$0x1]  ;;  %v7627_v53 = vld [vmem:[%s7509_s12 + $0x30] sm:$0xf] }
  0x20   : > { %6138 = vmatpush3.bf16.msra.mxu0 %v7197_v18  ;;  %v306_v13 = vsel %vm7549_vm5, %v301_v3, %v305_v49  ;;  %v329_v16 = vrot.slane %v327_v5, 5  ;;  %v332_v17 = vshrl.u32 %v7564_v6, 16  ;;  %v7579_v18 = vld [vmem:[%s7509_s12 + $0x20] sm:$0x1]  ;;  %v341_v34 = vshll.u32 %v233_v12, 16 }
  0x21   : > { %6250 = vmatpush3.bf16.msra.mxu1 %v7198_v19  ;;  %6139 = vmatprep.subr.bf16.mxu0 %v7199_v20  ;;  %v5804_v19 = vcombine.low %v296_v8, %v306_v13  ;;  %v724_v20 = vsel %vm7540_vm4, %v722_v10, %v723_v40  ;;  %v351_v36 = vshll.u32 %v7579_v18, 16  ;;  %v356_v45 = vshrl.u32 %v7594_v32, 16  ;;  %v7646_v10 = vld [vmem:[%s7509_s12 + $0x34] sm:$0xf] }
  0x22   : > { %6251 = vmatprep.subr.bf16.mxu1 %v7200_v21  ;;  %v320_v21 = vsel %vm7549_vm5, %v315_v11, %v319_v4  ;;  %v343_v43 = vrot.slane %v341_v34, 5  ;;  %v359_v46 = vshll.u32 %v7594_v32, 16  ;;  %v369_v51 = vshrl.u32 %v7600_v37, 16 }
  0x23   : > { %1722 = vmatprep.mubr.bf16.mxu0 %v5804_v19  ;;  %v7624_v52 = vcombine.low %v7594_v32, %v7600_v37  ;;  %v5772_v58 = vrot.slane %v7564_v6, 9  ;;  %v737_v62 = vrot.slane %v7579_v18, 5  ;;  %v358_v63 = vrot.slane %v356_v45, 4  ;;  %v7663_v19 = vld [vmem:[%s7509_s12 + $0x3c] sm:$0xf]  ;;  %v7230_v45 = vld [vmem:[%s10133_s1 + $0x120] sm:$0xff]  }
  0x24   : > { %6140 = vmatpush3.bf16.msra.mxu0 %v7201_v22  ;;  %v335_v22 = vshll.u32 %v7564_v6, 16  ;;  %v361_v0 = vrot.slane %v359_v46, 5  ;;  %v365_v5 = vshll.u32 %v7600_v37, 16  ;;  %v371_v8 = vrot.slane %v369_v51, 4 }
  0x25   : > { %6252 = vmatpush3.bf16.msra.mxu1 %v7202_v23  ;;  %6141 = vmatprep.subr.bf16.mxu0 %v7203_v24  ;;  %v7217_v23 = vld [vmem:[%s10133_s1 + $0x148] sm:$0xff]   ;;  %v5820_v24 = vcombine.low %v721_v9, %v724_v20  ;;  %v375_v9 = vshll.u32 %v7613_v47, 16  ;;  %v380_v11 = vshrl.u32 %v7627_v53, 16  ;;  %v7226_v20 = vld [vmem:[%s10133_s1 + $0x118] sm:$0xff]  }
  0x26   : > { %6253 = vmatprep.subr.bf16.mxu1 %v7204_v25  ;;  %v325_v25 = vrot.slane %v324_v15, 4  ;;  %v383_v15 = vshll.u32 %v7627_v53, 16 }
  0x28   : > { %6142 = vmatpush3.bf16.msra.mxu0 %v7205_v26  ;;  %v345_v26 = vshrl.u32 %v233_v12, 16  ;;  %v330_v33 = vsel %vm7549_vm5, %v325_v25, %v329_v16  ;;  %v7657_v16 = vld [vmem:[%s7509_s12 + $0x38] sm:$0x1]  ;;  %v5773_v25 = vrot.slane %v7594_v32, 9  ;;  %v385_v34 = vrot.slane %v383_v15, 5 }
  0x29   : > { %6254 = vmatpush3.bf16.msra.mxu1 %v7206_v27  ;;  %6143 = vmatprep.subr.bf16.mxu0 %v7207_v28  ;;  %v7590_v27 = vcombine.low %v7564_v6, %v233_v12  ;;  %v727_v28 = vrot.slane %v7532_v44, 5  ;;  %v7602_v38 = vcombine.low %v320_v21, %v330_v33  ;;  %v353_v44 = vrot.slane %v351_v36, 5  ;;  %v7225_v6 = vld [vmem:[%s10133_s1 + $0x158] sm:$0xff]   ;;  %v7229_v21 = vld [vmem:[%s10133_s1 + $0x160] sm:$0xff]  }
  0x2a   : > { %6255 = vmatprep.subr.bf16.mxu1 %v7208_v29  ;;  %v730_v29 = vrot.slane %v231_v1, 5  ;;  %v347_v35 = vrot.slane %v345_v26, 4  ;;  %v7222_v1 = vld [vmem:[%s10133_s1 + $0x110] sm:$0xff]   ;;  %v7676_v26 = vld [vmem:[%s7509_s12 + $0x40] sm:$0xf]  ;;  %v7686_v32 = vcombine.low %v7627_v53, %v7646_v10 }
  0x2b   : > { %v728_v39 = vsel %vm7540_vm4, %v5771_v7, %v727_v28  ;;  %v729_v40 = vrot.slane %v727_v28, 4  ;;  %v362_v7 = vor.u32 %v361_v0, %v358_v63  ;;  %v748_v63 = vrot.slane %v7646_v10, 5 }
  0x2c   : > { %6144 = vmatpush3.bf16.msra.mxu0 %v7209_v30  ;;  %v334_v30 = vrot.slane %v332_v17, 4  ;;  %v751_v0 = vrot.slane %v7657_v16, 5 }
  0x2d   : > { %6256 = vmatpush3.bf16.msra.mxu1 %v7210_v31  ;;  %6353 = vmatprep.subr.bf16.mxu0 %v7213_v56  ;;  %v337_v31 = vrot.slane %v335_v22, 5  ;;  %v731_v49 = vsel %vm7540_vm4, %v729_v40, %v730_v29  ;;  %v348_v56 = vor.u32 %v347_v35, %v343_v43  ;;  %v363_v18 = vrot.slane %v362_v7, 4 }
  0x2e   : > { %v7629_v54 = vcombine.low %v728_v39, %v731_v49  ;;  %v741_v29 = vrot.slane %v7600_v37, 5  ;;  %v389_v35 = vshll.u32 %v7646_v10, 16  ;;  %v399_v40 = vshll.u32 %v7657_v16, 16  ;;  %v7702_v49 = vld [vmem:[%s7509_s12 + $0x44] sm:$0x1] }
  0x2f   : > { %1723 = vmatmul.mubr.bf16.vlgmr.msra.gmra.mrb[0].mxu0 %v5788_v60  ;;  %v338_v41 = vor.u32 %v337_v31, %v334_v30  ;;  %v734_v60 = vrot.slane %v233_v12, 5  ;;  %v349_v2 = vrot.slane %v348_v56, 4  ;;  %v744_v30 = vrot.slane %v7613_v47, 5 }
  0x30   : > { %1884 = vmatmul.mubr.bf16.vlgmr.msra.gmra.mrb[0].mxu1 %v5820_v24  ;;  %6354 = vmatpush3.bf16.msra.mxu0 %v7214_v14  ;;  %v367_v14 = vrot.slane %v365_v5, 5  ;;  %v393_v24 = vshrl.u32 %v7646_v10, 16  ;;  %v382_v31 = vrot.slane %v380_v11, 4  ;;  %v743_v39 = vrot.slane %v741_v29, 4  ;;  %v7237_v11 = vld [vmem:[%s10133_s1 + $0x170] sm:$0xff]  }
  0x31   : > { %1891 = vmatprep.mubr.bf16.mxu1 %v7590_v27  ;;  %6355 = vmatprep.subr.bf16.mxu0 %v7217_v23  ;;  %v339_v50 = vrot.slane %v338_v41, 4  ;;  %v735_v3 = vsel %vm7540_vm4, %v5772_v58, %v734_v60  ;;  %v736_v4 = vrot.slane %v734_v60, 4  ;;  %v354_v12 = vsel %vm7549_vm5, %v349_v2, %v353_v44  ;;  %v7720_v2 = vld [vmem:[%s7509_s12 + $0x4c] sm:$0xf] }
  0x32   : > { %1730 = vmatprep.mubr.bf16.mxu0 %v7602_v38  ;;  %v372_v23 = vor.u32 %v371_v8, %v367_v14  ;;  %v368_v28 = vsel %vm7549_vm5, %v363_v18, %v367_v14  ;;  %v395_v36 = vrot.slane %v393_v24, 4  ;;  %v404_v41 = vshrl.u32 %v7663_v19, 16 }
  0x33   : > { %v344_v61 = vsel %vm7549_vm5, %v339_v50, %v343_v43  ;;  %v738_v13 = vsel %vm7540_vm4, %v736_v4, %v737_v62  ;;  %v391_v43 = vrot.slane %v389_v35, 5  ;;  %v407_v44 = vshll.u32 %v7663_v19, 16  ;;  %v7233_v50 = vld [vmem:[%s10133_s1 + $0x168] sm:$0xff]  }
  0x34   : > { %6356 = vmatpush3.bf16.msra.mxu0 %v7218_v42  ;;  %v7659_v17 = vcombine.low %v344_v61, %v354_v12  ;;  %v7671_v22 = vcombine.low %v735_v3, %v738_v13  ;;  %v373_v33 = vrot.slane %v372_v23, 4  ;;  %v386_v42 = vor.u32 %v385_v34, %v382_v31  ;;  %v7712_v61 = vld [vmem:[%s7509_s12 + $0x48] sm:$0xf]  ;;  %v7239_v34 = vld [vmem:[%s10133_s1 + $0x1c0] sm:$0xff]  }
  0x35   : > { %6357 = vmatprep.subr.bf16.mxu0 %v7221_v48  ;;  %v742_v47 = vsel %vm7540_vm4, %v5773_v25, %v741_v29  ;;  %v417_v48 = vshrl.u32 %v7676_v26, 16  ;;  %v745_v51 = vsel %vm7540_vm4, %v743_v39, %v744_v30  ;;  %v396_v58 = vor.u32 %v395_v36, %v391_v43  ;;  %v7238_v29 = vld [vmem:[%s10133_s1 + $0x130] sm:$0xff]   ;;  %6465 = vmatprep.subr.bf16.mxu1 %v7239_v34 }
  0x36   : > { %v387_v56 = vrot.slane %v386_v42, 4  ;;  %v401_v60 = vrot.slane %v399_v40, 5  ;;  %v5774_v62 = vrot.slane %v7627_v53, 9  ;;  %v409_v5 = vrot.slane %v407_v44, 5  ;;  %v7234_v53 = vld [vmem:[%s10133_s1 + $0x128] sm:$0xff]  }
  0x37   : > { %1731 = vmatmul.mubr.bf16.gmra.mrb[4].mxu0 %v7555_v59  ;;  %v377_v59 = vrot.slane %v375_v9, 5  ;;  %v397_v4 = vrot.slane %v396_v58, 4  ;;  %v7728_v7 = vcombine.low %v742_v47, %v745_v51  ;;  %v750_v8 = vrot.slane %v748_v63, 4  ;;  %v7241_v44 = vld [vmem:[%s10133_s1 + $0x1c8] sm:$0xff]  }
  0x38   : > { %1892 = vmatmul.mubr.bf16.gmra.mrb[4].mxu1 %v7629_v54  ;;  %6358 = vmatpush3.bf16.msra.mxu0 %v7222_v1  ;;  %v406_v1 = vrot.slane %v404_v41, 4  ;;  %v392_v3 = vsel %vm7549_vm5, %v387_v56, %v391_v43  ;;  %v419_v9 = vrot.slane %v417_v48, 4  ;;  %v423_v10 = vshll.u32 %v7702_v49, 16 }
  0x39   : > { %1899 = vmatprep.mubr.bf16.mxu1 %v7624_v52  ;;  %6359 = vmatprep.subr.bf16.mxu0 %v7225_v6  ;;  %v378_v37 = vsel %vm7549_vm5, %v373_v33, %v377_v59  ;;  %v413_v6 = vshll.u32 %v7676_v26, 16  ;;  %v402_v12 = vsel %vm7549_vm5, %v397_v4, %v401_v60  ;;  %v428_v15 = vshrl.u32 %v7712_v61, 16  ;;  %v7758_v33 = vld [vmem:[%s7509_s12 + $0x58] sm:$0xf] }
  0x3a   : > { %1738 = vmatprep.mubr.bf16.mxu0 %v7659_v17  ;;  %v7696_v46 = vcombine.low %v368_v28, %v378_v37  ;;  %v410_v13 = vor.u32 %v409_v5, %v406_v1  ;;  %v7737_v16 = vcombine.low %v392_v3, %v402_v12  ;;  %v7741_v18 = vcombine.low %v7663_v19, %v7676_v26  ;;  %v7749_v28 = vld [vmem:[%s7509_s12 + $0x54] sm:$0xf]  ;;  %v7798_v5 = vld [vmem:[%s7509_s12 + $0x5c] sm:$0x1] }
  0x3b   : > { %v415_v14 = vrot.slane %v413_v6, 5  ;;  %v431_v59 = vshll.u32 %v7712_v61, 16  ;;  %v425_v24 = vrot.slane %v423_v10, 5  ;;  %v441_v25 = vshrl.u32 %v7720_v2, 16  ;;  %v7801_v6 = vld [vmem:[%s7509_s12 + $0x60] sm:$0xf] }
  0x3c   : > { %6360 = vmatpush3.bf16.msra.mxu0 %v7226_v20  ;;  %v7745_v20 = vld [vmem:[%s7509_s12 + $0x50] sm:$0x1]  ;;  %v749_v30 = vsel %vm7540_vm4, %v5774_v62, %v748_v63  ;;  %v755_v31 = vrot.slane %v7676_v26, 5  ;;  %v752_v35 = vsel %vm7540_vm4, %v750_v8, %v751_v0  ;;  %v430_v39 = vrot.slane %v428_v15, 4  ;;  %v7240_v26 = vld [vmem:[%s10133_s1 + $0x180] sm:$0xff]   ;;  %v7243_v0 = vld [vmem:[%s10133_s1 + $0x188] sm:$0xff]  }
  0x3d   : > { %6361 = vmatprep.subr.bf16.mxu0 %v7229_v21  ;;  %v411_v21 = vrot.slane %v410_v13, 4  ;;  %v420_v23 = vor.u32 %v419_v9, %v415_v14  ;;  %v433_v40 = vrot.slane %v431_v59, 5  ;;  %v5775_v37 = vrot.slane %v7663_v19, 9  ;;  %6466 = vmatpush3.bf16.msra.mxu1 %v7240_v26  ;;  %v7806_v10 = vld [vmem:[%s7509_s12 + $0x64] sm:$0xf]  ;;  %v7245_v59 = vld [vmem:[%s10133_s1 + $0x190] sm:$0xff]  }
  0x3e   : > { %v437_v42 = vshll.u32 %v7720_v2, 16  ;;  %v443_v43 = vrot.slane %v441_v25, 4  ;;  %v447_v48 = vshll.u32 %v7745_v20, 16  ;;  %v757_v19 = vrot.slane %v755_v31, 4  ;;  %6467 = vmatprep.subr.bf16.mxu1 %v7241_v44 }
  0x3f   : > { %1739 = vmatmul.mubr.bf16.gmra.mrb[8].mxu0 %v7590_v27  ;;  %v421_v36 = vrot.slane %v420_v23, 4  ;;  %v416_v41 = vsel %vm7549_vm5, %v411_v21, %v415_v14  ;;  %v434_v47 = vor.u32 %v433_v40, %v430_v39  ;;  %v758_v51 = vrot.slane %v7702_v49, 5 }
  0x40   : > { %1900 = vmatmul.mubr.bf16.gmra.mrb[8].mxu1 %v7671_v22  ;;  %1746 = vmatprep.mubr.bf16.mxu0 %v7696_v46  ;;  %v439_v56 = vrot.slane %v437_v42, 5  ;;  %v455_v58 = vshll.u32 %v7749_v28, 16  ;;  %v7785_v60 = vcombine.low %v749_v30, %v752_v35  ;;  %v465_v63 = vshrl.u32 %v7758_v33, 16  ;;  %v7248_v42 = vld [vmem:[%s10133_s1 + $0x198] sm:$0xff]  }
  0x41   : > { %1907 = vmatprep.mubr.bf16.mxu1 %v7686_v32  ;;  %6362 = vmatpush3.bf16.msra.mxu0 %v7230_v45  ;;  %v426_v45 = vsel %vm7549_vm5, %v421_v36, %v425_v24  ;;  %v435_v62 = vrot.slane %v434_v47, 4  ;;  %v7795_v49 = vcombine.low %v7712_v61, %v7720_v2  ;;  %v449_v4 = vrot.slane %v447_v48, 5  ;;  %v7850_v47 = vld [vmem:[%s7509_s12 + $0x68] sm:$0x1] }
  0x42   : > { %6363 = vmatprep.subr.bf16.mxu0 %v7233_v50  ;;  %v452_v50 = vshrl.u32 %v7749_v28, 16  ;;  %v7791_v1 = vcombine.low %v416_v41, %v426_v45  ;;  %v444_v3 = vor.u32 %v443_v43, %v439_v56  ;;  %v457_v9 = vrot.slane %v455_v58, 5  ;;  %6468 = vmatpush3.bf16.msra.mxu1 %v7243_v0  ;;  %v7856_v58 = vld [vmem:[%s7509_s12 + $0x70] sm:$0xf] }
  0x43   : > { %10196 = vst [vmem:[#allocation3_spill] sm:$0xff] %v7795_v49  ;;  %v759_v12 = vsel %vm7540_vm4, %v757_v19, %v758_v51  ;;  %v762_v14 = vrot.slane %v7720_v2, 5  ;;  %v461_v15 = vshll.u32 %v7758_v33, 16  ;;  %v440_v21 = vsel %vm7549_vm5, %v435_v62, %v439_v56  ;;  %v7246_v2 = vld [vmem:[%s10133_s1 + $0x1d8] sm:$0xff]  }
  0x44   : > { %v454_v8 = vrot.slane %v452_v50, 4  ;;  %v445_v13 = vrot.slane %v444_v3, 4  ;;  %v5776_v23 = vrot.slane %v7712_v61, 9  ;;  %v765_v24 = vrot.slane %v7745_v20, 5  ;;  %v7249_v62 = vld [vmem:[%s10133_s1 + $0x178] sm:$0xff]  }
  0x45   : > { %6364 = vmatpush3.bf16.msra.mxu0 %v7234_v53  ;;  %v756_v53 = vsel %vm7540_vm4, %v5775_v37, %v755_v31  ;;  %v467_v25 = vrot.slane %v465_v63, 4  ;;  %v463_v31 = vrot.slane %v461_v15, 5  ;;  %v471_v34 = vshll.u32 %v7798_v5, 16  ;;  %v7844_v37 = vld [vmem:[%s7509_s12 + $0x6c] sm:$0xf] }
  0x46   : > { %6365 = vmatprep.subr.bf16.mxu0 %v7237_v11  ;;  %v7244_v11 = vld [vmem:[%s10133_s1 + $0x1d0] sm:$0xff]   ;;  %v458_v30 = vor.u32 %v457_v9, %v454_v8  ;;  %v476_v61 = vshrl.u32 %v7801_v6, 16  ;;  %v479_v20 = vshll.u32 %v7801_v6, 16  ;;  %v764_v35 = vrot.slane %v762_v14, 4 }
  0x47   : > { %1747 = vmatmul.mubr.bf16.gmra.mrb[12].mxu0 %v7624_v52  ;;  %6469 = vmatprep.subr.bf16.mxu1 %v7244_v11  ;;  %v468_v36 = vor.u32 %v467_v25, %v463_v31  ;;  %v489_v39 = vshrl.u32 %v7806_v10, 16  ;;  %v7835_v40 = vcombine.low %v756_v53, %v759_v12  ;;  %v7841_v41 = vcombine.low %v7749_v28, %v7758_v33 }
  0x48   : > { %1908 = vmatmul.mubr.bf16.gmra.mrb[12].mxu1 %v7728_v7  ;;  %1754 = vmatprep.mubr.bf16.mxu0 %v7737_v16  ;;  %v459_v43 = vrot.slane %v458_v30, 4  ;;  %v473_v45 = vrot.slane %v471_v34, 5  ;;  %v485_v48 = vshll.u32 %v7806_v10, 16  ;;  %v763_v50 = vsel %vm7540_vm4, %v5776_v23, %v762_v14 }
  0x49   : > { %1915 = vmatprep.mubr.bf16.mxu1 %v7741_v18  ;;  %6366 = vmatpush3.bf16.msra.mxu0 %v7238_v29  ;;  %v450_v29 = vsel %vm7549_vm5, %v445_v13, %v449_v4  ;;  %10197 = vst [vmem:[#allocation4_spill] sm:$0xff] %v7835_v40  ;;  %10199 = vst [vmem:[#allocation6_spill] sm:$0xff] %v7841_v41  ;;  %v469_v44 = vrot.slane %v468_v36, 4  ;;  %v478_v19 = vrot.slane %v476_v61, 4  ;;  %v481_v51 = vrot.slane %v479_v20, 5  ;;  %v7250_v13 = vld [vmem:[%s10133_s1 + $0x138] sm:$0xff]  }
  0x4a   : > { %6470 = vmatpush3.bf16.msra.mxu1 %v7245_v59  ;;  %v7837_v26 = vcombine.low %v440_v21, %v450_v29  ;;  %v491_v56 = vrot.slane %v489_v39, 4  ;;  %v766_v63 = vsel %vm7540_vm4, %v764_v35, %v765_v24  ;;  %v7863_v0 = vrot.slane %v485_v48, 5  ;;  %v7885_v59 = vld [vmem:[%s7509_s12 + $0x78] sm:$0xf]  ;;  %v7888_v21 = vld [vmem:[%s7509_s12 + $0x7c] sm:$0xf]  ;;  %6367 = vmatprep.subr.bf16.mxu0 %v7249_v62 }
  0x4b   : > { %6471 = vmatprep.subr.bf16.mxu1 %v7246_v2  ;;  %v500_v3 = vshrl.u32 %v7844_v37, 16  ;;  %v503_v4 = vshll.u32 %v7844_v37, 16  ;;  %v769_v53 = vrot.slane %v7758_v33, 5  ;;  %v495_v8 = vshll.u32 %v7850_v47, 16  ;;  %v7251_v29 = vld [vmem:[%s10133_s1 + $0x1e0] sm:$0xff]  }
  0x4c   : > { %10198 = vst [vmem:[#allocation5_spill] sm:$0xff] %v7837_v26  ;;  %v464_v9 = vsel %vm7549_vm5, %v459_v43, %v463_v31  ;;  %v474_v11 = vsel %vm7549_vm5, %v469_v44, %v473_v45  ;;  %v513_v12 = vshrl.u32 %v7856_v58, 16  ;;  %v7881_v14 = vcombine.low %v763_v50, %v766_v63  ;;  %v7252_v20 = vld [vmem:[%s10133_s1 + $0x1a0] sm:$0xff]   ;;  %v7906_v36 = vld [vmem:[%s7509_s12 + $0x74] sm:$0x1]  ;;  %v7253_v63 = vld [vmem:[%s10133_s1 + $0x1e8] sm:$0xff]  }
  0x4d   : > { %v482_v33 = vor.u32 %v481_v51, %v478_v19  ;;  %v492_v15 = vor.u32 %v491_v56, %v7863_v0  ;;  %v7892_v23 = vcombine.low %v7801_v6, %v7806_v10  ;;  %v502_v24 = vrot.slane %v500_v3, 4  ;;  %6368 = vmatpush3.bf16.msra.mxu0 %v7250_v13  ;;  %v7923_v62 = vld [vmem:[%s7509_s12 + $0x80] sm:$0x1] }
  0x4e   : > { %6472 = vmatpush3.bf16.msra.mxu1 %v7248_v42  ;;  %10200 = vst [vmem:[#allocation7_spill] sm:$0xff] %v7881_v14  ;;  %v505_v25 = vrot.slane %v503_v4, 5  ;;  %v509_v2 = vshll.u32 %v7856_v58, 16  ;;  %v7898_v30 = vcombine.low %v464_v9, %v474_v11  ;;  %v5777_v31 = vrot.slane %v7749_v28, 9  ;;  %v7933_v9 = vld [vmem:[%s7509_s12 + $0x84] sm:$0xf] }
  0x4f   : > { %1755 = vmatmul.mubr.bf16.gmra.mrb[16].mxu0 %v7686_v32  ;;  %10201 = vst [vmem:[#allocation8_spill] sm:$0xff] %v7892_v23  ;;  %v771_v34 = vrot.slane %v769_v53, 4  ;;  %v772_v61 = vrot.slane %v7798_v5, 5  ;;  %v497_v35 = vrot.slane %v495_v8, 5  ;;  %v515_v42 = vrot.slane %v513_v12, 4  ;;  %6473 = vmatprep.subr.bf16.mxu1 %v7251_v29 }
  0x50   : > { %1916 = vmatmul.mubr.bf16.gmra.mrb[16].mxu1 %v7785_v60  ;;  %1762 = vmatprep.mubr.bf16.mxu0 %v7791_v1  ;;  %10202 = vst [vmem:[#allocation9_spill] sm:$0xff] %v7898_v30  ;;  %v7908_v39 = vrot.slane %v509_v2, 5  ;;  %v524_v43 = vshrl.u32 %v7885_v59, 16  ;;  %v483_v44 = vrot.slane %v482_v33, 4  ;;  %v493_v45 = vrot.slane %v492_v15, 4  ;;  %v7256_v33 = vld [vmem:[%s10133_s1 + $0x1f0] sm:$0xff]  }
  0x51   : > { %1923 = vmatprep.mubr.bf16.mxu1 %v7795_v49  ;;  %v776_v28 = vrot.slane %v7806_v10, 5  ;;  %v527_v5 = vshll.u32 %v7885_v59, 16  ;;  %v506_v48 = vor.u32 %v505_v25, %v502_v24  ;;  %v537_v50 = vshrl.u32 %v7888_v21, 16 }
  0x52   : > { %6474 = vmatpush3.bf16.msra.mxu1 %v7252_v20  ;;  %v770_v19 = vsel %vm7540_vm4, %v5777_v31, %v769_v53  ;;  %v773_v51 = vsel %vm7540_vm4, %v771_v34, %v772_v61  ;;  %v5778_v56 = vrot.slane %v7801_v6, 9  ;;  %v779_v10 = vrot.slane %v7850_v47, 5  ;;  %v7255_v6 = vld [vmem:[%s10133_s1 + $0x1a8] sm:$0xff]  }
  0x53   : > { %v516_v3 = vor.u32 %v515_v42, %v7908_v39  ;;  %v519_v4 = vshll.u32 %v7906_v36, 16  ;;  %v526_v53 = vrot.slane %v524_v43, 4  ;;  %v529_v8 = vrot.slane %v527_v5, 5  ;;  %6475 = vmatprep.subr.bf16.mxu1 %v7253_v63  ;;  %v7257_v42 = vld [vmem:[%s10133_s1 + $0x1b0] sm:$0xff]  }
  0x54   : > { %v488_v47 = vsel %vm7549_vm5, %v483_v44, %v7863_v0  ;;  %v498_v11 = vsel %vm7549_vm5, %v493_v45, %v497_v35  ;;  %v778_v12 = vrot.slane %v776_v28, 4  ;;  %v533_v13 = vshll.u32 %v7888_v21, 16  ;;  %v7965_v44 = vld [vmem:[%s7509_s12 + $0x88] sm:$0xf] }
  0x55   : > { %v7947_v15 = vcombine.low %v770_v19, %v773_v51  ;;  %v507_v24 = vrot.slane %v506_v48, 4  ;;  %v539_v25 = vrot.slane %v537_v50, 4  ;;  %v7951_v0 = vcombine.low %v7844_v37, %v7856_v58  ;;  %v7258_v19 = vld [vmem:[%s10133_s1 + $0x1f8] sm:$0xff]  }
  0x56   : > { %6476 = vmatpush3.bf16.msra.mxu1 %v7255_v6  ;;  %v783_v2 = vrot.slane %v7856_v58, 5  ;;  %v530_v29 = vor.u32 %v529_v8, %v526_v53  ;;  %v7954_v31 = vrot.slane %v533_v13, 5  ;;  %v7956_v34 = vcombine.low %v488_v47, %v498_v11  ;;  %v7997_v53 = vld [vmem:[%s10133_s1 + $0x200] sm:$0xff]  }
  0x57   : > { %1763 = vmatmul.mubr.bf16.gmra.mrb[20].mxu0 %v7741_v18  ;;  %10203 = vst [vmem:[#allocation10_spill] sm:$0xff] %v7947_v15  ;;  %10204 = vst [vmem:[#allocation11_spill] sm:$0xff] %v7951_v0  ;;  %6477 = vmatprep.subr.bf16.mxu1 %v7256_v33  ;;  %v517_v61 = vrot.slane %v516_v3, 4  ;;  %v521_v20 = vrot.slane %v519_v4, 5  ;;  %v543_v35 = vshll.u32 %v7923_v62, 16  ;;  %v777_v43 = vsel %vm7540_vm4, %v5778_v56, %v776_v28 }
  0x58   : > { %1924 = vmatmul.mubr.bf16.gmra.mrb[20].mxu1 %v7835_v40  ;;  %1770 = vmatprep.mubr.bf16.mxu0 %v7837_v26  ;;  %10205 = vst [vmem:[#allocation12_spill] sm:$0xff] %v7956_v34  ;;  %v548_v58 = vshrl.u32 %v7933_v9, 16  ;;  %v780_v45 = vsel %vm7540_vm4, %v778_v12, %v779_v10  ;;  %v5779_v5 = vrot.slane %v7844_v37, 9  ;;  %v540_v48 = vor.u32 %v539_v25, %v7954_v31  ;;  %v7259_v10 = vld [vmem:[%s10133_s1 + $0x1b8] sm:$0xff]   ;;  %v8003_v12 = vld [vmem:[%s7509_s12 + $0x8c] sm:$0x1] }
  0x59   : > { %1931 = vmatprep.mubr.bf16.mxu1 %v7841_v41  ;;  %v551_v50 = vshll.u32 %v7933_v9, 16  ;;  %v512_v28 = vsel %vm7549_vm5, %v507_v24, %v7908_v39  ;;  %v785_v51 = vrot.slane %v783_v2, 4  ;;  %v786_v37 = vrot.slane %v7906_v36, 5  ;;  %v7992_v36 = vld [vmem:[%s7509_s12 + $0x90] sm:$0xf]  ;;  %7073 = vmatprep.subr.bf16.mxu0 %v7997_v53 }
  0x5a   : > { %6478 = vmatpush3.bf16.msra.mxu1 %v7257_v42  ;;  %v531_v56 = vrot.slane %v530_v29, 4  ;;  %v522_v63 = vsel %vm7549_vm5, %v517_v61, %v521_v20  ;;  %v545_v3 = vrot.slane %v543_v35, 5  ;;  %v561_v4 = vshrl.u32 %v7965_v44, 16  ;;  %v8017_v61 = vld [vmem:[%s7509_s12 + $0x94] sm:$0xf] }
  0x5b   : > { %v557_v39 = vshll.u32 %v7965_v44, 16  ;;  %v790_v8 = vrot.slane %v7888_v21, 5  ;;  %v550_v6 = vrot.slane %v548_v58, 4  ;;  %6479 = vmatprep.subr.bf16.mxu1 %v7258_v19  ;;  %v8000_v47 = vcombine.low %v777_v43, %v780_v45 }
  0x5c   : > { %v541_v11 = vrot.slane %v540_v48, 4  ;;  %v553_v13 = vrot.slane %v551_v50, 5  ;;  %v8006_v33 = vcombine.low %v512_v28, %v522_v63  ;;  %v8010_v24 = vcombine.low %v7885_v59, %v7888_v21  ;;  %v8033_v50 = vld [vmem:[%s7509_s12 + $0x9c] sm:$0xf]  ;;  %v8041_v28 = vld [vmem:[%s7509_s12 + $0x98] sm:$0x1] }
  0x5d   : > { %10206 = vst [vmem:[#allocation13_spill] sm:$0xff] %v8000_v47  ;;  %v784_v25 = vsel %vm7540_vm4, %v5779_v5, %v783_v2  ;;  %v787_v29 = vsel %vm7540_vm4, %v785_v51, %v786_v37  ;;  %v536_v20 = vsel %vm7549_vm5, %v531_v56, %v7954_v31  ;;  %v5780_v35 = vrot.slane %v7885_v59, 9  ;;  %v8044_v51 = vld [vmem:[%s7509_s12 + $0xa0] sm:$0xf] }
  0x5e   : > { %6480 = vmatpush3.bf16.msra.mxu1 %v7259_v10  ;;  %10207 = vst [vmem:[#allocation14_spill] sm:$0xff] %v8006_v33  ;;  %10208 = vst [vmem:[#allocation15_spill] sm:$0xff] %v8010_v24  ;;  %v8023_v42 = vrot.slane %v557_v39, 5  ;;  %v563_v21 = vrot.slane %v561_v4, 4  ;;  %v792_v43 = vrot.slane %v790_v8, 4  ;;  %v793_v58 = vrot.slane %v7923_v62, 5 }
  0x5f   : > { %1771 = vmatmul.mubr.bf16.gmra.mrb[24].mxu0 %v7795_v49  ;;  %v572_v2 = vshrl.u32 %v7992_v36, 16  ;;  %v575_v45 = vshll.u32 %v7992_v36, 16  ;;  %v546_v5 = vsel %vm7549_vm5, %v541_v11, %v545_v3  ;;  %v554_v48 = vor.u32 %v553_v13, %v550_v6  ;;  %v8057_v3 = vld [vmem:[%s7509_s12 + $0xa8] sm:$0xf] }
  0x60   : > { %1932 = vmatmul.mubr.bf16.gmra.mrb[24].mxu1 %v7881_v14  ;;  %1778 = vmatprep.mubr.bf16.mxu0 %v7898_v30  ;;  %v585_v31 = vshrl.u32 %v8017_v61, 16  ;;  %v581_v59 = vshll.u32 %v8017_v61, 16  ;;  %v8037_v62 = vcombine.low %v784_v25, %v787_v29  ;;  %v567_v19 = vshll.u32 %v8003_v12, 16 }
  0x61   : > { %1939 = vmatprep.mubr.bf16.mxu1 %v7892_v23  ;;  %v8050_v37 = vcombine.low %v7933_v9, %v7965_v44  ;;  %v791_v56 = vsel %vm7540_vm4, %v5780_v35, %v790_v8  ;;  %v564_v10 = vor.u32 %v563_v21, %v8023_v42  ;;  %v797_v63 = vrot.slane %v7965_v44, 5  ;;  %v8067_v35 = vld [vmem:[%s7509_s12 + $0xac] sm:$0xf] }
  0x62   : > { %10209 = vst [vmem:[#allocation16_spill] sm:$0xff] %v8037_v62  ;;  %v8059_v4 = vcombine.low %v536_v20, %v546_v5  ;;  %v794_v39 = vsel %vm7540_vm4, %v792_v43, %v793_v58  ;;  %v574_v6 = vrot.slane %v572_v2, 4  ;;  %v577_v11 = vrot.slane %v575_v45, 5 }
  0x63   : > { %v555_v13 = vrot.slane %v554_v48, 4  ;;  %v8063_v25 = vrot.slane %v581_v59, 5  ;;  %v587_v29 = vrot.slane %v585_v31, 4  ;;  %v596_v8 = vshrl.u32 %v8033_v50, 16 }
  0x64   : > { %10210 = vst [vmem:[#allocation17_spill] sm:$0xff] %v8059_v4  ;;  %v569_v21 = vrot.slane %v567_v19, 5  ;;  %v5781_v44 = vrot.slane %v7933_v9, 9  ;;  %v800_v20 = vrot.slane %v8003_v12, 5  ;;  %v599_v5 = vshll.u32 %v8033_v50, 16 }
  0x65   : > { %v565_v43 = vrot.slane %v564_v10, 4  ;;  %v591_v58 = vshll.u32 %v8041_v28, 16  ;;  %v609_v2 = vshrl.u32 %v8044_v51, 16  ;;  %v605_v45 = vshll.u32 %v8044_v51, 16 }
  0x66   : > { %v8075_v48 = vcombine.low %v791_v56, %v794_v39  ;;  %v799_v31 = vrot.slane %v797_v63, 4  ;;  %v578_v59 = vor.u32 %v577_v11, %v574_v6  ;;  %v620_v9 = vshrl.u32 %v8057_v3, 16 }
  0x67   : > { %1779 = vmatmul.mubr.bf16.gmra.mrb[28].mxu0 %v7841_v41  ;;  %v8083_v12 = vcombine.low %v7992_v36, %v8017_v61  ;;  %v588_v19 = vor.u32 %v587_v29, %v8063_v25  ;;  %v598_v10 = vrot.slane %v596_v8, 4  ;;  %v560_v56 = vsel %vm7549_vm5, %v555_v13, %v8023_v42 }
  0x68   : > { %1940 = vmatmul.mubr.bf16.gmra.mrb[28].mxu1 %v7947_v15  ;;  %1786 = vmatprep.mubr.bf16.mxu0 %v7956_v34  ;;  %10211 = vst [vmem:[#allocation18_spill] sm:$0xff] %v8075_v48  ;;  %v798_v39 = vsel %vm7540_vm4, %v5781_v44, %v797_v63  ;;  %v601_v6 = vrot.slane %v599_v5, 5  ;;  %v633_v11 = vshrl.u32 %v8067_v35, 16  ;;  %v570_v29 = vsel %vm7549_vm5, %v565_v43, %v569_v21  ;;  %v8105_v34 = vld [vmem:[%s7509_s12 + $0xb0] sm:$0x1] }
  0x69   : > { %1947 = vmatprep.mubr.bf16.mxu1 %v7951_v0  ;;  %v593_v8 = vrot.slane %v591_v58, 5  ;;  %v579_v42 = vrot.slane %v578_v59, 4  ;;  %v622_v13 = vrot.slane %v620_v9, 4  ;;  %v589_v5 = vrot.slane %v588_v19, 4  ;;  %v8120_v9 = vld [vmem:[%s7509_s12 + $0xb8] sm:$0xf] }
  0x6a   : > { %v629_v41 = vshll.u32 %v8067_v35, 16  ;;  %v8111_v21 = vcombine.low %v560_v56, %v570_v29  ;;  %v602_v43 = vor.u32 %v601_v6, %v598_v10  ;;  %v635_v58 = vrot.slane %v633_v11, 4 }
  0x6b   : > { %v807_v19 = vrot.slane %v8041_v28, 5  ;;  %v811_v56 = vrot.slane %v8044_v51, 5  ;;  %v639_v6 = vshll.u32 %v8105_v34, 16  ;;  %v584_v11 = vsel %vm7549_vm5, %v579_v42, %v8063_v25 }
  0x6c   : > { %10212 = vst [vmem:[#allocation19_spill] sm:$0xff] %v8111_v21  ;;  %v603_v28 = vrot.slane %v602_v43, 4  ;;  %v5783_v29 = vrot.slane %v8033_v50, 9  ;;  %v818_v42 = vrot.slane %v8067_v35, 5  ;;  %v657_v43 = vshrl.u32 %v8120_v9, 16 }
  0x6e   : > { %v820_v14 = vrot.slane %v818_v42, 4  ;;  %v659_v49 = vrot.slane %v657_v43, 4  ;;  %v275_v43 = vld [vmem:[%s7509_s12 + $0xc4] sm:$0xf] }
  0x6f   : > { %1787 = vmatmul.mubr.bf16.gmra.mrb[32].mxu0 %v7892_v23  ;;  %v8088_v23 = vld [vmem:[%s7509_s12 + $0xb4] sm:$0xf] }
  0x70   : > { %1948 = vmatmul.mubr.bf16.gmra.mrb[32].mxu1 %v8000_v47  ;;  %1794 = vmatprep.mubr.bf16.mxu0 %v8006_v33  ;;  %v8078_v33 = vld [vmem:[%s7509_s12 + $0xa4] sm:$0x1]  ;;  %v623_v47 = vshll.u32 %v8057_v3, 16 }
  0x71   : > { %1955 = vmatprep.mubr.bf16.mxu1 %v8010_v24  ;;  %v615_v15 = vshll.u32 %v8078_v33, 16 }
  0x72   : > { %v625_v44 = vrot.slane %v623_v47, 5  ;;  %v8117_v47 = vrot.slane %v629_v41, 5 }
  0x74   : > { %v626_v10 = vor.u32 %v625_v44, %v622_v13 }
  0x76   : > { %v627_v63 = vrot.slane %v626_v10, 4  ;;  %v8156_v10 = vcombine.low %v8033_v50, %v8044_v51  ;;  %v10213_v50 = vrot.slane %v7992_v36, 9  ;;  %v8181_v36 = vcombine.low %v8057_v3, %v8067_v35 }
  0x77   : > { %1795 = vmatmul.mubr.bf16.gmra.mrb[36].mxu0 %v7951_v0  ;;  %v8102_v0 = vrot.slane %v605_v45, 5  ;;  %v801_v45 = vsel %vm7540_vm4, %v799_v31, %v800_v20  ;;  %v617_v20 = vrot.slane %v615_v15, 5  ;;  %v8132_v31 = vld [vmem:[%s7509_s12 + $0xbc] sm:$0x1]  ;;  %v636_v15 = vor.u32 %v635_v58, %v8117_v47 }
  0x78   : > { %1956 = vmatmul.mubr.bf16.gmra.mrb[36].mxu1 %v8037_v62  ;;  %1802 = vmatprep.mubr.bf16.mxu0 %v8059_v4  ;;  %v611_v62 = vrot.slane %v609_v2, 4  ;;  %v804_v4 = vrot.slane %v8017_v61, 5  ;;  %v644_v2 = vshrl.u32 %v8088_v23, 16  ;;  %v647_v61 = vshll.u32 %v8088_v23, 16 }
  0x79   : > { %1963 = vmatprep.mubr.bf16.mxu1 %v8050_v37  ;;  %v663_v58 = vshll.u32 %v8132_v31, 16 }
  0x7a   : > { %v612_v59 = vor.u32 %v611_v62, %v8102_v0  ;;  %v594_v62 = vsel %vm7549_vm5, %v589_v5, %v593_v8  ;;  %v806_v41 = vrot.slane %v804_v4, 4  ;;  %v646_v13 = vrot.slane %v644_v2, 4 }
  0x7b   : > { %v649_v44 = vrot.slane %v647_v61, 5  ;;  %v814_v8 = vrot.slane %v8078_v33, 5  ;;  %v813_v5 = vrot.slane %v811_v56, 4  ;;  %v653_v2 = vshll.u32 %v8120_v9, 16  ;;  %v8146_v61 = vld [vmem:[%s7509_s12 + $0xc0] sm:$0xf] }
  0x7c   : > { %v613_v25 = vrot.slane %v612_v59, 4  ;;  %v821_v59 = vrot.slane %v8105_v34, 5  ;;  %v8152_v30 = vcombine.low %v584_v11, %v594_v62  ;;  %v831_v26 = vshrl.u32 %v8146_v61, 16 }
  0x7d   : > { %v650_v33 = vor.u32 %v649_v44, %v646_v13  ;;  %v655_v40 = vrot.slane %v653_v2, 5  ;;  %v805_v51 = vsel %vm7540_vm4, %v10213_v50, %v804_v4  ;;  %v808_v11 = vsel %vm7540_vm4, %v806_v41, %v807_v19 }
  0x7e   : > { %v608_v62 = vsel %vm7549_vm5, %v603_v28, %v8102_v0  ;;  %v618_v13 = vsel %vm7549_vm5, %v613_v25, %v617_v20  ;;  %v8175_v44 = vcombine.low %v805_v51, %v808_v11  ;;  %v844_v4 = vshrl.u32 %v275_v43, 16 }
  0x7f   : > { %1803 = vmatmul.mubr.bf16.gmra.mrb[40].mxu0 %v8010_v24  ;;  %v5784_v24 = vrot.slane %v8057_v3, 9  ;;  %v651_v34 = vrot.slane %v650_v33, 4  ;;  %v825_v19 = vrot.slane %v8120_v9, 5  ;;  %v812_v0 = vsel %vm7540_vm4, %v5783_v29, %v811_v56  ;;  %v276_v33 = vld [vmem:[%s7509_s12 + $0xc8] sm:$0x1] }
  0x80   : > { %1964 = vmatmul.mubr.bf16.gmra.mrb[40].mxu1 %v8075_v48  ;;  %1810 = vmatprep.mubr.bf16.mxu0 %v8111_v21  ;;  %v641_v48 = vrot.slane %v639_v6, 5  ;;  %v8148_v21 = vcombine.low %v798_v39, %v801_v45  ;;  %v637_v6 = vrot.slane %v636_v15, 4  ;;  %v834_v39 = vshll.u32 %v8146_v61, 16 }
  0x81   : > { %1971 = vmatprep.mubr.bf16.mxu1 %v8083_v12  ;;  %v665_v45 = vrot.slane %v663_v58, 5  ;;  %v8177_v15 = vcombine.low %v608_v62, %v618_v13  ;;  %v815_v41 = vsel %vm7540_vm4, %v813_v5, %v814_v8  ;;  %v632_v3 = vsel %vm7549_vm5, %v627_v63, %v8117_v47 }
  0x82   : > { %v642_v35 = vsel %vm7549_vm5, %v637_v6, %v641_v48  ;;  %v660_v20 = vor.u32 %v659_v49, %v655_v40  ;;  %v8198_v28 = vcombine.low %v812_v0, %v815_v41  ;;  %v8204_v2 = vcombine.low %v8088_v23, %v8120_v9 }
  0x83   : > { %v8200_v25 = vcombine.low %v632_v3, %v642_v35  ;;  %v840_v29 = vshll.u32 %v275_v43, 16  ;;  %v819_v8 = vsel %vm7540_vm4, %v5784_v24, %v818_v42  ;;  %v822_v63 = vsel %vm7540_vm4, %v820_v14, %v821_v59 }
  0x84   : > { %v661_v56 = vrot.slane %v660_v20, 4  ;;  %v833_v49 = vrot.slane %v831_v26, 4  ;;  %v836_v48 = vrot.slane %v834_v39, 5  ;;  %v846_v5 = vrot.slane %v844_v4, 4 }
  0x85   : > { %v842_v47 = vrot.slane %v840_v29, 5  ;;  %v656_v9 = vsel %vm7549_vm5, %v651_v34, %v655_v40  ;;  %v850_v59 = vshll.u32 %v276_v33, 16  ;;  %v8219_v58 = vcombine.low %v819_v8, %v822_v63  ;;  %v10217_v29 = vld [vmem:[#allocation7_spill] sm:$0xff]  ;;  %v10218_v8 = vld [vmem:[#allocation9_spill] sm:$0xff]  ;;  %v10221_v63 = vld [vmem:[#allocation12_spill] sm:$0xff] }
  0x86   : > { %v666_v24 = vsel %vm7549_vm5, %v661_v56, %v665_v45  ;;  %v837_v14 = vor.u32 %v836_v48, %v833_v49  ;;  %v8222_v26 = vcombine.low %v8146_v61, %v275_v43  ;;  %v5785_v11 = vrot.slane %v8088_v23, 9  ;;  %v10222_v49 = vld [vmem:[#allocation8_spill] sm:$0xff]  ;;  %v10223_v48 = vld [vmem:[#allocation13_spill] sm:$0xff] }
  0x87   : > { %1811 = vmatmul.mubr.bf16.gmra.mrb[44].mxu0 %v8050_v37  ;;  %v847_v42 = vor.u32 %v846_v5, %v842_v47  ;;  %v852_v50 = vrot.slane %v850_v59, 5  ;;  %v8224_v51 = vcombine.low %v656_v9, %v666_v24  ;;  %v827_v40 = vrot.slane %v825_v19, 4  ;;  %v10226_v5 = vld [vmem:[#allocation16_spill] sm:$0xff]  ;;  %v10227_v9 = vld [vmem:[#allocation17_spill] sm:$0xff]  ;;  %v10229_v24 = vld [vmem:[#allocation18_spill] sm:$0xff] }
  0x88   : > { %1972 = vmatmul.mubr.bf16.gmra.mrb[44].mxu1 %v8148_v21  ;;  %1818 = vmatprep.mubr.bf16.mxu0 %v8152_v30  ;;  %v838_v6 = vrot.slane %v837_v14, 4  ;;  %v828_v34 = vrot.slane %v8132_v31, 5  ;;  %v859_v4 = vrot.slane %v275_v43, 5  ;;  %v826_v23 = vsel %vm7540_vm4, %v5785_v11, %v825_v19  ;;  %v7262_v19 = vld [vmem:[%s10133_s1 + $0x210] sm:$0xff]   ;;  %v10230_v14 = vld [vmem:[#allocation19_spill] sm:$0xff] }
  0x89   : > { %1979 = vmatprep.mubr.bf16.mxu1 %v8156_v10  ;;  %v848_v39 = vrot.slane %v847_v42, 4  ;;  %v5786_v0 = vrot.slane %v8146_v61, 9  ;;  %v862_v3 = vrot.slane %v276_v33, 5  ;;  %v7261_v61 = vld [vmem:[%s10133_s1 + $0x208] sm:$0xff]   ;;  %v10228_v33 = vld [vmem:[#allocation15_spill] sm:$0xff] }
  0x8a   : > { %v843_v45 = vsel %vm7549_vm5, %v838_v6, %v842_v47  ;;  %v829_v31 = vsel %vm7540_vm4, %v827_v40, %v828_v34  ;;  %v861_v41 = vrot.slane %v859_v4, 4  ;;  %v10225_v47 = vld [vmem:[#allocation11_spill] sm:$0xff] }
  0x8b   : > { %v853_v62 = vsel %vm7549_vm5, %v848_v39, %v852_v50  ;;  %v8243_v35 = vcombine.low %v826_v23, %v829_v31  ;;  %v860_v20 = vsel %vm7540_vm4, %v5786_v0, %v859_v4  ;;  %v8322_v23 = vld [vmem:[%s7509_s12 + $0xcc] sm:$0xf] }
  0x8c   : > { %v8232_v13 = vcombine.low %v843_v45, %v853_v62  ;;  %v863_v43 = vsel %vm7540_vm4, %v861_v41, %v862_v3  ;;  %v865_v41 = vshrl.u32 %v8322_v23, 16  ;;  %v868_v3 = vshll.u32 %v8322_v23, 16 }
  0x8d   : > { %v8249_v56 = vcombine.low %v860_v20, %v863_v43 }
  0x8f   : > { %1819 = vmatmul.mubr.bf16.gmra.mrb[48].mxu0 %v8083_v12 }
  0x90   : > { %1980 = vmatmul.mubr.bf16.gmra.mrb[48].mxu1 %v8175_v44  ;;  %1826 = vmatprep.mubr.bf16.mxu0 %v8177_v15 }
  0x91   : > { %1987 = vmatprep.mubr.bf16.mxu1 %v8181_v36 }
  0x97   : > { %1827 = vmatmul.mubr.bf16.gmra.mrb[52].mxu0 %v8156_v10 }
  0x98   : > { %1988 = vmatmul.mubr.bf16.gmra.mrb[52].mxu1 %v8198_v28  ;;  %1834 = vmatprep.mubr.bf16.mxu0 %v8200_v25 }
  0x99   : > { %1995 = vmatprep.mubr.bf16.mxu1 %v8204_v2 }
  0x9f   : > { %1835 = vmatmul.mubr.bf16.gmra.mrb[56].mxu0 %v8181_v36 }
  0xa0   : > { %1996 = vmatmul.mubr.bf16.gmra.mrb[56].mxu1 %v8219_v58  ;;  %1842 = vmatprep.mubr.bf16.mxu0 %v8224_v51 }
  0xa1   : > { %2003 = vmatprep.mubr.bf16.mxu1 %v8222_v26 }
  0xa7   : > { %1843 = vmatmul.mubr.bf16.gmra.mrb[60].mxu0 %v8204_v2 }
  0xa8   : > { %2004 = vmatmul.mubr.bf16.gmra.mrb[60].mxu1 %v8243_v35  ;;  %2044 = vmatprep.mubr.bf16.mxu0 %v7629_v54  ;;  %v7263_v54 = vld [vmem:[%s10133_s1 + $0x218] sm:$0xff]  }
  0xa9   : > { %2205 = vmatprep.mubr.bf16.mxu1 %v7659_v17 }
  0xaf   : > { %2045 = vmatmul.mubr.bf16.vlgmr.msra.gmra.mrb[64].mxu0 %v7602_v38  ;;  %v7265_v38 = vld [vmem:[%s10133_s1 + $0x228] sm:$0xff]  }
  0xb0   : > { %2206 = vmatmul.mubr.bf16.vlgmr.msra.gmra.mrb[64].mxu1 %v7590_v27  ;;  %7074 = vmatpush3.bf16.msra.mxu0 %v7997_v53  ;;  %v7264_v27 = vld [vmem:[%s10133_s1 + $0x220] sm:$0xff]   ;;  %v10216_v53 = vld [vmem:[#allocation3_spill] sm:$0xff] }
  0xb1   : > { %2052 = vmatprep.mubr.bf16.mxu0 %v7671_v22  ;;  %2213 = vmatprep.mubr.bf16.mxu1 %v7696_v46 }
  0xb2   : > { %7075 = vmatprep.subr.bf16.mxu0 %v7261_v61 }
  0xb4   : > { %7076 = vmatpush3.bf16.msra.mxu0 %v7261_v61 }
  0xb5   : > { %7077 = vmatprep.subr.bf16.mxu0 %v7262_v19 }
  0xb7   : > { %2053 = vmatmul.mubr.bf16.gmra.mrb[68].mxu0 %v7659_v17  ;;  %v7267_v17 = vld [vmem:[%s10133_s1 + $0x238] sm:$0xff]  }
  0xb8   : > { %2214 = vmatmul.mubr.bf16.gmra.mrb[68].mxu1 %v7624_v52  ;;  %2060 = vmatprep.mubr.bf16.mxu0 %v7728_v7  ;;  %v7266_v52 = vld [vmem:[%s10133_s1 + $0x230] sm:$0xff]  }
  0xb9   : > { %2221 = vmatprep.mubr.bf16.mxu1 %v7737_v16  ;;  %7078 = vmatpush3.bf16.msra.mxu0 %v7262_v19 }
  0xba   : > { %7079 = vmatprep.subr.bf16.mxu0 %v7263_v54 }
  0xbd   : > { %7080 = vmatpush3.bf16.msra.mxu0 %v7263_v54 }
  0xbe   : > { %7081 = vmatprep.subr.bf16.mxu0 %v7264_v27 }
  0xbf   : > { %2061 = vmatmul.mubr.bf16.gmra.mrb[72].mxu0 %v7696_v46  ;;  %v10215_v46 = vld [vmem:[#allocation5_spill] sm:$0xff] }
  0xc0   : > { %2222 = vmatmul.mubr.bf16.gmra.mrb[72].mxu1 %v7686_v32  ;;  %2068 = vmatprep.mubr.bf16.mxu0 %v7785_v60  ;;  %v10214_v32 = vld [vmem:[#allocation4_spill] sm:$0xff] }
  0xc1   : > { %2229 = vmatprep.mubr.bf16.mxu1 %v7791_v1  ;;  %7082 = vmatpush3.bf16.msra.mxu0 %v7264_v27 }
  0xc2   : > { %7083 = vmatprep.subr.bf16.mxu0 %v7265_v38 }
  0xc5   : > { %7084 = vmatpush3.bf16.msra.mxu0 %v7265_v38 }
  0xc6   : > { %7085 = vmatprep.subr.bf16.mxu0 %v7266_v52 }
  0xc7   : > { %2069 = vmatmul.mubr.bf16.gmra.mrb[76].mxu0 %v7737_v16  ;;  %v10219_v16 = vld [vmem:[#allocation6_spill] sm:$0xff] }
  0xc8   : > { %2230 = vmatmul.mubr.bf16.gmra.mrb[76].mxu1 %v7741_v18  ;;  %2076 = vmatprep.mubr.bf16.mxu0 %v10214_v32  ;;  %v10220_v18 = vld [vmem:[#allocation10_spill] sm:$0xff] }
  0xc9   : > { %2237 = vmatprep.mubr.bf16.mxu1 %v10215_v46  ;;  %7086 = vmatpush3.bf16.msra.mxu0 %v7266_v52 }
  0xca   : > { %7087 = vmatprep.subr.bf16.mxu0 %v7267_v17 }
  0xcd   : > { %7088 = vmatpush3.bf16.msra.mxu0 %v7267_v17 }
  0xcf   : > { %2077 = vmatmul.mubr.bf16.gmra.mrb[80].mxu0 %v7791_v1  ;;  %v10224_v1 = vld [vmem:[#allocation14_spill] sm:$0xff] }
  0xd0   : > { %2238 = vmatmul.mubr.bf16.gmra.mrb[80].mxu1 %v10216_v53  ;;  %2084 = vmatprep.mubr.bf16.mxu0 %v10217_v29  ;;  %v867_v53 = vrot.slane %v865_v41, 4 }
  0xd1   : > { %2245 = vmatprep.mubr.bf16.mxu1 %v10218_v8 }
  0xd7   : > { %2085 = vmatmul.mubr.bf16.gmra.mrb[84].mxu0 %v10215_v46 }
  0xd8   : > { %2246 = vmatmul.mubr.bf16.gmra.mrb[84].mxu1 %v10219_v16  ;;  %2092 = vmatprep.mubr.bf16.mxu0 %v10220_v18 }
  0xd9   : > { %2253 = vmatprep.mubr.bf16.mxu1 %v10221_v63 }
  0xdf   : > { %2093 = vmatmul.mubr.bf16.gmra.mrb[88].mxu0 %v10218_v8  ;;  %v870_v8 = vrot.slane %v868_v3, 5 }
  0xe0   : > { %2254 = vmatmul.mubr.bf16.gmra.mrb[88].mxu1 %v10222_v49  ;;  %2100 = vmatprep.mubr.bf16.mxu0 %v10223_v48 }
  0xe1   : > { %2261 = vmatprep.mubr.bf16.mxu1 %v10224_v1 }
  0xe7   : > { %2101 = vmatmul.mubr.bf16.gmra.mrb[92].mxu0 %v10221_v63 }
  0xe8   : > { %2262 = vmatmul.mubr.bf16.gmra.mrb[92].mxu1 %v10225_v47  ;;  %2108 = vmatprep.mubr.bf16.mxu0 %v10226_v5  ;;  %v8340_v47 = vld [vmem:[%s7509_s12 + $0xd4] sm:$0x1] }
  0xe9   : > { %2269 = vmatprep.mubr.bf16.mxu1 %v10227_v9 }
  0xef   : > { %2109 = vmatmul.mubr.bf16.gmra.mrb[96].mxu0 %v10224_v1 }
  0xf0   : > { %2270 = vmatmul.mubr.bf16.gmra.mrb[96].mxu1 %v10228_v33  ;;  %2116 = vmatprep.mubr.bf16.mxu0 %v10229_v24 }
  0xf1   : > { %2277 = vmatprep.mubr.bf16.mxu1 %v10230_v14 }
  0xf7   : > { %2117 = vmatmul.mubr.bf16.gmra.mrb[100].mxu0 %v10227_v9 }
  0xf8   : > { %2278 = vmatmul.mubr.bf16.gmra.mrb[100].mxu1 %v8050_v37  ;;  %2124 = vmatprep.mubr.bf16.mxu0 %v8148_v21 }
  0xf9   : > { %2285 = vmatprep.mubr.bf16.mxu1 %v8152_v30 }
  0xff   : > { %2125 = vmatmul.mubr.bf16.gmra.mrb[104].mxu0 %v10230_v14  ;;  %v871_v14 = vor.u32 %v870_v8, %v867_v53 }
 0x100   : > { %2286 = vmatmul.mubr.bf16.gmra.mrb[104].mxu1 %v8083_v12  ;;  %2132 = vmatprep.mubr.bf16.mxu0 %v8175_v44  ;;  %v8325_v12 = vld [vmem:[%s7509_s12 + $0xd0] sm:$0xf]  ;;  %s10010_s12 = scalar_lea.vmem %s10137_s5, %s6096_s30 }
 0x101   : > { %2293 = vmatprep.mubr.bf16.mxu1 %v8177_v15  ;;  %v874_v20 = vshll.u32 %v8325_v12, 16  ;;  %v878_v43 = vshrl.u32 %v8325_v12, 16 }
 0x102   : > { %v6145_v42 = vpop.f32.mrb[0].mxu0 }
 0x103   : > { %v6257_v59 = vpop.f32.mrb[0].mxu1  ;;  %v6146_v6 = vpop.f32.mrb[1].mxu0  ;;  %v876_v16 = vrot.slane %v874_v20, 5  ;;  %v880_v63 = vrot.slane %v878_v43, 4 }
 0x104   : > { %v6258_v39 = vpop.f32.mrb[1].mxu1  ;;  %v6147_v50 = vadd.f32 %v6146_v6, %v6145_v42  ;;  %v6148_v11 = vpop.f32.mrb[2].mxu0 }
 0x105   : > { %v6259_v37 = vadd.f32 %v6258_v39, %v6257_v59  ;;  %v6260_v40 = vpop.f32.mrb[2].mxu1  ;;  %v6149_v34 = vpop.f32.mrb[3].mxu0  ;;  %v881_v42 = vor.u32 %v880_v63, %v876_v16  ;;  %v884_v59 = vshll.u32 %v8340_v47, 16 }
 0x106   : > { %v6261_v45 = vpop.f32.mrb[3].mxu1  ;;  %v6150_v62 = vadd.f32 %v6149_v34, %v6148_v11 }
 0x107   : > { %v6262_v4 = vadd.f32 %v6261_v45, %v6260_v40  ;;  %v8327_v31 = vadd.f32 %v6259_v37, %v6147_v50  ;;  %2133 = vmatmul.mubr.bf16.gmra.mrb[108].mxu0 %v8152_v30  ;;  %v886_v41 = vrot.slane %v884_v59, 5 }
 0x108   : > { %2294 = vmatmul.mubr.bf16.gmra.mrb[108].mxu1 %v8156_v10  ;;  %2140 = vmatprep.mubr.bf16.mxu0 %v8198_v28 }
 0x109   : > { %2301 = vmatprep.mubr.bf16.mxu1 %v8200_v25  ;;  %v8333_v0 = vadd.f32 %v6262_v4, %v6150_v62  ;;  %v872_v62 = vrot.slane %v871_v14, 4  ;;  %v882_v4 = vrot.slane %v881_v42, 4 }
 0x10a   : > { %v6151_v61 = vpop.f32.mrb[4].mxu0 }
 0x10b   : > { %v6263_v19 = vpop.f32.mrb[4].mxu1  ;;  %v6152_v30 = vpop.f32.mrb[5].mxu0 }
 0x10c   : > { %v6264_v54 = vpop.f32.mrb[5].mxu1  ;;  %v6153_v10 = vadd.f32 %v6152_v30, %v6151_v61  ;;  %v6154_v38 = vpop.f32.mrb[6].mxu0  ;;  %v887_v30 = vsel %vm7549_vm5, %v882_v4, %v886_v41  ;;  %v7270_v4 = vld [vmem:[%s10135_s3] sm:$0xff]  }
 0x10d   : > { %v6265_v27 = vadd.f32 %v6264_v54, %v6263_v19  ;;  %v6266_v52 = vpop.f32.mrb[6].mxu1  ;;  %v6155_v17 = vpop.f32.mrb[7].mxu0  ;;  %v877_v19 = vsel %vm7549_vm5, %v872_v62, %v876_v16  ;;  %v7269_v62 = vld [vmem:[%s10135_s3 + $0x40] sm:$0xff]  }
 0x10e   : > { %v6267_v46 = vpop.f32.mrb[7].mxu1  ;;  %v6156_v49 = vadd.f32 %v6155_v17, %v6154_v38  ;;  %6601 = vmatprep.subr.bf16.mxu1 %v7269_v62 }
 0x10f   : > { %v6268_v1 = vadd.f32 %v6267_v46, %v6266_v52  ;;  %v8342_v9 = vadd.f32 %v6265_v27, %v6153_v10  ;;  %2141 = vmatmul.mubr.bf16.gmra.mrb[112].mxu0 %v8177_v15  ;;  %v5840_v46 = vcombine.low %v877_v19, %v887_v30  ;;  %6602 = vmatpush3.bf16.msra.mxu1 %v7270_v4 }
 0x110   : > { %2302 = vmatmul.mubr.bf16.gmra.mrb[112].mxu1 %v8181_v36  ;;  %2148 = vmatprep.mubr.bf16.mxu0 %v8219_v58 }
 0x111   : > { %2309 = vmatprep.mubr.bf16.mxu1 %v8224_v51  ;;  %v8348_v33 = vadd.f32 %v6268_v1, %v6156_v49 }
 0x112   : > { %v6157_v6 = vpop.f32.mrb[8].mxu0 }
 0x113   : > { %v6269_v39 = vpop.f32.mrb[8].mxu1  ;;  %v6158_v50 = vpop.f32.mrb[9].mxu0 }
 0x114   : > { %v6270_v37 = vpop.f32.mrb[9].mxu1  ;;  %v6159_v11 = vadd.f32 %v6158_v50, %v6157_v6  ;;  %v6160_v34 = vpop.f32.mrb[10].mxu0 }
 0x115   : > { %v6271_v40 = vadd.f32 %v6270_v37, %v6269_v39  ;;  %v6272_v15 = vpop.f32.mrb[10].mxu1  ;;  %v6161_v45 = vpop.f32.mrb[11].mxu0  ;;  %v5839_v39 = vcombine.low %v8322_v23, %v8325_v12 }
 0x116   : > { %v6273_v36 = vpop.f32.mrb[11].mxu1  ;;  %v6162_v3 = vadd.f32 %v6161_v45, %v6160_v34 }
 0x117   : > { %v6274_v20 = vadd.f32 %v6273_v36, %v6272_v15  ;;  %v8351_v43 = vadd.f32 %v6271_v40, %v6159_v11  ;;  %2149 = vmatmul.mubr.bf16.gmra.mrb[116].mxu0 %v8200_v25 }
 0x118   : > { %2310 = vmatmul.mubr.bf16.gmra.mrb[116].mxu1 %v8204_v2  ;;  %2156 = vmatprep.mubr.bf16.mxu0 %v8243_v35 }
 0x119   : > { %2317 = vmatprep.mubr.bf16.mxu1 %v8232_v13  ;;  %v8357_v61 = vadd.f32 %v6274_v20, %v6162_v3 }
 0x11a   : > { %v6163_v54 = vpop.f32.mrb[12].mxu0 }
 0x11b   : > { %v6275_v10 = vpop.f32.mrb[12].mxu1  ;;  %v6164_v27 = vpop.f32.mrb[13].mxu0 }
 0x11c   : > { %v6276_v38 = vpop.f32.mrb[13].mxu1  ;;  %v6165_v52 = vadd.f32 %v6164_v27, %v6163_v54  ;;  %v6166_v17 = vpop.f32.mrb[14].mxu0 }
 0x11d   : > { %v6277_v25 = vadd.f32 %v6276_v38, %v6275_v10  ;;  %v6278_v2 = vpop.f32.mrb[14].mxu1  ;;  %v6167_v53 = vpop.f32.mrb[15].mxu0 }
 0x11e   : > { %v6279_v8 = vpop.f32.mrb[15].mxu1  ;;  %v6168_v63 = vadd.f32 %v6167_v53, %v6166_v17 }
 0x11f   : > { %v6280_v49 = vadd.f32 %v6279_v8, %v6278_v2  ;;  %v8363_v1 = vadd.f32 %v6277_v25, %v6165_v52  ;;  %2157 = vmatmul.mubr.bf16.gmra.mrb[120].mxu0 %v8224_v51 }
 0x120   : > { %2318 = vmatmul.mubr.bf16.gmra.mrb[120].mxu1 %v8222_v26  ;;  %2164 = vmatprep.mubr.bf16.mxu0 %v8249_v56 }
 0x121   : > { %2325 = vmatprep.mubr.bf16.mxu1 %v5840_v46  ;;  %v8368_v16 = vadd.f32 %v6280_v49, %v6168_v63 }
 0x122   : > { %v6169_v14 = vpop.f32.mrb[16].mxu0 }
 0x123   : > { %v6281_v42 = vpop.f32.mrb[16].mxu1  ;;  %v6170_v59 = vpop.f32.mrb[17].mxu0 }
 0x124   : > { %v6282_v6 = vpop.f32.mrb[17].mxu1  ;;  %v6171_v50 = vadd.f32 %v6170_v59, %v6169_v14  ;;  %v6172_v11 = vpop.f32.mrb[18].mxu0 }
 0x125   : > { %v6283_v37 = vadd.f32 %v6282_v6, %v6281_v42  ;;  %v6284_v40 = vpop.f32.mrb[18].mxu1  ;;  %v6173_v34 = vpop.f32.mrb[19].mxu0 }
 0x126   : > { %v6285_v51 = vpop.f32.mrb[19].mxu1  ;;  %v6174_v15 = vadd.f32 %v6173_v34, %v6172_v11  ;;  %v7272_v11 = vld [vmem:[%s10135_s3 + $0x8] sm:$0xff]  }
 0x127   : > { %v6286_v26 = vadd.f32 %v6285_v51, %v6284_v40  ;;  %v8372_v45 = vadd.f32 %v6283_v37, %v6171_v50  ;;  %2165 = vmatmul.mubr.bf16.gmra.mrb[124].mxu0 %v8232_v13 }
 0x128   : > { %2326 = vmatmul.mubr.bf16.gmra.mrb[124].mxu1 %v5839_v39  ;;  %7089 = vmatprep.mubr.bf16.mxu0 %v7671_v22 }
 0x129   : > { %v8376_v36 = vadd.f32 %v6286_v26, %v6174_v15 }
 0x12a   : > { %v6175_v41 = vpop.f32.mrb[20].mxu0 }
 0x12b   : > { %v6287_v3 = vpop.f32.mrb[20].mxu1  ;;  %v6176_v20 = vpop.f32.mrb[21].mxu0 }
 0x12c   : > { %v6288_v19 = vpop.f32.mrb[21].mxu1  ;;  %v6177_v13 = vadd.f32 %v6176_v20, %v6175_v41  ;;  %v6178_v54 = vpop.f32.mrb[22].mxu0 }
 0x12d   : > { %v6289_v30 = vadd.f32 %v6288_v19, %v6287_v3  ;;  %v6290_v22 = vpop.f32.mrb[22].mxu1  ;;  %v6179_v10 = vpop.f32.mrb[23].mxu0 }
 0x12e   : > { %v6291_v27 = vpop.f32.mrb[23].mxu1  ;;  %v6180_v38 = vadd.f32 %v6179_v10, %v6178_v54 }
 0x12f   : > { %v6292_v52 = vadd.f32 %v6291_v27, %v6290_v22  ;;  %v8384_v25 = vadd.f32 %v6289_v30, %v6177_v13  ;;  %7090 = vmatmul.mubr.bf16.vlgmr.msra.gmra.mrb[128].mxu0 %v7728_v7 }
 0x130   : > { %7093 = vmatprep.mubr.bf16.mxu0 %v7785_v60  ;;  %v7271_v60 = vld [vmem:[%s10135_s3 + $0x48] sm:$0xff]  }
 0x131   : > { %v8388_v17 = vadd.f32 %v6292_v52, %v6180_v38  ;;  %6603 = vmatprep.subr.bf16.mxu1 %v7271_v60 }
 0x132   : > { %v6181_v2 = vpop.f32.mrb[24].mxu0  ;;  %6604 = vmatpush3.bf16.msra.mxu1 %v7272_v11 }
 0x133   : > { %v6293_v46 = vpop.f32.mrb[24].mxu1  ;;  %v6182_v53 = vpop.f32.mrb[25].mxu0 }
 0x134   : > { %v6294_v8 = vpop.f32.mrb[25].mxu1  ;;  %v6183_v63 = vadd.f32 %v6182_v53, %v6181_v2  ;;  %v6184_v14 = vpop.f32.mrb[26].mxu0 }
 0x135   : > { %v6295_v49 = vadd.f32 %v6294_v8, %v6293_v46  ;;  %v6296_v42 = vpop.f32.mrb[26].mxu1  ;;  %v6185_v59 = vpop.f32.mrb[27].mxu0 }
 0x136   : > { %v6297_v6 = vpop.f32.mrb[27].mxu1  ;;  %v6186_v39 = vadd.f32 %v6185_v59, %v6184_v14  ;;  %v7274_v14 = vld [vmem:[%s10135_s3 + $0x10] sm:$0xff]  }
 0x137   : > { %v6298_v50 = vadd.f32 %v6297_v6, %v6296_v42  ;;  %v8390_v37 = vadd.f32 %v6295_v49, %v6183_v63  ;;  %7094 = vmatmul.mubr.bf16.gmra.mrb[132].mxu0 %v10214_v32 }
 0x138   : > { %7097 = vmatprep.mubr.bf16.mxu0 %v10217_v29 }
 0x139   : > { %v8394_v7 = vadd.f32 %v6298_v50, %v6186_v39 }
 0x13a   : > { %v6187_v40 = vpop.f32.mrb[28].mxu0 }
 0x13b   : > { %v6299_v34 = vpop.f32.mrb[28].mxu1  ;;  %v6188_v51 = vpop.f32.mrb[29].mxu0 }
 0x13c   : > { %v6300_v15 = vpop.f32.mrb[29].mxu1  ;;  %v6189_v26 = vadd.f32 %v6188_v51, %v6187_v40  ;;  %v6190_v62 = vpop.f32.mrb[30].mxu0 }
 0x13d   : > { %v6301_v32 = vadd.f32 %v6300_v15, %v6299_v34  ;;  %v6302_v29 = vpop.f32.mrb[30].mxu1  ;;  %v6191_v4 = vpop.f32.mrb[31].mxu0 }
 0x13e   : > { %v6303_v41 = vpop.f32.mrb[31].mxu1  ;;  %v6192_v3 = vadd.f32 %v6191_v4, %v6190_v62 }
 0x13f   : > { %v6304_v20 = vadd.f32 %v6303_v41, %v6302_v29  ;;  %v8402_v19 = vadd.f32 %v6301_v32, %v6189_v26  ;;  %7098 = vmatmul.mubr.bf16.gmra.mrb[136].mxu0 %v10220_v18 }
 0x140   : > { %7101 = vmatprep.mubr.bf16.mxu0 %v10223_v48  ;;  %v7273_v48 = vld [vmem:[%s10135_s3 + $0x50] sm:$0xff]  }
 0x141   : > { %v8406_v13 = vadd.f32 %v6304_v20, %v6192_v3  ;;  %6605 = vmatprep.subr.bf16.mxu1 %v7273_v48 }
 0x142   : > { %v6193_v30 = vpop.f32.mrb[32].mxu0  ;;  %6606 = vmatpush3.bf16.msra.mxu1 %v7274_v14 }
 0x143   : > { %v6305_v54 = vpop.f32.mrb[32].mxu1  ;;  %v6194_v22 = vpop.f32.mrb[33].mxu0 }
 0x144   : > { %v6306_v10 = vpop.f32.mrb[33].mxu1  ;;  %v6195_v27 = vadd.f32 %v6194_v22, %v6193_v30  ;;  %v6196_v52 = vpop.f32.mrb[34].mxu0 }
 0x145   : > { %v6307_v38 = vadd.f32 %v6306_v10, %v6305_v54  ;;  %v6308_v2 = vpop.f32.mrb[34].mxu1  ;;  %v6197_v46 = vpop.f32.mrb[35].mxu0 }
 0x146   : > { %v6309_v53 = vpop.f32.mrb[35].mxu1  ;;  %v6198_v63 = vadd.f32 %v6197_v46, %v6196_v52  ;;  %v7275_v52 = vld [vmem:[%s10135_s3 + $0x58] sm:$0xff]  }
 0x147   : > { %v8408_v8 = vadd.f32 %v6307_v38, %v6195_v27  ;;  %v6310_v49 = vadd.f32 %v6309_v53, %v6308_v2  ;;  %7102 = vmatmul.mubr.bf16.gmra.mrb[140].mxu0 %v10226_v5  ;;  %v7276_v2 = vld [vmem:[%s10135_s3 + $0x18] sm:$0xff]   ;;  %6607 = vmatprep.subr.bf16.mxu1 %v7275_v52 }
 0x148   : > { %7105 = vmatprep.mubr.bf16.mxu0 %v10229_v24  ;;  %6608 = vmatpush3.bf16.msra.mxu1 %v7276_v2 }
 0x149   : > { %v8411_v18 = vadd.f32 %v6310_v49, %v6198_v63 }
 0x14a   : > { %v6199_v42 = vpop.f32.mrb[36].mxu0 }
 0x14b   : > { %v6311_v59 = vpop.f32.mrb[36].mxu1  ;;  %v6200_v6 = vpop.f32.mrb[37].mxu0 }
 0x14c   : > { %v6312_v39 = vpop.f32.mrb[37].mxu1  ;;  %v6201_v50 = vadd.f32 %v6200_v6, %v6199_v42  ;;  %v6202_v60 = vpop.f32.mrb[38].mxu0 }
 0x14d   : > { %v6313_v5 = vadd.f32 %v6312_v39, %v6311_v59  ;;  %v6314_v11 = vpop.f32.mrb[38].mxu1  ;;  %v6203_v40 = vpop.f32.mrb[39].mxu0  ;;  %v896_v59 = vrot.slane %v8340_v47, 5 }
 0x14e   : > { %v6315_v24 = vpop.f32.mrb[39].mxu1  ;;  %v6204_v51 = vadd.f32 %v6203_v40, %v6202_v60 }
 0x14f   : > { %v8420_v34 = vadd.f32 %v6313_v5, %v6201_v50  ;;  %v6316_v15 = vadd.f32 %v6315_v24, %v6314_v11  ;;  %7106 = vmatmul.mubr.bf16.gmra.mrb[144].mxu0 %v8148_v21 }
 0x150   : > { %7109 = vmatprep.mubr.bf16.mxu0 %v8175_v44  ;;  %v893_v44 = vrot.slane %v8325_v12, 5 }
 0x151   : > { %v8423_v26 = vadd.f32 %v6316_v15, %v6204_v51 }
 0x152   : > { %v6205_v32 = vpop.f32.mrb[40].mxu0  ;;  %v895_v42 = vrot.slane %v893_v44, 4 }
 0x153   : > { %v6317_v62 = vpop.f32.mrb[40].mxu1  ;;  %v6206_v29 = vpop.f32.mrb[41].mxu0 }
 0x154   : > { %v6318_v4 = vpop.f32.mrb[41].mxu1  ;;  %v6207_v41 = vadd.f32 %v6206_v29, %v6205_v32  ;;  %v6208_v20 = vpop.f32.mrb[42].mxu0  ;;  %v897_v40 = vsel %vm7540_vm4, %v895_v42, %v896_v59 }
 0x155   : > { %v6319_v3 = vadd.f32 %v6318_v4, %v6317_v62  ;;  %v6320_v30 = vpop.f32.mrb[42].mxu1  ;;  %v6209_v54 = vpop.f32.mrb[43].mxu0 }
 0x156   : > { %v6321_v22 = vpop.f32.mrb[43].mxu1  ;;  %v6210_v27 = vadd.f32 %v6209_v54, %v6208_v20 }
 0x157   : > { %v8426_v10 = vadd.f32 %v6319_v3, %v6207_v41  ;;  %v6322_v38 = vadd.f32 %v6321_v22, %v6320_v30  ;;  %7110 = vmatmul.mubr.bf16.gmra.mrb[148].mxu0 %v8198_v28  ;;  %v5787_v28 = vrot.slane %v8322_v23, 9  ;;  %v7277_v22 = vld [vmem:[%s10135_s3 + $0x60] sm:$0xff]  }
 0x158   : > { %7113 = vmatprep.mubr.bf16.mxu0 %v8219_v58  ;;  %6609 = vmatprep.subr.bf16.mxu1 %v7277_v22 }
 0x159   : > { %v8429_v21 = vadd.f32 %v6322_v38, %v6210_v27  ;;  %v894_v23 = vsel %vm7540_vm4, %v5787_v28, %v893_v44  ;;  %v7278_v27 = vld [vmem:[%s10135_s3 + $0x20] sm:$0xff]  }
 0x15a   : > { %v6211_v46 = vpop.f32.mrb[44].mxu0  ;;  %v5841_v32 = vcombine.low %v894_v23, %v897_v40  ;;  %6610 = vmatpush3.bf16.msra.mxu1 %v7278_v27 }
 0x15b   : > { %v6323_v53 = vpop.f32.mrb[44].mxu1  ;;  %v6212_v63 = vpop.f32.mrb[45].mxu0 }
 0x15c   : > { %v6324_v49 = vpop.f32.mrb[45].mxu1  ;;  %v6213_v48 = vadd.f32 %v6212_v63, %v6211_v46  ;;  %v6214_v14 = vpop.f32.mrb[46].mxu0 }
 0x15d   : > { %v6325_v58 = vadd.f32 %v6324_v49, %v6323_v53  ;;  %v6326_v12 = vpop.f32.mrb[46].mxu1  ;;  %v6215_v6 = vpop.f32.mrb[47].mxu0 }
 0x15e   : > { %v6327_v39 = vpop.f32.mrb[47].mxu1  ;;  %v6216_v5 = vadd.f32 %v6215_v6, %v6214_v14 }
 0x15f   : > { %v8441_v50 = vadd.f32 %v6325_v58, %v6213_v48  ;;  %v6328_v60 = vadd.f32 %v6327_v39, %v6326_v12  ;;  %7114 = vmatmul.mubr.bf16.gmra.mrb[152].mxu0 %v8243_v35 }
 0x160   : > { %7117 = vmatprep.mubr.bf16.mxu0 %v8249_v56 }
 0x161   : > { %v8444_v11 = vadd.f32 %v6328_v60, %v6216_v5 }
 0x162   : > { %v6217_v24 = vpop.f32.mrb[48].mxu0 }
 0x163   : > { %v6329_v47 = vpop.f32.mrb[48].mxu1  ;;  %v6218_v51 = vpop.f32.mrb[49].mxu0 }
 0x164   : > { %v6330_v15 = vpop.f32.mrb[49].mxu1  ;;  %v6219_v62 = vadd.f32 %v6218_v51, %v6217_v24  ;;  %v6220_v4 = vpop.f32.mrb[50].mxu0 }
 0x165   : > { %v6331_v29 = vadd.f32 %v6330_v15, %v6329_v47  ;;  %v6332_v41 = vpop.f32.mrb[50].mxu1  ;;  %v6221_v35 = vpop.f32.mrb[51].mxu0 }
 0x166   : > { %v6333_v3 = vpop.f32.mrb[51].mxu1  ;;  %v6222_v56 = vadd.f32 %v6221_v35, %v6220_v4  ;;  %v7279_v4 = vld [vmem:[%s10135_s3 + $0x68] sm:$0xff]  }
 0x167   : > { %v8451_v20 = vadd.f32 %v6331_v29, %v6219_v62  ;;  %v6334_v30 = vadd.f32 %v6333_v3, %v6332_v41  ;;  %7118 = vmatmul.mubr.bf16.gmra.mrb[156].mxu0 %v5841_v32  ;;  %v7280_v41 = vld [vmem:[%s10135_s3 + $0x28] sm:$0xff]   ;;  %6611 = vmatprep.subr.bf16.mxu1 %v7279_v4 }
 0x168   : > { %6612 = vmatpush3.bf16.msra.mxu1 %v7280_v41  ;;  %v7286_v4 = vld [vmem:[%s10135_s3 + $0x88] sm:$0xff]  }
 0x169   : > { %v8453_v54 = vadd.f32 %v6334_v30, %v6222_v56 }
 0x16a   : > { %v6223_v38 = vpop.f32.mrb[52].mxu0 }
 0x16b   : > { %v6335_v44 = vpop.f32.mrb[52].mxu1  ;;  %v6224_v52 = vpop.f32.mrb[53].mxu0 }
 0x16c   : > { %v6336_v2 = vpop.f32.mrb[53].mxu1  ;;  %v6225_v46 = vadd.f32 %v6224_v52, %v6223_v38  ;;  %v6226_v63 = vpop.f32.mrb[54].mxu0 }
 0x16d   : > { %v6337_v53 = vadd.f32 %v6336_v2, %v6335_v44  ;;  %v6338_v49 = vpop.f32.mrb[54].mxu1  ;;  %v6227_v28 = vpop.f32.mrb[55].mxu0 }
 0x16e   : > { %v6339_v48 = vpop.f32.mrb[55].mxu1  ;;  %v6228_v14 = vadd.f32 %v6227_v28, %v6226_v63 }
 0x16f   : > { %v8461_v58 = vadd.f32 %v6337_v53, %v6225_v46  ;;  %v6340_v12 = vadd.f32 %v6339_v48, %v6338_v49 }
 0x171   : > { %v8463_v42 = vadd.f32 %v6340_v12, %v6228_v14  ;;  %v7281_v14 = vld [vmem:[%s10135_s3 + $0xc0] sm:$0xff]  }
 0x172   : > { %v6229_v59 = vpop.f32.mrb[56].mxu0  ;;  %6713 = vmatprep.subr.bf16.mxu0 %v7281_v14 }
 0x173   : > { %v6341_v6 = vpop.f32.mrb[56].mxu1  ;;  %v6230_v39 = vpop.f32.mrb[57].mxu0 }
 0x174   : > { %v6342_v5 = vpop.f32.mrb[57].mxu1  ;;  %v6231_v60 = vadd.f32 %v6230_v39, %v6229_v59  ;;  %v6232_v40 = vpop.f32.mrb[58].mxu0 }
 0x175   : > { %v6343_v23 = vadd.f32 %v6342_v5, %v6341_v6  ;;  %v6344_v24 = vpop.f32.mrb[58].mxu1  ;;  %v6233_v47 = vpop.f32.mrb[59].mxu0  ;;  %v7283_v6 = vld [vmem:[%s10135_s3 + $0x80] sm:$0xff]  }
 0x176   : > { %v6345_v51 = vpop.f32.mrb[59].mxu1  ;;  %v6234_v32 = vadd.f32 %v6233_v47, %v6232_v40  ;;  %6714 = vmatpush3.bf16.msra.mxu0 %v7283_v6 }
 0x177   : > { %v8465_v15 = vadd.f32 %v6343_v23, %v6231_v60  ;;  %v6346_v62 = vadd.f32 %v6345_v51, %v6344_v24 }
 0x179   : > { %v8467_v29 = vadd.f32 %v6346_v62, %v6234_v32  ;;  %v7285_v62 = vld [vmem:[%s10135_s3 + $0xc8] sm:$0xff]  }
 0x17a   : > { %v6235_v35 = vpop.f32.mrb[60].mxu0  ;;  %6715 = vmatprep.subr.bf16.mxu0 %v7285_v62 }
 0x17b   : > { %v6347_v3 = vpop.f32.mrb[60].mxu1  ;;  %v6236_v56 = vpop.f32.mrb[61].mxu0  ;;  %6716 = vmatpush3.bf16.msra.mxu0 %v7286_v4 }
 0x17c   : > { %v6348_v30 = vpop.f32.mrb[61].mxu1  ;;  %v6237_v22 = vadd.f32 %v6236_v56, %v6235_v35  ;;  %v6238_v38 = vpop.f32.mrb[62].mxu0 }
 0x17d   : > { %v6349_v27 = vadd.f32 %v6348_v30, %v6347_v3  ;;  %v6350_v44 = vpop.f32.mrb[62].mxu1  ;;  %v6239_v52 = vpop.f32.mrb[63].mxu0 }
 0x17e   : > { %v6351_v2 = vpop.f32.mrb[63].mxu1  ;;  %v6240_v53 = vadd.f32 %v6239_v52, %v6238_v38  ;;  %v2647_v38 = vld [vmem:[#allocation2 + $0x18] sm:$0x1] }
 0x17f   : > { %v8475_v46 = vadd.f32 %v6349_v27, %v6237_v22  ;;  %v6352_v63 = vadd.f32 %v6351_v2, %v6350_v44 }
 0x181   : > { %v8477_v49 = vadd.f32 %v6352_v63, %v6240_v53  ;;  %v2648_v53 = vsel %vm8498_vm8, 0, %v2647_v38 }
 0x182   : > { %v6369_v28 = vpop.f32.mrb[64].mxu0  ;;  %2649 = vst [vmem:[#allocation2 + $0x18] sm:$0x1] %v2648_v53 }
 0x183   : > { %v6481_v48 = vpop.f32.mrb[64].mxu1  ;;  %v6370_v12 = vpop.f32.mrb[65].mxu0 }
 0x184   : > { %v6482_v59 = vpop.f32.mrb[65].mxu1  ;;  %v6371_v39 = vadd.f32 %v6370_v12, %v6369_v28  ;;  %v6372_v5 = vpop.f32.mrb[66].mxu0  ;;  %v2644_v28 = vld [vmem:[#allocation2 + $0xc] sm:$0x1] }
 0x185   : > { %v6483_v60 = vadd.f32 %v6482_v59, %v6481_v48  ;;  %v6484_v23 = vpop.f32.mrb[66].mxu1  ;;  %v6373_v40 = vpop.f32.mrb[67].mxu0  ;;  %v2645_v12 = vsel %vm8498_vm8, 0, %v2644_v28  ;;  %v2697_v59 = vld [vmem:[#allocation2 + $0x20] sm:$0x1] }
 0x186   : > { %v6485_v24 = vpop.f32.mrb[67].mxu1  ;;  %v2047_v47 = vadd.f32 %v6371_v39, %v8327_v31  ;;  %v6374_v51 = vadd.f32 %v6373_v40, %v6372_v5  ;;  %2646 = vst [vmem:[#allocation2 + $0xc] sm:$0x1] %v2645_v12  ;;  %v2650_v28 = vld [vmem:[#allocation2 + $0x24] sm:$0x1] }
 0x187   : > { %v6486_v32 = vadd.f32 %v6485_v24, %v6484_v23  ;;  %v2694_v23 = vld [vmem:[#allocation2 + $0x14] sm:$0x1] }
 0x188   : > { %v2050_v41 = vadd.f32 %v6374_v51, %v8333_v0  ;;  %v8493_v35 = vadd.f32 %v6483_v60, %v2047_v47  ;;  %v2698_v60 = vsel %vm8505_vm10, 0, %v2697_v59  ;;  %v2695_v40 = vsel %vm8505_vm10, 0, %v2694_v23  ;;  %v7282_v59 = vld [vmem:[%s10135_s3 + $0x70] sm:$0xff]  }
 0x189   : > { %2699 = vst [vmem:[#allocation2 + $0x20] sm:$0x1] %v2698_v60  ;;  %2696 = vst [vmem:[#allocation2 + $0x14] sm:$0x1] %v2695_v40  ;;  %6613 = vmatprep.subr.bf16.mxu1 %v7282_v59 }
 0x18a   : > { %v6375_v3 = vpop.f32.mrb[68].mxu0  ;;  %v8495_v31 = vadd.f32 %v6486_v32, %v2050_v41  ;;  %v2653_v41 = vld [vmem:[#allocation2 + $0x30] sm:$0x1] }
 0x18b   : > { %v6487_v56 = vpop.f32.mrb[68].mxu1  ;;  %v6376_v30 = vpop.f32.mrb[69].mxu0  ;;  %v2654_v38 = vsel %vm8498_vm8, 0, %v2653_v41  ;;  %v7291_v41 = vld [vmem:[%s10135_s3 + $0xe0] sm:$0xff]  }
 0x18c   : > { %v6488_v22 = vpop.f32.mrb[69].mxu1  ;;  %v6377_v0 = vadd.f32 %v6376_v30, %v6375_v3  ;;  %v6378_v44 = vpop.f32.mrb[70].mxu0  ;;  %2655 = vst [vmem:[#allocation2 + $0x30] sm:$0x1] %v2654_v38 }
 0x18d   : > { %v6489_v52 = vadd.f32 %v6488_v22, %v6487_v56  ;;  %v6490_v2 = vpop.f32.mrb[70].mxu1  ;;  %v6379_v48 = vpop.f32.mrb[71].mxu0 }
 0x18e   : > { %v6491_v14 = vpop.f32.mrb[71].mxu1  ;;  %v2055_v6 = vadd.f32 %v6377_v0, %v8342_v9  ;;  %v6380_v39 = vadd.f32 %v6379_v48, %v6378_v44  ;;  %v2651_v48 = vsel %vm8498_vm8, 0, %v2650_v28  ;;  %v7295_v28 = vld [vmem:[%s10135_s3 + $0xe8] sm:$0xff]  }
 0x18f   : > { %v6492_v5 = vadd.f32 %v6491_v14, %v6490_v2  ;;  %v7288_v14 = vld [vmem:[%s10135_s3 + $0x90] sm:$0xff]   ;;  %2652 = vst [vmem:[#allocation2 + $0x24] sm:$0x1] %v2651_v48  ;;  %v7370_v48 = vmov 0  }
 0x190   : > { %v2058_v24 = vadd.f32 %v6380_v39, %v8348_v33  ;;  %v8517_v47 = vadd.f32 %v6489_v52, %v2055_v6  ;;  %v7287_v33 = vld [vmem:[%s10135_s3 + $0xd0] sm:$0xff]   ;;  %2633 = vst [vmem:[#allocation2] sm:$0xf] %v7370_v48  ;;  %2634 = vst [vmem:[#allocation2 + $0x4] sm:$0xf] %v7370_v48 }
 0x191   : > { %6717 = vmatprep.subr.bf16.mxu0 %v7287_v33  ;;  %v7284_v39 = vld [vmem:[%s10135_s3 + $0x30] sm:$0xff]   ;;  %2635 = vst [vmem:[#allocation2 + $0x8] sm:$0x1] %v7370_v48  ;;  %2637 = vst [vmem:[#allocation2 + $0xcc] sm:$0xf] %v7370_v48 }
 0x192   : > { %v6381_v51 = vpop.f32.mrb[72].mxu0  ;;  %v8519_v62 = vadd.f32 %v6492_v5, %v2058_v24  ;;  %6718 = vmatpush3.bf16.msra.mxu0 %v7288_v14  ;;  %6614 = vmatpush3.bf16.msra.mxu1 %v7284_v39  ;;  %2638 = vst [vmem:[#allocation2 + $0xd0] sm:$0xf] %v7370_v48  ;;  %2639 = vst [vmem:[#allocation2 + $0xd4] sm:$0x1] %v7370_v48 }
 0x193   : > { %v6493_v32 = vpop.f32.mrb[72].mxu1  ;;  %v6382_v9 = vpop.f32.mrb[73].mxu0 }
 0x194   : > { %v6494_v4 = vpop.f32.mrb[73].mxu1  ;;  %v6383_v3 = vadd.f32 %v6382_v9, %v6381_v51  ;;  %v6384_v56 = vpop.f32.mrb[74].mxu0 }
 0x195   : > { %v6495_v30 = vadd.f32 %v6494_v4, %v6493_v32  ;;  %v6496_v22 = vpop.f32.mrb[74].mxu1  ;;  %v6385_v0 = vpop.f32.mrb[75].mxu0 }
 0x196   : > { %v6497_v44 = vpop.f32.mrb[75].mxu1  ;;  %v2063_v52 = vadd.f32 %v6383_v3, %v8351_v43  ;;  %v6386_v2 = vadd.f32 %v6385_v0, %v6384_v56  ;;  %v7289_v43 = vld [vmem:[%s10135_s3 + $0xd8] sm:$0xff]  }
 0x197   : > { %v6498_v53 = vadd.f32 %v6497_v44, %v6496_v22  ;;  %6719 = vmatprep.subr.bf16.mxu0 %v7289_v43  ;;  %v2703_v0 = vld [vmem:[#allocation2 + $0x38] sm:$0x1] }
 0x198   : > { %v2066_v12 = vadd.f32 %v6386_v2, %v8357_v61  ;;  %v8536_v6 = vadd.f32 %v6495_v30, %v2063_v52  ;;  %v7290_v61 = vld [vmem:[%s10135_s3 + $0x98] sm:$0xff]   ;;  %v7293_v30 = vld [vmem:[%s10135_s3 + $0xa0] sm:$0xff]   ;;  %v2704_v2 = vsel %vm8505_vm10, 0, %v2703_v0 }
 0x199   : > { %6720 = vmatpush3.bf16.msra.mxu0 %v7290_v61  ;;  %2705 = vst [vmem:[#allocation2 + $0x38] sm:$0x1] %v2704_v2 }
 0x19a   : > { %v6387_v5 = vpop.f32.mrb[76].mxu0  ;;  %v8547_v23 = vadd.f32 %v6498_v53, %v2066_v12  ;;  %6721 = vmatprep.subr.bf16.mxu0 %v7291_v41  ;;  %v2700_v53 = vld [vmem:[#allocation2 + $0x2c] sm:$0x1] }
 0x19b   : > { %v6499_v60 = vpop.f32.mrb[76].mxu1  ;;  %v6388_v40 = vpop.f32.mrb[77].mxu0 }
 0x19c   : > { %v6500_v24 = vpop.f32.mrb[77].mxu1  ;;  %v6389_v51 = vadd.f32 %v6388_v40, %v6387_v5  ;;  %v6390_v32 = vpop.f32.mrb[78].mxu0 }
 0x19d   : > { %v6501_v9 = vadd.f32 %v6500_v24, %v6499_v60  ;;  %v6502_v4 = vpop.f32.mrb[78].mxu1  ;;  %v6391_v3 = vpop.f32.mrb[79].mxu0  ;;  %6722 = vmatpush3.bf16.msra.mxu0 %v7293_v30  ;;  %v7292_v30 = vld [vmem:[%s10135_s3 + $0x78] sm:$0xff]  }
 0x19e   : > { %v6503_v56 = vpop.f32.mrb[79].mxu1  ;;  %v2071_v22 = vadd.f32 %v6389_v51, %v8363_v1  ;;  %v6392_v38 = vadd.f32 %v6391_v3, %v6390_v32  ;;  %v2701_v1 = vsel %vm8505_vm10, 0, %v2700_v53  ;;  %6723 = vmatprep.subr.bf16.mxu0 %v7295_v28  ;;  %v2659_v32 = vld [vmem:[#allocation2 + $0x48] sm:$0x1]  ;;  %v2706_v53 = vld [vmem:[#allocation2 + $0x44] sm:$0x1]  ;;  %6615 = vmatprep.subr.bf16.mxu1 %v7292_v30 }
 0x19f   : > { %v6504_v33 = vadd.f32 %v6503_v56, %v6502_v4  ;;  %2702 = vst [vmem:[#allocation2 + $0x2c] sm:$0x1] %v2701_v1  ;;  %v2660_v3 = vsel %vm8498_vm8, 0, %v2659_v32  ;;  %v2656_v56 = vld [vmem:[#allocation2 + $0x3c] sm:$0x1]  ;;  %v2707_v48 = vsel %vm8505_vm10, 0, %v2706_v53 }
 0x1a0   : > { %v2074_v44 = vadd.f32 %v6392_v38, %v8368_v16  ;;  %v8557_v52 = vadd.f32 %v6501_v9, %v2071_v22  ;;  %v7296_v16 = vld [vmem:[%s10135_s3 + $0xa8] sm:$0xff]   ;;  %2661 = vst [vmem:[#allocation2 + $0x48] sm:$0x1] %v2660_v3  ;;  %v2657_v22 = vsel %vm8498_vm8, 0, %v2656_v56  ;;  %v2709_v38 = vld [vmem:[#allocation2 + $0x50] sm:$0x1] }
 0x1a1   : > { %6724 = vmatpush3.bf16.msra.mxu0 %v7296_v16  ;;  %2658 = vst [vmem:[#allocation2 + $0x3c] sm:$0x1] %v2657_v22  ;;  %v2710_v2 = vsel %vm8505_vm10, 0, %v2709_v38  ;;  %v8592_v1 = vld [vmem:[#allocation2 + $0x4] sm:$0xf]  ;;  %v7298_v38 = vld [vmem:[%s10135_s3 + $0xb0] sm:$0xff]  }
 0x1a2   : > { %v6393_v14 = vpop.f32.mrb[80].mxu0  ;;  %v8569_v59 = vadd.f32 %v6504_v33, %v2074_v44  ;;  %v7294_v33 = vld [vmem:[%s10135_s3 + $0x38] sm:$0xff]   ;;  %2711 = vst [vmem:[#allocation2 + $0x50] sm:$0x1] %v2710_v2  ;;  %2708 = vst [vmem:[#allocation2 + $0x44] sm:$0x1] %v2707_v48 }
 0x1a3   : > { %v6505_v12 = vpop.f32.mrb[80].mxu1  ;;  %v6394_v43 = vpop.f32.mrb[81].mxu0  ;;  %6616 = vmatpush3.bf16.msra.mxu1 %v7294_v33  ;;  %v2665_v48 = vld [vmem:[#allocation2 + $0x60] sm:$0x1] }
 0x1a4   : > { %v6506_v39 = vpop.f32.mrb[81].mxu1  ;;  %v6395_v61 = vadd.f32 %v6394_v43, %v6393_v14  ;;  %v6396_v5 = vpop.f32.mrb[82].mxu0 }
 0x1a5   : > { %v6507_v60 = vadd.f32 %v6506_v39, %v6505_v12  ;;  %v6508_v40 = vpop.f32.mrb[82].mxu1  ;;  %v6397_v24 = vpop.f32.mrb[83].mxu0  ;;  %v3338_v39 = vshll.u32 %v8592_v1, 16 }
 0x1a6   : > { %v6509_v51 = vpop.f32.mrb[83].mxu1  ;;  %v2079_v9 = vadd.f32 %v6395_v61, %v8372_v45  ;;  %v6398_v4 = vadd.f32 %v6397_v24, %v6396_v5  ;;  %v8582_v45 = vld [vmem:[#allocation2] sm:$0xf]  ;;  %v3342_v61 = vshrl.u32 %v8592_v1, 16 }
 0x1a7   : > { %v6510_v41 = vadd.f32 %v6509_v51, %v6508_v40  ;;  %v3329_v28 = vshrl.u32 %v8582_v45, 16  ;;  %v3332_v16 = vshll.u32 %v8582_v45, 16  ;;  %v8599_v40 = vld [vmem:[#allocation2 + $0x8] sm:$0x1]  ;;  %v3340_v3 = vrot.slane %v3338_v39, 5 }
 0x1a8   : > { %v2082_v0 = vadd.f32 %v6398_v4, %v8376_v36  ;;  %v8585_v44 = vadd.f32 %v6507_v60, %v2079_v9  ;;  %v3344_v56 = vrot.slane %v3342_v61, 4 }
 0x1a9   : > { %v3331_v43 = vrot.slane %v3329_v28, 4  ;;  %v3334_v24 = vrot.slane %v3332_v16, 5 }
 0x1aa   : > { %v6399_v36 = vpop.f32.mrb[84].mxu0  ;;  %v8595_v12 = vadd.f32 %v6510_v41, %v2082_v0  ;;  %v7297_v41 = vld [vmem:[%s10135_s3 + $0xf0] sm:$0xff]   ;;  %v3348_v0 = vshll.u32 %v8599_v40, 16  ;;  %v3345_v16 = vor.u32 %v3344_v56, %v3340_v3 }
 0x1ab   : > { %v6511_v14 = vpop.f32.mrb[84].mxu1  ;;  %v6400_v5 = vpop.f32.mrb[85].mxu0  ;;  %v3335_v33 = vor.u32 %v3334_v24, %v3331_v43  ;;  %6725 = vmatprep.subr.bf16.mxu0 %v7297_v41  ;;  %v7300_v24 = vld [vmem:[%s10135_s3 + $0xb8] sm:$0xff]  }
 0x1ac   : > { %v6512_v60 = vpop.f32.mrb[85].mxu1  ;;  %v6401_v51 = vadd.f32 %v6400_v5, %v6399_v36  ;;  %v6402_v32 = vpop.f32.mrb[86].mxu0  ;;  %v2666_v36 = vsel %vm8498_vm8, 0, %v2665_v48  ;;  %6726 = vmatpush3.bf16.msra.mxu0 %v7298_v38 }
 0x1ad   : > { %v6513_v9 = vadd.f32 %v6512_v60, %v6511_v14  ;;  %v6514_v4 = vpop.f32.mrb[86].mxu1  ;;  %v6403_v30 = vpop.f32.mrb[87].mxu0  ;;  %v2662_v14 = vld [vmem:[#allocation2 + $0x54] sm:$0x1]  ;;  %v3336_v39 = vrot.slane %v3335_v33, 4  ;;  %v3346_v60 = vrot.slane %v3345_v16, 4 }
 0x1ae   : > { %v6515_v22 = vpop.f32.mrb[87].mxu1  ;;  %v2087_v2 = vadd.f32 %v6401_v51, %v8384_v25  ;;  %v6404_v53 = vadd.f32 %v6403_v30, %v6402_v32  ;;  %2667 = vst [vmem:[#allocation2 + $0x60] sm:$0x1] %v2666_v36  ;;  %v2663_v43 = vsel %vm8498_vm8, 0, %v2662_v14  ;;  %v7299_v25 = vld [vmem:[%s10135_s3 + $0xf8] sm:$0xff]   ;;  %v3762_v16 = vrot.slane %v8592_v1, 5 }
 0x1af   : > { %v6516_v28 = vadd.f32 %v6515_v22, %v6514_v4  ;;  %2664 = vst [vmem:[#allocation2 + $0x54] sm:$0x1] %v2663_v43  ;;  %v3341_v51 = vsel %vm7549_vm5, %v3336_v39, %v3340_v3  ;;  %6727 = vmatprep.subr.bf16.mxu0 %v7299_v25  ;;  %v5966_v22 = vcombine.low %v8582_v45, %v8592_v1  ;;  %v5948_v43 = vrot.slane %v8582_v45, 9 }
 0x1b0   : > { %v2090_v61 = vadd.f32 %v6404_v53, %v8388_v17  ;;  %v8612_v5 = vadd.f32 %v6513_v9, %v2087_v2  ;;  %v3350_v17 = vrot.slane %v3348_v0, 5  ;;  %6728 = vmatpush3.bf16.msra.mxu0 %v7300_v24  ;;  %v3764_v25 = vrot.slane %v3762_v16, 4 }
 0x1b1   : > { %v8643_v1 = vsel %vm7540_vm4, %v5948_v43, %v3762_v16 }
 0x1b2   : > { %v6405_v32 = vpop.f32.mrb[88].mxu0  ;;  %v8624_v4 = vadd.f32 %v6516_v28, %v2090_v61  ;;  %v3351_v30 = vsel %vm7549_vm5, %v3346_v60, %v3350_v17  ;;  %v3765_v28 = vrot.slane %v8599_v40, 5  ;;  %v2715_v61 = vld [vmem:[#allocation2 + $0x68] sm:$0x1]  ;;  %v2712_v40 = vld [vmem:[#allocation2 + $0x5c] sm:$0x1] }
 0x1b3   : > { %v6517_v9 = vpop.f32.mrb[88].mxu1  ;;  %v6406_v41 = vpop.f32.mrb[89].mxu0  ;;  %v5982_v3 = vcombine.low %v3341_v51, %v3351_v30  ;;  %v2716_v51 = vsel %vm8505_vm10, 0, %v2715_v61 }
 0x1b4   : > { %v6518_v56 = vpop.f32.mrb[89].mxu1  ;;  %v6407_v38 = vadd.f32 %v6406_v41, %v6405_v32  ;;  %v6408_v33 = vpop.f32.mrb[90].mxu0  ;;  %2717 = vst [vmem:[#allocation2 + $0x68] sm:$0x1] %v2716_v51  ;;  %v8647_v45 = vsel %vm7540_vm4, %v3764_v25, %v3765_v28 }
 0x1b5   : > { %v6519_v2 = vadd.f32 %v6518_v56, %v6517_v9  ;;  %v6520_v53 = vpop.f32.mrb[90].mxu1  ;;  %v6409_v0 = vpop.f32.mrb[91].mxu0  ;;  %4764 = vmatprep.mubr.bf16.mxu1 %v5982_v3  ;;  %v2671_v3 = vld [vmem:[#allocation2 + $0x78] sm:$0x1] }
 0x1b6   : > { %v6521_v48 = vpop.f32.mrb[91].mxu1  ;;  %v2095_v36 = vadd.f32 %v6407_v38, %v8390_v37  ;;  %v6410_v14 = vadd.f32 %v6409_v0, %v6408_v33  ;;  %4765 = vmatmul.mubr.bf16.vlgmr.msra.gmra.mrb[128].mxu1 %v5966_v22  ;;  %v2713_v37 = vsel %vm8505_vm10, 0, %v2712_v40  ;;  %v2672_v16 = vsel %vm8498_vm8, 0, %v2671_v3 }
 0x1b7   : > { %v6522_v39 = vadd.f32 %v6521_v48, %v6520_v53  ;;  %2714 = vst [vmem:[#allocation2 + $0x5c] sm:$0x1] %v2713_v37  ;;  %2673 = vst [vmem:[#allocation2 + $0x78] sm:$0x1] %v2672_v16 }
 0x1b8   : > { %v2098_v60 = vadd.f32 %v6410_v14, %v8394_v7  ;;  %v8635_v24 = vadd.f32 %v6519_v2, %v2095_v36  ;;  %v2668_v36 = vld [vmem:[#allocation2 + $0x6c] sm:$0x1] }
 0x1b9   : > { %v2669_v14 = vsel %vm8498_vm8, 0, %v2668_v36 }
 0x1ba   : > { %v6411_v17 = vpop.f32.mrb[92].mxu0  ;;  %v8649_v32 = vadd.f32 %v6522_v39, %v2098_v60  ;;  %2670 = vst [vmem:[#allocation2 + $0x6c] sm:$0x1] %v2669_v14 }
 0x1bb   : > { %v6523_v7 = vpop.f32.mrb[92].mxu1  ;;  %v6412_v41 = vpop.f32.mrb[93].mxu0 }
 0x1bc   : > { %v6524_v56 = vpop.f32.mrb[93].mxu1  ;;  %v6413_v30 = vadd.f32 %v6412_v41, %v6411_v17  ;;  %v6414_v22 = vpop.f32.mrb[94].mxu0 }
 0x1bd   : > { %v6525_v38 = vadd.f32 %v6524_v56, %v6523_v7  ;;  %v6526_v33 = vpop.f32.mrb[94].mxu1  ;;  %v6415_v2 = vpop.f32.mrb[95].mxu0 }
 0x1be   : > { %v6527_v53 = vpop.f32.mrb[95].mxu1  ;;  %v2103_v0 = vadd.f32 %v6413_v30, %v8402_v19  ;;  %v6416_v48 = vadd.f32 %v6415_v2, %v6414_v22  ;;  %v2721_v30 = vld [vmem:[#allocation2 + $0x80] sm:$0x1]  ;;  %v2718_v2 = vld [vmem:[#allocation2 + $0x74] sm:$0x1] }
 0x1bf   : > { %v6528_v28 = vadd.f32 %v6527_v53, %v6526_v33  ;;  %v2719_v53 = vsel %vm8505_vm10, 0, %v2718_v2  ;;  %v2727_v2 = vld [vmem:[#allocation2 + $0x98] sm:$0x1] }
 0x1c0   : > { %v2106_v39 = vadd.f32 %v6416_v48, %v8406_v13  ;;  %v8659_v61 = vadd.f32 %v6525_v38, %v2103_v0  ;;  %v2722_v38 = vsel %vm8505_vm10, 0, %v2721_v30  ;;  %2720 = vst [vmem:[#allocation2 + $0x74] sm:$0x1] %v2719_v53  ;;  %v2677_v30 = vld [vmem:[#allocation2 + $0x90] sm:$0x1] }
 0x1c1   : > { %2723 = vst [vmem:[#allocation2 + $0x80] sm:$0x1] %v2722_v38 }
 0x1c2   : > { %v6417_v43 = vpop.f32.mrb[96].mxu0  ;;  %v8661_v60 = vadd.f32 %v6528_v28, %v2106_v39 }
 0x1c3   : > { %v6529_v25 = vpop.f32.mrb[96].mxu1  ;;  %v6418_v19 = vpop.f32.mrb[97].mxu0 }
 0x1c4   : > { %v6530_v51 = vpop.f32.mrb[97].mxu1  ;;  %v6419_v40 = vadd.f32 %v6418_v19, %v6417_v43  ;;  %v6420_v37 = vpop.f32.mrb[98].mxu0 }
 0x1c5   : > { %v6531_v17 = vadd.f32 %v6530_v51, %v6529_v25  ;;  %v6532_v7 = vpop.f32.mrb[98].mxu1  ;;  %v6421_v41 = vpop.f32.mrb[99].mxu0 }
 0x1c6   : > { %v6533_v56 = vpop.f32.mrb[99].mxu1  ;;  %v2111_v22 = vadd.f32 %v6419_v40, %v8408_v8  ;;  %v6422_v33 = vadd.f32 %v6421_v41, %v6420_v37  ;;  %v7304_v41 = vld [vmem:[%s10135_s3 + $0x140] sm:$0xff]  }
 0x1c7   : > { %v6534_v13 = vadd.f32 %v6533_v56, %v6532_v7  ;;  %v7305_v56 = vld [vmem:[%s10135_s3 + $0x100] sm:$0xff]   ;;  %6825 = vmatprep.subr.bf16.mxu1 %v7304_v41 }
 0x1c8   : > { %v2114_v3 = vadd.f32 %v6422_v33, %v8411_v18  ;;  %v8669_v0 = vadd.f32 %v6531_v17, %v2111_v22  ;;  %v2678_v22 = vsel %vm8498_vm8, 0, %v2677_v30  ;;  %v2674_v33 = vld [vmem:[#allocation2 + $0x84] sm:$0x1]  ;;  %6826 = vmatpush3.bf16.msra.mxu1 %v7305_v56 }
 0x1c9   : > { %2679 = vst [vmem:[#allocation2 + $0x90] sm:$0x1] %v2678_v22 }
 0x1ca   : > { %v6423_v48 = vpop.f32.mrb[100].mxu0  ;;  %v8671_v16 = vadd.f32 %v6534_v13, %v2114_v3 }
 0x1cb   : > { %v6535_v28 = vpop.f32.mrb[100].mxu1  ;;  %v6424_v8 = vpop.f32.mrb[101].mxu0 }
 0x1cc   : > { %v6536_v36 = vpop.f32.mrb[101].mxu1  ;;  %v6425_v14 = vadd.f32 %v6424_v8, %v6423_v48  ;;  %v6426_v39 = vpop.f32.mrb[102].mxu0  ;;  %v2728_v48 = vsel %vm8505_vm10, 0, %v2727_v2 }
 0x1cd   : > { %v6537_v43 = vadd.f32 %v6536_v36, %v6535_v28  ;;  %v6538_v25 = vpop.f32.mrb[102].mxu1  ;;  %v6427_v19 = vpop.f32.mrb[103].mxu0  ;;  %2729 = vst [vmem:[#allocation2 + $0x98] sm:$0x1] %v2728_v48 }
 0x1ce   : > { %v6539_v51 = vpop.f32.mrb[103].mxu1  ;;  %v2119_v40 = vadd.f32 %v6425_v14, %v8420_v34  ;;  %v6428_v37 = vadd.f32 %v6427_v19, %v6426_v39 }
 0x1cf   : > { %v6540_v7 = vadd.f32 %v6539_v51, %v6538_v25 }
 0x1d0   : > { %v2122_v18 = vadd.f32 %v6428_v37, %v8423_v26  ;;  %v8675_v17 = vadd.f32 %v6537_v43, %v2119_v40  ;;  %v2675_v26 = vsel %vm8498_vm8, 0, %v2674_v33 }
 0x1d1   : > { %2676 = vst [vmem:[#allocation2 + $0x84] sm:$0x1] %v2675_v26  ;;  %v2724_v26 = vld [vmem:[#allocation2 + $0x8c] sm:$0x1] }
 0x1d2   : > { %v6429_v34 = vpop.f32.mrb[104].mxu0  ;;  %v8685_v38 = vadd.f32 %v6540_v7, %v2122_v18 }
 0x1d3   : > { %v6541_v13 = vpop.f32.mrb[104].mxu1  ;;  %v6430_v53 = vpop.f32.mrb[105].mxu0 }
 0x1d4   : > { %v6542_v3 = vpop.f32.mrb[105].mxu1  ;;  %v6431_v28 = vadd.f32 %v6430_v53, %v6429_v34  ;;  %v6432_v8 = vpop.f32.mrb[106].mxu0 }
 0x1d5   : > { %v6543_v36 = vadd.f32 %v6542_v3, %v6541_v13  ;;  %v6544_v14 = vpop.f32.mrb[106].mxu1  ;;  %v6433_v39 = vpop.f32.mrb[107].mxu0 }
 0x1d6   : > { %v6545_v43 = vpop.f32.mrb[107].mxu1  ;;  %v2127_v25 = vadd.f32 %v6431_v28, %v8426_v10  ;;  %v6434_v19 = vadd.f32 %v6433_v39, %v6432_v8  ;;  %v2725_v10 = vsel %vm8505_vm10, 0, %v2724_v26 }
 0x1d7   : > { %v6546_v51 = vadd.f32 %v6545_v43, %v6544_v14  ;;  %2726 = vst [vmem:[#allocation2 + $0x8c] sm:$0x1] %v2725_v10 }
 0x1d8   : > { %v2130_v40 = vadd.f32 %v6434_v19, %v8429_v21  ;;  %v8693_v37 = vadd.f32 %v6543_v36, %v2127_v25 }
 0x1da   : > { %v6435_v7 = vpop.f32.mrb[108].mxu0  ;;  %v8695_v41 = vadd.f32 %v6546_v51, %v2130_v40 }
 0x1db   : > { %v6547_v18 = vpop.f32.mrb[108].mxu1  ;;  %v6436_v56 = vpop.f32.mrb[109].mxu0 }
 0x1dc   : > { %v6548_v30 = vpop.f32.mrb[109].mxu1  ;;  %v6437_v22 = vadd.f32 %v6436_v56, %v6435_v7  ;;  %v6438_v33 = vpop.f32.mrb[110].mxu0 }
 0x1dd   : > { %v6549_v34 = vadd.f32 %v6548_v30, %v6547_v18  ;;  %v6550_v13 = vpop.f32.mrb[110].mxu1  ;;  %v6439_v2 = vpop.f32.mrb[111].mxu0 }
 0x1de   : > { %v6551_v53 = vpop.f32.mrb[111].mxu1  ;;  %v2135_v21 = vadd.f32 %v6437_v22, %v8441_v50  ;;  %v6440_v3 = vadd.f32 %v6439_v2, %v6438_v33  ;;  %v2683_v33 = vld [vmem:[#allocation2 + $0xa8] sm:$0x1] }
 0x1df   : > { %v6552_v48 = vadd.f32 %v6551_v53, %v6550_v13 }
 0x1e0   : > { %v2138_v28 = vadd.f32 %v6440_v3, %v8444_v11  ;;  %v8701_v8 = vadd.f32 %v6549_v34, %v2135_v21  ;;  %v2684_v34 = vsel %vm8498_vm8, 0, %v2683_v33 }
 0x1e1   : > { %2685 = vst [vmem:[#allocation2 + $0xa8] sm:$0x1] %v2684_v34 }
 0x1e2   : > { %v6441_v36 = vpop.f32.mrb[112].mxu0  ;;  %v8703_v39 = vadd.f32 %v6552_v48, %v2138_v28 }
 0x1e3   : > { %v6553_v14 = vpop.f32.mrb[112].mxu1  ;;  %v6442_v43 = vpop.f32.mrb[113].mxu0 }
 0x1e4   : > { %v6554_v25 = vpop.f32.mrb[113].mxu1  ;;  %v6443_v19 = vadd.f32 %v6442_v43, %v6441_v36  ;;  %v6444_v51 = vpop.f32.mrb[114].mxu0  ;;  %v2680_v43 = vld [vmem:[#allocation2 + $0x9c] sm:$0x1] }
 0x1e5   : > { %v6555_v40 = vadd.f32 %v6554_v25, %v6553_v14  ;;  %v6556_v7 = vpop.f32.mrb[114].mxu1  ;;  %v6445_v18 = vpop.f32.mrb[115].mxu0 }
 0x1e6   : > { %v6557_v56 = vpop.f32.mrb[115].mxu1  ;;  %v2143_v50 = vadd.f32 %v6443_v19, %v8451_v20  ;;  %v6446_v30 = vadd.f32 %v6445_v18, %v6444_v51  ;;  %v2681_v51 = vsel %vm8498_vm8, 0, %v2680_v43  ;;  %v2689_v43 = vld [vmem:[#allocation2 + $0xc0] sm:$0x1] }
 0x1e7   : > { %v6558_v22 = vadd.f32 %v6557_v56, %v6556_v7  ;;  %v2730_v7 = vld [vmem:[#allocation2 + $0xa4] sm:$0x1]  ;;  %2682 = vst [vmem:[#allocation2 + $0x9c] sm:$0x1] %v2681_v51 }
 0x1e8   : > { %v2146_v11 = vadd.f32 %v6446_v30, %v8453_v54  ;;  %v8709_v13 = vadd.f32 %v6555_v40, %v2143_v50  ;;  %v2733_v40 = vld [vmem:[#allocation2 + $0xb0] sm:$0x1]  ;;  %v2731_v56 = vsel %vm8505_vm10, 0, %v2730_v7 }
 0x1e9   : > { %v2734_v18 = vsel %vm8505_vm10, 0, %v2733_v40  ;;  %2732 = vst [vmem:[#allocation2 + $0xa4] sm:$0x1] %v2731_v56 }
 0x1ea   : > { %v6447_v26 = vpop.f32.mrb[116].mxu0  ;;  %v8711_v53 = vadd.f32 %v6558_v22, %v2146_v11  ;;  %2735 = vst [vmem:[#allocation2 + $0xb0] sm:$0x1] %v2734_v18 }
 0x1eb   : > { %v6559_v2 = vpop.f32.mrb[116].mxu1  ;;  %v6448_v10 = vpop.f32.mrb[117].mxu0 }
 0x1ec   : > { %v6560_v21 = vpop.f32.mrb[117].mxu1  ;;  %v6449_v3 = vadd.f32 %v6448_v10, %v6447_v26  ;;  %v6450_v48 = vpop.f32.mrb[118].mxu0 }
 0x1ed   : > { %v6561_v20 = vadd.f32 %v6560_v21, %v6559_v2  ;;  %v6562_v28 = vpop.f32.mrb[118].mxu1  ;;  %v6451_v36 = vpop.f32.mrb[119].mxu0 }
 0x1ee   : > { %v6563_v14 = vpop.f32.mrb[119].mxu1  ;;  %v2151_v54 = vadd.f32 %v6449_v3, %v8461_v58  ;;  %v6452_v25 = vadd.f32 %v6451_v36, %v6450_v48 }
 0x1ef   : > { %v6564_v19 = vadd.f32 %v6563_v14, %v6562_v28 }
 0x1f0   : > { %v2154_v50 = vadd.f32 %v6452_v25, %v8463_v42  ;;  %v8721_v30 = vadd.f32 %v6561_v20, %v2151_v54  ;;  %v7308_v42 = vld [vmem:[%s10135_s3 + $0x148] sm:$0xff]   ;;  %v2690_v25 = vsel %vm8498_vm8, 0, %v2689_v43  ;;  %v2736_v43 = vld [vmem:[#allocation2 + $0xbc] sm:$0x1] }
 0x1f1   : > { %v7309_v20 = vld [vmem:[%s10135_s3 + $0x108] sm:$0xff]   ;;  %6827 = vmatprep.subr.bf16.mxu1 %v7308_v42  ;;  %2691 = vst [vmem:[#allocation2 + $0xc0] sm:$0x1] %v2690_v25  ;;  %v2686_v42 = vld [vmem:[#allocation2 + $0xb4] sm:$0x1] }
 0x1f2   : > { %v6453_v58 = vpop.f32.mrb[120].mxu0  ;;  %v8723_v33 = vadd.f32 %v6564_v19, %v2154_v50  ;;  %6828 = vmatpush3.bf16.msra.mxu1 %v7309_v20 }
 0x1f3   : > { %v6565_v22 = vpop.f32.mrb[120].mxu1  ;;  %v6454_v11 = vpop.f32.mrb[121].mxu0 }
 0x1f4   : > { %v6566_v34 = vpop.f32.mrb[121].mxu1  ;;  %v6455_v26 = vadd.f32 %v6454_v11, %v6453_v58  ;;  %v6456_v2 = vpop.f32.mrb[122].mxu0 }
 0x1f5   : > { %v6567_v10 = vadd.f32 %v6566_v34, %v6565_v22  ;;  %v6568_v21 = vpop.f32.mrb[122].mxu1  ;;  %v6457_v3 = vpop.f32.mrb[123].mxu0 }
 0x1f6   : > { %v6569_v48 = vpop.f32.mrb[123].mxu1  ;;  %v2159_v28 = vadd.f32 %v6455_v26, %v8465_v15  ;;  %v6458_v36 = vadd.f32 %v6457_v3, %v6456_v2  ;;  %v8746_v3 = vld [vmem:[%s10134_s2] ss:$0 sm:$0xff] }
 0x1f7   : > { %v6570_v14 = vadd.f32 %v6569_v48, %v6568_v21 }
 0x1f8   : > { %v2162_v54 = vadd.f32 %v6458_v36, %v8467_v29  ;;  %v8735_v19 = vadd.f32 %v6567_v10, %v2159_v28  ;;  %v2739_v28 = vld [vmem:[#allocation2 + $0xc8] sm:$0x1] }
 0x1fa   : > { %v6459_v51 = vpop.f32.mrb[124].mxu0  ;;  %v8737_v7 = vadd.f32 %v6570_v14, %v2162_v54  ;;  %v8758_v54 = vld [vmem:[%s10134_s2 + $0x1] ss:$0 sm:$0xff] }
 0x1fb   : > { %v6571_v40 = vpop.f32.mrb[124].mxu1  ;;  %v6460_v18 = vpop.f32.mrb[125].mxu0 }
 0x1fc   : > { %10235 = vst [vmem:[#allocation4_spill] sm:$0xff] %v8737_v7  ;;  %v6572_v56 = vpop.f32.mrb[125].mxu1  ;;  %v6461_v15 = vadd.f32 %v6460_v18, %v6459_v51  ;;  %v6462_v50 = vpop.f32.mrb[126].mxu0 }
 0x1fd   : > { %v6573_v58 = vadd.f32 %v6572_v56, %v6571_v40  ;;  %v6574_v22 = vpop.f32.mrb[126].mxu1  ;;  %v6463_v11 = vpop.f32.mrb[127].mxu0 }
 0x1fe   : > { %v6575_v34 = vpop.f32.mrb[127].mxu1  ;;  %v2167_v29 = vadd.f32 %v6461_v15, %v8475_v46  ;;  %v6464_v26 = vadd.f32 %v6463_v11, %v6462_v50  ;;  %v2687_v46 = vsel %vm8498_vm8, 0, %v2686_v42 }
 0x1ff   : > { %v6576_v2 = vadd.f32 %v6575_v34, %v6574_v22  ;;  %2688 = vst [vmem:[#allocation2 + $0xb4] sm:$0x1] %v2687_v46 }
 0x200   : > { %v2170_v10 = vadd.f32 %v6464_v26, %v8477_v49  ;;  %v8741_v21 = vadd.f32 %v6573_v58, %v2167_v29  ;;  %v2740_v49 = vsel %vm8505_vm10, 0, %v2739_v28 }
 0x201   : > { %2741 = vst [vmem:[#allocation2 + $0xc8] sm:$0x1] %v2740_v49 }
 0x202   : > { %v7091_v48 = vpop.f32.mrb[128].mxu0  ;;  %v8748_v20 = vadd.f32 %v6576_v2, %v2170_v10 }
 0x203   : > { %v2377_v36 = vadd.f32 %v7091_v48, %v8517_v47  ;;  %v2368_v14 = vpop.f32.mrb[129].mxu0  ;;  %v2737_v47 = vsel %vm8505_vm10, 0, %v2736_v43 }
 0x204   : > { %v2369_v25 = vadd.f32 %v2368_v14, %v8493_v35  ;;  %v7092_v51 = vpop.f32.mrb[130].mxu0  ;;  %2738 = vst [vmem:[#allocation2 + $0xbc] sm:$0x1] %v2737_v47 }
 0x205   : > { %v2502_v40 = vmul.f32 %v8746_v3, %v2377_v36  ;;  %v2380_v18 = vadd.f32 %v7092_v51, %v8519_v62  ;;  %v2371_v56 = vpop.f32.mrb[131].mxu0  ;;  %v7312_v62 = vld [vmem:[%s10135_s3 + $0x150] sm:$0xff]  }
 0x206   : > { %v2500_v15 = vmul.f32 %v8746_v3, %v2369_v25  ;;  %v2372_v50 = vadd.f32 %v2371_v56, %v8495_v31  ;;  %6829 = vmatprep.subr.bf16.mxu1 %v7312_v62 }
 0x207   : > { %v2539_v58 = vadd.f32 %v8758_v54, %v2502_v40  ;;  %v2503_v35 = vmul.f32 %v8746_v3, %v2380_v18 }
 0x208   : > { %v2537_v22 = vadd.f32 %v8758_v54, %v2500_v15  ;;  %v2501_v11 = vmul.f32 %v8746_v3, %v2372_v50 }
 0x209   : > { %v2571_v63 = vmul.f32 0.01, %v2539_v58  ;;  %v2540_v34 = vadd.f32 %v8758_v54, %v2503_v35  ;;  %v3169_v35 = vld [vmem:[#allocation2 + $0x18] sm:$0xf] }
 0x20a   : > { %v2569_v29 = vmul.f32 0.01, %v2537_v22  ;;  %v2538_v26 = vadd.f32 %v8758_v54, %v2501_v11  ;;  %v7095_v2 = vpop.f32.mrb[132].mxu0 }
 0x20b   : > { %v2603_v31 = vmax.f32 %v2539_v58, %v2571_v63  ;;  %v2572_v10 = vmul.f32 0.01, %v2540_v34  ;;  %v2393_v48 = vadd.f32 %v7095_v2, %v8557_v52  ;;  %v2384_v42 = vpop.f32.mrb[133].mxu0 }
 0x20c   : > { %v2601_v28 = vmax.f32 %v2537_v22, %v2569_v29  ;;  %v2570_v36 = vmul.f32 0.01, %v2538_v26  ;;  %v2385_v14 = vadd.f32 %v2384_v42, %v8536_v6  ;;  %v7096_v46 = vpop.f32.mrb[134].mxu0 }
 0x20d   : > { %v6099_v49 = vpack.c.bf16 %v2603_v31, %v2603_v31  ;;  %v2604_v43 = vmax.f32 %v2540_v34, %v2572_v10  ;;  %v2506_v25 = vmul.f32 %v8746_v3, %v2393_v48  ;;  %v8780_v51 = vadd.f32 %v7096_v46, %v8569_v59  ;;  %v2387_v47 = vpop.f32.mrb[135].mxu0 }
 0x20e   : > { %v6097_v40 = vpack.c.bf16 %v2601_v28, %v2601_v28  ;;  %v2602_v18 = vmax.f32 %v2538_v26, %v2570_v36  ;;  %v2504_v52 = vmul.f32 %v8746_v3, %v2385_v14  ;;  %v2388_v56 = vadd.f32 %v2387_v47, %v8547_v23  ;;  %v3162_v14 = vld [vmem:[#allocation2 + $0xc] sm:$0xf] }
 0x20f   : > { %v2858_v15 = vshrl.u32 %v6099_v49, 16  ;;  %v2861_v50 = vshll.u32 %v6099_v49, 16  ;;  %v6100_v58 = vpack.c.bf16 %v2604_v43, %v2604_v43  ;;  %v2543_v6 = vadd.f32 %v8758_v54, %v2506_v25  ;;  %v7313_v25 = vld [vmem:[%s10135_s3 + $0x110] sm:$0xff]  }
 0x210   : > { %v2841_v22 = vshrl.u32 %v6097_v40, 16  ;;  %v2844_v11 = vshll.u32 %v6097_v40, 16  ;;  %v6098_v63 = vpack.c.bf16 %v2602_v18, %v2602_v18  ;;  %v2541_v34 = vadd.f32 %v8758_v54, %v2504_v52  ;;  %v3173_v52 = vld [vmem:[#allocation2 + $0x20] sm:$0x1]  ;;  %6830 = vmatpush3.bf16.msra.mxu1 %v7313_v25 }
 0x211   : > { %v2860_v59 = vrot.slane %v2858_v15, 7  ;;  %v2866_v62 = vshrl.u32 %v6100_v58, 16  ;;  %v2869_v29 = vshll.u32 %v6100_v58, 16  ;;  %v2575_v2 = vmul.f32 0.01, %v2543_v6 }
 0x212   : > { %v2843_v23 = vrot.slane %v2841_v22, 7  ;;  %v2849_v31 = vshrl.u32 %v6098_v63, 16  ;;  %v2852_v10 = vshll.u32 %v6098_v63, 16  ;;  %v2573_v48 = vmul.f32 0.01, %v2541_v34  ;;  %v7099_v42 = vpop.f32.mrb[136].mxu0 }
 0x213   : > { %v2863_v28 = vor.u32 %v2861_v50, %v2860_v59  ;;  %v2864_v36 = vrot.slane %v2860_v59, 4  ;;  %v2868_v46 = vrot.slane %v2866_v62, 7  ;;  %v2607_v49 = vmax.f32 %v2543_v6, %v2575_v2  ;;  %v2400_v43 = vpop.f32.mrb[137].mxu0  ;;  %v3166_v59 = vld [vmem:[#allocation2 + $0x14] sm:$0x1] }
 0x214   : > { %v2846_v47 = vor.u32 %v2844_v11, %v2843_v23  ;;  %v2847_v40 = vrot.slane %v2843_v23, 4  ;;  %v2851_v15 = vrot.slane %v2849_v31, 7  ;;  %v2605_v50 = vmax.f32 %v2541_v34, %v2573_v48  ;;  %v7100_v58 = vpop.f32.mrb[138].mxu0 }
 0x215   : > { %v3170_v6 = vsel %vm8788_vm13, %v2863_v28, %v3169_v35  ;;  %v2871_v22 = vor.u32 %v2869_v29, %v2868_v46  ;;  %v2873_v63 = vrot.slane %v2868_v46, 4  ;;  %v6103_v62 = vpack.c.bf16 %v2607_v49, %v2607_v49  ;;  %v2403_v2 = vpop.f32.mrb[139].mxu0 }
 0x216   : > { %3171 = vst [vmem:[#allocation2 + $0x18] sm:$0xf] %v3170_v6  ;;  %v3163_v11 = vsel %vm8788_vm13, %v2846_v47, %v3162_v14  ;;  %v2854_v23 = vor.u32 %v2852_v10, %v2851_v15  ;;  %v2856_v9 = vrot.slane %v2851_v15, 4  ;;  %v6101_v7 = vpack.c.bf16 %v2605_v50, %v2605_v50  ;;  %v3183_v47 = vld [vmem:[#allocation2 + $0x30] sm:$0xf] }
 0x217   : > { %3164 = vst [vmem:[#allocation2 + $0xc] sm:$0xf] %v3163_v11  ;;  %v2872_v34 = vsel %vm8797_vm14, %v2864_v36, %v2871_v22  ;;  %v3174_v35 = vsel %vm8498_vm8, %v2873_v63, %v3173_v52  ;;  %v2892_v29 = vshrl.u32 %v6103_v62, 16  ;;  %v2895_v31 = vshll.u32 %v6103_v62, 16  ;;  %v3176_v22 = vld [vmem:[#allocation2 + $0x24] sm:$0xf] }
 0x218   : > { %3172 = vst [vmem:[#allocation2 + $0x1c] sm:$0xf] %v2872_v34  ;;  %3175 = vst [vmem:[#allocation2 + $0x20] sm:$0x1] %v3174_v35  ;;  %v2855_v48 = vsel %vm8797_vm14, %v2847_v40, %v2854_v23  ;;  %v3167_v28 = vsel %vm8498_vm8, %v2856_v9, %v3166_v59  ;;  %v2875_v10 = vshrl.u32 %v6101_v7, 16  ;;  %v2878_v14 = vshll.u32 %v6101_v7, 16 }
 0x219   : > { %3165 = vst [vmem:[#allocation2 + $0x10] sm:$0xf] %v2855_v48  ;;  %3168 = vst [vmem:[#allocation2 + $0x14] sm:$0x1] %v3167_v28  ;;  %v8813_v46 = vrot.slane %v2892_v29, 7  ;;  %v2507_v36 = vmul.f32 %v8746_v3, %v8780_v51  ;;  %v2505_v49 = vmul.f32 %v8746_v3, %v2388_v56  ;;  %v2409_v25 = vadd.f32 %v7099_v42, %v8612_v5  ;;  %v7316_v42 = vld [vmem:[%s10135_s3 + $0x158] sm:$0xff]  }
 0x21a   : > { %v8819_v52 = vrot.slane %v2875_v10, 7  ;;  %v2401_v40 = vadd.f32 %v2400_v43, %v8585_v44  ;;  %v2412_v9 = vadd.f32 %v7100_v58, %v8624_v4  ;;  %v2404_v7 = vadd.f32 %v2403_v2, %v8595_v12  ;;  %v7103_v15 = vpop.f32.mrb[140].mxu0  ;;  %6831 = vmatprep.subr.bf16.mxu1 %v7316_v42 }
 0x21b   : > { %v2897_v50 = vor.u32 %v2895_v31, %v8813_v46  ;;  %v2898_v6 = vrot.slane %v8813_v46, 4  ;;  %v2544_v51 = vadd.f32 %v8758_v54, %v2507_v36  ;;  %v2542_v56 = vadd.f32 %v8758_v54, %v2505_v49  ;;  %v2416_v5 = vpop.f32.mrb[141].mxu0  ;;  %v7317_v31 = vld [vmem:[%s10135_s3 + $0x118] sm:$0xff]  }
 0x21c   : > { %v2880_v44 = vor.u32 %v2878_v14, %v8819_v52  ;;  %v2881_v4 = vrot.slane %v8819_v52, 4  ;;  %v2510_v12 = vmul.f32 %v8746_v3, %v2409_v25  ;;  %v2508_v43 = vmul.f32 %v8746_v3, %v2401_v40  ;;  %v8835_v58 = vpop.f32.mrb[142].mxu0  ;;  %6832 = vmatpush3.bf16.msra.mxu1 %v7317_v31 }
 0x21d   : > { %v3184_v63 = vsel %vm8788_vm13, %v2897_v50, %v3183_v47  ;;  %v2576_v59 = vmul.f32 0.01, %v2544_v51  ;;  %v2574_v62 = vmul.f32 0.01, %v2542_v56  ;;  %v2511_v2 = vmul.f32 %v8746_v3, %v2412_v9  ;;  %v8840_v11 = vpop.f32.mrb[143].mxu0 }
 0x21e   : > { %3185 = vst [vmem:[#allocation2 + $0x30] sm:$0xf] %v3184_v63  ;;  %v3177_v23 = vsel %vm8788_vm13, %v2880_v44, %v3176_v22  ;;  %v2547_v34 = vadd.f32 %v8758_v54, %v2510_v12  ;;  %v2545_v35 = vadd.f32 %v8758_v54, %v2508_v43  ;;  %v2509_v29 = vmul.f32 %v8746_v3, %v2404_v7 }
 0x21f   : > { %3178 = vst [vmem:[#allocation2 + $0x24] sm:$0xf] %v3177_v23  ;;  %v2608_v48 = vmax.f32 %v2544_v51, %v2576_v59  ;;  %v2606_v28 = vmax.f32 %v2542_v56, %v2574_v62  ;;  %v2548_v10 = vadd.f32 %v8758_v54, %v2511_v2  ;;  %v2425_v14 = vadd.f32 %v7103_v15, %v8659_v61  ;;  %v7319_v23 = vld [vmem:[%s10135_s3 + $0x1c0] sm:$0xff]  }
 0x220   : > { %v2579_v36 = vmul.f32 0.01, %v2547_v34  ;;  %v2577_v49 = vmul.f32 0.01, %v2545_v35  ;;  %v2546_v25 = vadd.f32 %v8758_v54, %v2509_v29  ;;  %v2417_v47 = vadd.f32 %v2416_v5, %v8635_v24  ;;  %6937 = vmatprep.subr.bf16.mxu0 %v7319_v23 }
 0x221   : > { %v6104_v40 = vpack.c.bf16 %v2608_v48, %v2608_v48  ;;  %v6102_v9 = vpack.c.bf16 %v2606_v28, %v2606_v28  ;;  %v2580_v7 = vmul.f32 0.01, %v2548_v10  ;;  %v2514_v50 = vmul.f32 %v8746_v3, %v2425_v14  ;;  %v3180_v14 = vld [vmem:[#allocation2 + $0x2c] sm:$0x1] }
 0x222   : > { %v2611_v22 = vmax.f32 %v2547_v34, %v2579_v36  ;;  %v2609_v42 = vmax.f32 %v2545_v35, %v2577_v49  ;;  %v2578_v51 = vmul.f32 0.01, %v2546_v25  ;;  %v2512_v56 = vmul.f32 %v8746_v3, %v2417_v47  ;;  %v8856_v44 = vpop.f32.mrb[144].mxu0  ;;  %v3187_v35 = vld [vmem:[#allocation2 + $0x38] sm:$0x1] }
 0x223   : > { %v2900_v61 = vshrl.u32 %v6104_v40, 16  ;;  %v2903_v15 = vshll.u32 %v6104_v40, 16  ;;  %v2883_v12 = vshrl.u32 %v6102_v9, 16  ;;  %v2886_v43 = vshll.u32 %v6102_v9, 16  ;;  %v8858_v63 = vpop.f32.mrb[145].mxu0 }
 0x224   : > { %v6107_v24 = vpack.c.bf16 %v2611_v22, %v2611_v22  ;;  %v6105_v5 = vpack.c.bf16 %v2609_v42, %v2609_v42  ;;  %v2612_v59 = vmax.f32 %v2548_v10, %v2580_v7  ;;  %v2610_v62 = vmax.f32 %v2546_v25, %v2578_v51  ;;  %v8860_v2 = vpop.f32.mrb[146].mxu0 }
 0x225   : > { %v2902_v34 = vrot.slane %v2900_v61, 7  ;;  %v2885_v29 = vrot.slane %v2883_v12, 7  ;;  %v2551_v31 = vadd.f32 %v8758_v54, %v2514_v50  ;;  %v2549_v48 = vadd.f32 %v8758_v54, %v2512_v56  ;;  %v8867_v28 = vpop.f32.mrb[147].mxu0 }
 0x226   : > { %v2926_v36 = vshrl.u32 %v6107_v24, 16  ;;  %v2929_v49 = vshll.u32 %v6107_v24, 16  ;;  %v2909_v10 = vshrl.u32 %v6105_v5, 16  ;;  %v2912_v25 = vshll.u32 %v6105_v5, 16  ;;  %v3190_v24 = vld [vmem:[#allocation2 + $0x3c] sm:$0xf] }
 0x227   : > { %v2905_v47 = vor.u32 %v2903_v15, %v2902_v34  ;;  %v2907_v40 = vrot.slane %v2902_v34, 4  ;;  %v2888_v9 = vor.u32 %v2886_v43, %v2885_v29  ;;  %v2890_v7 = vrot.slane %v2885_v29, 4  ;;  %v3197_v43 = vld [vmem:[#allocation2 + $0x48] sm:$0xf]  ;;  %v7322_v29 = vld [vmem:[%s10135_s3 + $0x160] sm:$0xff]  }
 0x228   : > { %v2928_v22 = vrot.slane %v2926_v36, 7  ;;  %v2911_v42 = vrot.slane %v2909_v10, 7  ;;  %v6108_v51 = vpack.c.bf16 %v2612_v59, %v2612_v59  ;;  %v6106_v61 = vpack.c.bf16 %v2610_v62, %v2610_v62  ;;  %6833 = vmatprep.subr.bf16.mxu1 %v7322_v29 }
 0x229   : > { %v2906_v50 = vsel %vm8797_vm14, %v2898_v6, %v2905_v47  ;;  %v3188_v56 = vsel %vm8498_vm8, %v2907_v40, %v3187_v35  ;;  %v2889_v15 = vsel %vm8797_vm14, %v2881_v4, %v2888_v9  ;;  %v3181_v12 = vsel %vm8498_vm8, %v2890_v7, %v3180_v14  ;;  %v7323_v47 = vld [vmem:[%s10135_s3 + $0x120] sm:$0xff]  }
 0x22a   : > { %3186 = vst [vmem:[#allocation2 + $0x34] sm:$0xf] %v2906_v50  ;;  %3189 = vst [vmem:[#allocation2 + $0x38] sm:$0x1] %v3188_v56  ;;  %v2931_v46 = vor.u32 %v2929_v49, %v2928_v22  ;;  %v2932_v5 = vrot.slane %v2928_v22, 4  ;;  %v2914_v6 = vor.u32 %v2912_v25, %v2911_v42  ;;  %v2915_v59 = vrot.slane %v2911_v42, 4  ;;  %6834 = vmatpush3.bf16.msra.mxu1 %v7323_v47 }
 0x22b   : > { %3179 = vst [vmem:[#allocation2 + $0x28] sm:$0xf] %v2889_v15  ;;  %3182 = vst [vmem:[#allocation2 + $0x2c] sm:$0x1] %v3181_v12  ;;  %v8881_v62 = vpop.f32.mrb[148].mxu0  ;;  %v2934_v23 = vshrl.u32 %v6108_v51, 16  ;;  %v2428_v7 = vadd.f32 %v8835_v58, %v8661_v60  ;;  %v2420_v22 = vadd.f32 %v8840_v11, %v8649_v32  ;;  %v2441_v15 = vadd.f32 %v8856_v44, %v8675_v17 }
 0x22c   : > { %v2937_v52 = vshll.u32 %v6108_v51, 16  ;;  %v2917_v34 = vshrl.u32 %v6106_v61, 16  ;;  %v2920_v35 = vshll.u32 %v6106_v61, 16  ;;  %v8883_v4 = vpop.f32.mrb[149].mxu0  ;;  %v3198_v14 = vsel %vm8788_vm13, %v2931_v46, %v3197_v43  ;;  %v3201_v51 = vld [vmem:[#allocation2 + $0x50] sm:$0x1] }
 0x22d   : > { %v3191_v36 = vsel %vm8788_vm13, %v2914_v6, %v3190_v24  ;;  %v2583_v49 = vmul.f32 0.01, %v2551_v31  ;;  %v2581_v10 = vmul.f32 0.01, %v2549_v48  ;;  %v8892_v25 = vpop.f32.mrb[150].mxu0  ;;  %v2936_v40 = vrot.slane %v2934_v23, 7 }
 0x22e   : > { %3199 = vst [vmem:[#allocation2 + $0x48] sm:$0xf] %v3198_v14  ;;  %3192 = vst [vmem:[#allocation2 + $0x3c] sm:$0xf] %v3191_v36  ;;  %v2919_v9 = vrot.slane %v2917_v34, 7  ;;  %v8901_v42 = vpop.f32.mrb[151].mxu0  ;;  %v2433_v12 = vadd.f32 %v8858_v63, %v8669_v0  ;;  %v2515_v11 = vmul.f32 %v8746_v3, %v2428_v7  ;;  %v2513_v6 = vmul.f32 %v8746_v3, %v2420_v22 }
 0x22f   : > { %v3194_v61 = vld [vmem:[#allocation2 + $0x44] sm:$0x1]  ;;  %v2615_v50 = vmax.f32 %v2551_v31, %v2583_v49  ;;  %v2613_v56 = vmax.f32 %v2549_v48, %v2581_v10  ;;  %v2939_v43 = vor.u32 %v2937_v52, %v2936_v40  ;;  %v2941_v24 = vrot.slane %v2936_v40, 4  ;;  %v3211_v52 = vld [vmem:[#allocation2 + $0x60] sm:$0xf] }
 0x230   : > { %v2922_v60 = vor.u32 %v2920_v35, %v2919_v9  ;;  %v2924_v58 = vrot.slane %v2919_v9, 4  ;;  %v3204_v34 = vld [vmem:[#allocation2 + $0x54] sm:$0xf]  ;;  %v2550_v35 = vadd.f32 %v8758_v54, %v2513_v6  ;;  %v2518_v29 = vmul.f32 %v8746_v3, %v2441_v15  ;;  %v8923_v14 = vld [vmem:[#allocation2 + $0xc] sm:$0xf] }
 0x231   : > { %v6111_v46 = vpack.c.bf16 %v2615_v50, %v2615_v50  ;;  %v6109_v32 = vpack.c.bf16 %v2613_v56, %v2613_v56  ;;  %v2940_v31 = vsel %vm8797_vm14, %v2932_v5, %v2939_v43  ;;  %v3202_v17 = vsel %vm8498_vm8, %v2941_v24, %v3201_v51  ;;  %v8925_v36 = vld [vmem:[#allocation2 + $0x10] sm:$0xf] }
 0x232   : > { %v2923_v0 = vsel %vm8797_vm14, %v2915_v59, %v2922_v60  ;;  %v3195_v44 = vsel %vm8498_vm8, %v2924_v58, %v3194_v61  ;;  %3200 = vst [vmem:[#allocation2 + $0x4c] sm:$0xf] %v2940_v31  ;;  %3203 = vst [vmem:[#allocation2 + $0x50] sm:$0x1] %v3202_v17  ;;  %v8917_v23 = vpop.f32.mrb[152].mxu0  ;;  %v2552_v5 = vadd.f32 %v8758_v54, %v2515_v11  ;;  %v3353_v43 = vshrl.u32 %v8923_v14, 16 }
 0x233   : > { %3193 = vst [vmem:[#allocation2 + $0x40] sm:$0xf] %v2923_v0  ;;  %3196 = vst [vmem:[#allocation2 + $0x44] sm:$0x1] %v3195_v44  ;;  %v2960_v63 = vshrl.u32 %v6111_v46, 16  ;;  %v2943_v48 = vshrl.u32 %v6109_v32, 16  ;;  %v2516_v59 = vmul.f32 %v8746_v3, %v2433_v12  ;;  %v2555_v61 = vadd.f32 %v8758_v54, %v2518_v29 }
 0x234   : > { %v8927_v49 = vpop.f32.mrb[153].mxu0  ;;  %v2963_v47 = vshll.u32 %v6111_v46, 16  ;;  %v2946_v9 = vshll.u32 %v6109_v32, 16  ;;  %v2584_v22 = vmul.f32 0.01, %v2552_v5  ;;  %v8950_v17 = vcombine.low %v8923_v14, %v8925_v36  ;;  %v7320_v44 = vld [vmem:[%s10135_s3 + $0x180] sm:$0xff]  }
 0x235   : > { %v8929_v10 = vrot.slane %v2960_v63, 7  ;;  %v8931_v40 = vrot.slane %v2943_v48, 7  ;;  %v8933_v7 = vpop.f32.mrb[154].mxu0  ;;  %v2582_v51 = vmul.f32 0.01, %v2550_v35  ;;  %v2553_v50 = vadd.f32 %v8758_v54, %v2516_v59 }
 0x236   : > { %v8937_v56 = vpop.f32.mrb[155].mxu0  ;;  %v2616_v60 = vmax.f32 %v2552_v5, %v2584_v22  ;;  %v2587_v46 = vmul.f32 0.01, %v2555_v61  ;;  %v8952_v0 = vld [vmem:[#allocation2 + $0x18] sm:$0xf]  ;;  %4925 = vmatprep.mubr.bf16.mxu0 %v8950_v17  ;;  %v2444_v59 = vadd.f32 %v8860_v2, %v8685_v38  ;;  %v7328_v38 = vld [vmem:[%s10135_s3 + $0x168] sm:$0xff]  }
 0x237   : > { %v2965_v15 = vor.u32 %v2963_v47, %v8929_v10  ;;  %v2948_v12 = vor.u32 %v2946_v9, %v8931_v40  ;;  %v2614_v58 = vmax.f32 %v2550_v35, %v2582_v51  ;;  %v2585_v32 = vmul.f32 0.01, %v2553_v50  ;;  %v8967_v47 = vld [vmem:[#allocation2 + $0x1c] sm:$0xf]  ;;  %6835 = vmatprep.subr.bf16.mxu1 %v7328_v38 }
 0x238   : > { %v2966_v11 = vrot.slane %v8929_v10, 4  ;;  %v6112_v63 = vpack.c.bf16 %v2616_v60, %v2616_v60  ;;  %v2619_v5 = vmax.f32 %v2555_v61, %v2587_v46  ;;  %v2436_v10 = vadd.f32 %v8867_v28, %v8671_v16  ;;  %v3215_v46 = vld [vmem:[#allocation2 + $0x68] sm:$0x1] }
 0x239   : > { %v3212_v6 = vsel %vm8788_vm13, %v2965_v15, %v3211_v52  ;;  %v3205_v31 = vsel %vm8788_vm13, %v2948_v12, %v3204_v34  ;;  %v6110_v48 = vpack.c.bf16 %v2614_v58, %v2614_v58  ;;  %v2617_v35 = vmax.f32 %v2553_v50, %v2585_v32  ;;  %v7325_v52 = vld [vmem:[%s10135_s3 + $0x1c8] sm:$0xff]  }
 0x23a   : > { %3213 = vst [vmem:[#allocation2 + $0x60] sm:$0xf] %v3212_v6  ;;  %3206 = vst [vmem:[#allocation2 + $0x54] sm:$0xf] %v3205_v31  ;;  %v2949_v34 = vrot.slane %v8931_v40, 4  ;;  %v8969_v9 = vpop.f32.mrb[156].mxu0  ;;  %v10240_v40 = vcombine.low %v8643_v1, %v8647_v45  ;;  %v6115_v16 = vpack.c.bf16 %v2619_v5, %v2619_v5  ;;  %v2519_v28 = vmul.f32 %v8746_v3, %v2444_v59 }
 0x23b   : > { %v2968_v22 = vshrl.u32 %v6112_v63, 16  ;;  %v2971_v51 = vshll.u32 %v6112_v63, 16  ;;  %v2951_v61 = vshrl.u32 %v6110_v48, 16  ;;  %v8975_v15 = vpop.f32.mrb[157].mxu0  ;;  %v6113_v2 = vpack.c.bf16 %v2617_v35, %v2617_v35  ;;  %v7326_v1 = vld [vmem:[%s10135_s3 + $0x188] sm:$0xff]  }
 0x23c   : > { %4926 = vmatmul.mubr.bf16.vlgmr.msra.gmra.mrb[160].mxu0 %v10240_v40  ;;  %v2517_v12 = vmul.f32 %v8746_v3, %v2436_v10  ;;  %v8982_v60 = vpop.f32.mrb[158].mxu0  ;;  %v7329_v45 = vld [vmem:[%s10135_s3 + $0x128] sm:$0xff]   ;;  %v2954_v6 = vshll.u32 %v6110_v48, 16  ;;  %v8992_v31 = vcombine.low %v8952_v0, %v8967_v47  ;;  %v2994_v5 = vshrl.u32 %v6115_v16, 16 }
 0x23d   : > { %6938 = vmatpush3.bf16.msra.mxu0 %v7320_v44  ;;  %v2970_v58 = vrot.slane %v2968_v22, 7  ;;  %v2953_v32 = vrot.slane %v2951_v61, 7  ;;  %v8994_v63 = vpop.f32.mrb[159].mxu0  ;;  %v3208_v44 = vld [vmem:[#allocation2 + $0x5c] sm:$0x1]  ;;  %v2997_v35 = vshll.u32 %v6115_v16, 16  ;;  %6836 = vmatpush3.bf16.msra.mxu1 %v7329_v45  ;;  %v2556_v24 = vadd.f32 %v8758_v54, %v2519_v28 }
 0x23e   : > { %6939 = vmatprep.subr.bf16.mxu0 %v7325_v52  ;;  %v2977_v59 = vshrl.u32 %v6113_v2, 16  ;;  %v2980_v10 = vshll.u32 %v6113_v2, 16  ;;  %4933 = vmatprep.mubr.bf16.mxu0 %v8992_v31  ;;  %v8997_v48 = vrot.slane %v2994_v5, 7  ;;  %v2554_v52 = vadd.f32 %v8758_v54, %v2517_v12  ;;  %v3225_v45 = vld [vmem:[#allocation2 + $0x78] sm:$0xf] }
 0x23f   : > { %v2973_v40 = vor.u32 %v2971_v51, %v2970_v58  ;;  %v2975_v50 = vrot.slane %v2970_v58, 4  ;;  %v2956_v22 = vor.u32 %v2954_v6, %v2953_v32  ;;  %v2958_v29 = vrot.slane %v2953_v32, 4  ;;  %v3218_v58 = vld [vmem:[#allocation2 + $0x6c] sm:$0xf] }
 0x240   : > { %v8999_v61 = vrot.slane %v2977_v59, 7  ;;  %v2999_v28 = vor.u32 %v2997_v35, %v8997_v48  ;;  %v3355_v5 = vrot.slane %v3353_v43, 4  ;;  %v7331_v35 = vld [vmem:[%s10135_s3 + $0x1d0] sm:$0xff]   ;;  %v10241_v43 = vshll.u32 %v8923_v14, 16 }
 0x241   : > { %6940 = vmatpush3.bf16.msra.mxu0 %v7326_v1  ;;  %v2974_v38 = vsel %vm8797_vm14, %v2966_v11, %v2973_v40  ;;  %v3216_v51 = vsel %vm8498_vm8, %v2975_v50, %v3215_v46  ;;  %v2957_v16 = vsel %vm8797_vm14, %v2949_v34, %v2956_v22  ;;  %v3209_v2 = vsel %vm8498_vm8, %v2958_v29, %v3208_v44 }
 0x242   : > { %3214 = vst [vmem:[#allocation2 + $0x64] sm:$0xf] %v2974_v38  ;;  %3217 = vst [vmem:[#allocation2 + $0x68] sm:$0x1] %v3216_v51  ;;  %v2982_v11 = vor.u32 %v2980_v10, %v8999_v61  ;;  %v2588_v1 = vmul.f32 0.01, %v2556_v24  ;;  %v2457_v34 = vadd.f32 %v8881_v62, %v8701_v8  ;;  %v2449_v29 = vadd.f32 %v8883_v4, %v8693_v37 }
 0x243   : > { %3207 = vst [vmem:[#allocation2 + $0x58] sm:$0xf] %v2957_v16  ;;  %3210 = vst [vmem:[#allocation2 + $0x5c] sm:$0x1] %v3209_v2  ;;  %v2586_v46 = vmul.f32 0.01, %v2554_v52  ;;  %v3226_v32 = vsel %vm8788_vm13, %v2999_v28, %v3225_v45  ;;  %v2460_v44 = vadd.f32 %v8892_v25, %v8703_v39  ;;  %6941 = vmatprep.subr.bf16.mxu0 %v7331_v35 }
 0x244   : > { %v3219_v6 = vsel %vm8788_vm13, %v2982_v11, %v3218_v58  ;;  %v7332_v37 = vld [vmem:[%s10135_s3 + $0x190] sm:$0xff]   ;;  %3227 = vst [vmem:[#allocation2 + $0x78] sm:$0xf] %v3226_v32  ;;  %v2620_v8 = vmax.f32 %v2556_v24, %v2588_v1  ;;  %v2522_v4 = vmul.f32 %v8746_v3, %v2457_v34  ;;  %v2520_v59 = vmul.f32 %v8746_v3, %v2449_v29 }
 0x245   : > { %3220 = vst [vmem:[#allocation2 + $0x6c] sm:$0xf] %v3219_v6  ;;  %v2618_v62 = vmax.f32 %v2554_v52, %v2586_v46  ;;  %v2523_v39 = vmul.f32 %v8746_v3, %v2460_v44  ;;  %v9036_v25 = vld [vmem:[#allocation2 + $0x14] sm:$0x1]  ;;  %v3358_v10 = vrot.slane %v10241_v43, 5  ;;  %v3362_v40 = vshll.u32 %v8925_v36, 16  ;;  %6942 = vmatpush3.bf16.msra.mxu0 %v7332_v37 }
 0x246   : > { %v10242_v22 = vshrl.u32 %v8925_v36, 16  ;;  %v6116_v51 = vpack.c.bf16 %v2620_v8, %v2620_v8  ;;  %v2559_v52 = vadd.f32 %v8758_v54, %v2522_v4  ;;  %v2557_v16 = vadd.f32 %v8758_v54, %v2520_v59  ;;  %v3229_v37 = vld [vmem:[#allocation2 + $0x80] sm:$0x1]  ;;  %v3222_v59 = vld [vmem:[#allocation2 + $0x74] sm:$0x1] }
 0x247   : > { %v6114_v24 = vpack.c.bf16 %v2618_v62, %v2618_v62  ;;  %v2983_v2 = vrot.slane %v8999_v61, 4  ;;  %v2560_v45 = vadd.f32 %v8758_v54, %v2523_v39  ;;  %v3359_v58 = vor.u32 %v3358_v10, %v3355_v5  ;;  %v7334_v10 = vld [vmem:[%s10135_s3 + $0x170] sm:$0xff]  }
 0x248   : > { %v3368_v38 = vrot.slane %v10242_v22, 4  ;;  %v3364_v28 = vrot.slane %v3362_v40, 5  ;;  %v3002_v11 = vshrl.u32 %v6116_v51, 16  ;;  %v3005_v1 = vshll.u32 %v6116_v51, 16  ;;  %6837 = vmatprep.subr.bf16.mxu1 %v7334_v10 }
 0x249   : > { %v2985_v46 = vshrl.u32 %v6114_v24, 16  ;;  %v3372_v34 = vshll.u32 %v9036_v25, 16  ;;  %v2591_v29 = vmul.f32 0.01, %v2559_v52  ;;  %v2589_v32 = vmul.f32 0.01, %v2557_v16 }
 0x24a   : > { %v2592_v6 = vmul.f32 0.01, %v2560_v45  ;;  %v3369_v44 = vor.u32 %v3368_v38, %v3364_v28  ;;  %v3004_v35 = vrot.slane %v3002_v11, 7  ;;  %v2988_v62 = vshll.u32 %v6114_v24, 16  ;;  %v7335_v24 = vld [vmem:[%s10135_s3 + $0x130] sm:$0xff]  }
 0x24b   : > { %v2987_v8 = vrot.slane %v2985_v46, 7  ;;  %v3360_v4 = vrot.slane %v3359_v58, 4  ;;  %v2623_v61 = vmax.f32 %v2559_v52, %v2591_v29  ;;  %v2621_v43 = vmax.f32 %v2557_v16, %v2589_v32  ;;  %6838 = vmatpush3.bf16.msra.mxu1 %v7335_v24 }
 0x24c   : > { %v2624_v39 = vmax.f32 %v2560_v45, %v2592_v6  ;;  %v3370_v5 = vrot.slane %v3369_v44, 4  ;;  %v3007_v40 = vor.u32 %v3005_v1, %v3004_v35  ;;  %v3009_v22 = vrot.slane %v3004_v35, 4 }
 0x24d   : > { %v2990_v51 = vor.u32 %v2988_v62, %v2987_v8  ;;  %v2992_v50 = vrot.slane %v2987_v8, 4  ;;  %v6119_v12 = vpack.c.bf16 %v2623_v61, %v2623_v61  ;;  %v6117_v38 = vpack.c.bf16 %v2621_v43, %v2621_v43  ;;  %v9069_v8 = vld [vmem:[#allocation2 + $0x24] sm:$0xf]  ;;  %v3239_v62 = vld [vmem:[#allocation2 + $0x90] sm:$0xf] }
 0x24e   : > { %v6120_v11 = vpack.c.bf16 %v2624_v39, %v2624_v39  ;;  %v3374_v46 = vrot.slane %v3372_v34, 5  ;;  %v10243_v52 = vrot.slane %v8997_v48, 4  ;;  %v3230_v45 = vsel %vm8498_vm8, %v3009_v22, %v3229_v37  ;;  %v3232_v43 = vld [vmem:[#allocation2 + $0x84] sm:$0xf] }
 0x24f   : > { %v2991_v58 = vsel %vm8797_vm14, %v2983_v2, %v2990_v51  ;;  %v3223_v1 = vsel %vm8498_vm8, %v2992_v50, %v3222_v59  ;;  %3231 = vst [vmem:[#allocation2 + $0x80] sm:$0x1] %v3230_v45  ;;  %v3390_v34 = vshrl.u32 %v8967_v47, 16  ;;  %v3028_v29 = vshrl.u32 %v6119_v12, 16  ;;  %v9098_v45 = vld [vmem:[#allocation2 + $0x20] sm:$0x1] }
 0x250   : > { %v3008_v16 = vsel %vm8797_vm14, %v10243_v52, %v3007_v40  ;;  %3221 = vst [vmem:[#allocation2 + $0x70] sm:$0xf] %v2991_v58  ;;  %3224 = vst [vmem:[#allocation2 + $0x74] sm:$0x1] %v3223_v1  ;;  %v3011_v48 = vshrl.u32 %v6117_v38, 16  ;;  %v3365_v32 = vsel %vm7549_vm5, %v3360_v4, %v3364_v28  ;;  %v3031_v6 = vshll.u32 %v6119_v12, 16 }
 0x251   : > { %3228 = vst [vmem:[#allocation2 + $0x7c] sm:$0xf] %v3008_v16  ;;  %v3014_v44 = vshll.u32 %v6117_v38, 16  ;;  %v3036_v35 = vshrl.u32 %v6120_v11, 16  ;;  %v3375_v2 = vsel %vm7549_vm5, %v3370_v5, %v3374_v46  ;;  %v3030_v50 = vrot.slane %v3028_v29, 7 }
 0x252   : > { %v9071_v37 = vrot.slane %v3011_v48, 7  ;;  %v9073_v59 = vcombine.low %v3365_v32, %v3375_v2  ;;  %v3769_v61 = vrot.slane %v8925_v36, 5  ;;  %v3039_v28 = vshll.u32 %v6120_v11, 16  ;;  %v3243_v40 = vld [vmem:[#allocation2 + $0x98] sm:$0x1]  ;;  %v7339_v2 = vld [vmem:[%s10135_s3 + $0x1e0] sm:$0xff]  }
 0x253   : > { %v3038_v39 = vrot.slane %v3036_v35, 7  ;;  %v5949_v12 = vrot.slane %v8923_v14, 9  ;;  %v2452_v4 = vadd.f32 %v8901_v42, %v8695_v41  ;;  %v3033_v10 = vor.u32 %v3031_v6, %v3030_v50  ;;  %v7337_v36 = vld [vmem:[%s10135_s3 + $0x1d8] sm:$0xff]   ;;  %v9090_v46 = vld [vmem:[#allocation2 + $0x28] sm:$0xf] }
 0x254   : > { %v3016_v5 = vor.u32 %v3014_v44, %v9071_v37  ;;  %4772 = vmatprep.mubr.bf16.mxu1 %v9073_v59  ;;  %v3772_v22 = vrot.slane %v9036_v25, 5  ;;  %v3401_v51 = vshrl.u32 %v9069_v8, 16  ;;  %v7338_v14 = vld [vmem:[%s10135_s3 + $0x198] sm:$0xff]   ;;  %v3034_v38 = vrot.slane %v3030_v50, 4  ;;  %6943 = vmatprep.subr.bf16.mxu0 %v7337_v36 }
 0x255   : > { %v3041_v41 = vor.u32 %v3039_v28, %v3038_v39  ;;  %v3043_v42 = vrot.slane %v3038_v39, 4  ;;  %v3771_v11 = vrot.slane %v3769_v61, 4  ;;  %4773 = vmatmul.mubr.bf16.gmra.mrb[132].mxu1 %v8950_v17  ;;  %v3240_v25 = vsel %vm8788_vm13, %v3033_v10, %v3239_v62  ;;  %6944 = vmatpush3.bf16.msra.mxu0 %v7338_v14  ;;  %v7341_v36 = vld [vmem:[%s10135_s3 + $0x178] sm:$0xff]  }
 0x256   : > { %v3017_v24 = vrot.slane %v9071_v37, 4  ;;  %v3233_v52 = vsel %vm8788_vm13, %v3016_v5, %v3232_v43  ;;  %v2521_v16 = vmul.f32 %v8746_v3, %v2452_v4  ;;  %3241 = vst [vmem:[#allocation2 + $0x90] sm:$0xf] %v3240_v25  ;;  %v3770_v1 = vsel %vm7540_vm4, %v5949_v12, %v3769_v61  ;;  %6945 = vmatprep.subr.bf16.mxu0 %v7339_v2 }
 0x257   : > { %3234 = vst [vmem:[#allocation2 + $0x84] sm:$0xf] %v3233_v52  ;;  %v3042_v17 = vsel %vm8797_vm14, %v3034_v38, %v3041_v41  ;;  %v3244_v58 = vsel %vm8498_vm8, %v3043_v42, %v3243_v40  ;;  %v3773_v29 = vsel %vm7540_vm4, %v3771_v11, %v3772_v22  ;;  %v9113_v6 = vcombine.low %v9069_v8, %v9090_v46 }
 0x258   : > { %3242 = vst [vmem:[#allocation2 + $0x94] sm:$0xf] %v3042_v17  ;;  %3245 = vst [vmem:[#allocation2 + $0x98] sm:$0x1] %v3244_v58  ;;  %v9108_v48 = vcombine.low %v3770_v1, %v3773_v29  ;;  %v2558_v32 = vadd.f32 %v8758_v54, %v2521_v16  ;;  %v10244_v44 = vshrl.u32 %v8952_v0, 16  ;;  %v10245_v50 = vshll.u32 %v8952_v0, 16  ;;  %6839 = vmatprep.subr.bf16.mxu1 %v7341_v36 }
 0x259   : > { %v3386_v61 = vshll.u32 %v8967_v47, 16  ;;  %v3392_v43 = vrot.slane %v3390_v34, 4  ;;  %v3396_v39 = vshll.u32 %v9098_v45, 16  ;;  %v2473_v12 = vadd.f32 %v8917_v23, %v8721_v30  ;;  %v7342_v30 = vld [vmem:[%s10135_s3 + $0x1a0] sm:$0xff]  }
 0x25a   : > { %v3379_v35 = vrot.slane %v10244_v44, 4  ;;  %v3382_v62 = vrot.slane %v10245_v50, 5  ;;  %4934 = vmatmul.mubr.bf16.gmra.mrb[164].mxu0 %v9108_v48  ;;  %v2590_v28 = vmul.f32 0.01, %v2558_v32  ;;  %v2465_v4 = vadd.f32 %v8927_v49, %v8709_v13 }
 0x25b   : > { %v2476_v10 = vadd.f32 %v8933_v7, %v8723_v33  ;;  %4941 = vmatprep.mubr.bf16.mxu0 %v9113_v6  ;;  %v3388_v40 = vrot.slane %v3386_v61, 5  ;;  %v3398_v34 = vrot.slane %v3396_v39, 5  ;;  %v5950_v22 = vrot.slane %v8952_v0, 9  ;;  %v7343_v7 = vld [vmem:[%s10135_s3 + $0x138] sm:$0xff]   ;;  %v7344_v0 = vld [vmem:[%s10135_s3 + $0x1e8] sm:$0xff]   ;;  %6946 = vmatpush3.bf16.msra.mxu0 %v7342_v30 }
 0x25c   : > { %v3383_v5 = vor.u32 %v3382_v62, %v3379_v35  ;;  %v2622_v13 = vmax.f32 %v2558_v32, %v2590_v28  ;;  %v2526_v23 = vmul.f32 %v8746_v3, %v2473_v12  ;;  %v2524_v33 = vmul.f32 %v8746_v3, %v2465_v4  ;;  %6840 = vmatpush3.bf16.msra.mxu1 %v7343_v7  ;;  %v7346_v62 = vld [vmem:[%s10135_s3 + $0x1f0] sm:$0xff]   ;;  %v3236_v4 = vld [vmem:[#allocation2 + $0x8c] sm:$0x1]  ;;  %v9194_v7 = vld [vmem:[%s10134_s2 + $0x1] ss:$0 sm:$0xff] }
 0x25d   : > { %v2527_v49 = vmul.f32 %v8746_v3, %v2476_v10  ;;  %v3393_v38 = vor.u32 %v3392_v43, %v3388_v40  ;;  %v3776_v41 = vrot.slane %v8967_v47, 5  ;;  %v3779_v42 = vrot.slane %v9098_v45, 5  ;;  %v7345_v3 = vld [vmem:[%s10135_s3 + $0x1a8] sm:$0xff]   ;;  %6947 = vmatprep.subr.bf16.mxu0 %v7344_v0  ;;  %v9171_v12 = vld [vmem:[#allocation2 + $0x30] sm:$0xf] }
 0x25e   : > { %v3384_v14 = vrot.slane %v3383_v5, 4  ;;  %v6118_v11 = vpack.c.bf16 %v2622_v13, %v2622_v13  ;;  %v2563_v25 = vadd.f32 %v8758_v54, %v2526_v23  ;;  %v2561_v52 = vadd.f32 %v8758_v54, %v2524_v33  ;;  %v7348_v23 = vld [vmem:[%s10135_s3 + $0x1f8] sm:$0xff]  }
 0x25f   : > { %v2564_v16 = vadd.f32 %v8758_v54, %v2527_v49  ;;  %v3394_v47 = vrot.slane %v3393_v38, 4  ;;  %v3777_v45 = vsel %vm7540_vm4, %v5950_v22, %v3776_v41  ;;  %v3778_v58 = vrot.slane %v3776_v41, 4  ;;  %6948 = vmatpush3.bf16.msra.mxu0 %v7345_v3 }
 0x260   : > { %v3389_v17 = vsel %vm7549_vm5, %v3384_v14, %v3388_v40  ;;  %v3019_v1 = vshrl.u32 %v6118_v11, 16  ;;  %v3022_v29 = vshll.u32 %v6118_v11, 16  ;;  %v2595_v32 = vmul.f32 0.01, %v2563_v25  ;;  %6949 = vmatprep.subr.bf16.mxu0 %v7346_v62  ;;  %v9198_v14 = vld [vmem:[#allocation2 + $0x34] sm:$0xf] }
 0x261   : > { %v2593_v44 = vmul.f32 0.01, %v2561_v52  ;;  %v3399_v35 = vsel %vm7549_vm5, %v3394_v47, %v3398_v34  ;;  %v2596_v2 = vmul.f32 0.01, %v2564_v16  ;;  %v3780_v54 = vsel %vm7540_vm4, %v3778_v58, %v3779_v42  ;;  %v7347_v34 = vld [vmem:[%s10135_s3 + $0x1b0] sm:$0xff]  }
 0x262   : > { %v2468_v50 = vadd.f32 %v8937_v56, %v8711_v53  ;;  %v3021_v61 = vrot.slane %v3019_v1, 7  ;;  %v9169_v43 = vcombine.low %v3389_v17, %v3399_v35  ;;  %v2627_v39 = vmax.f32 %v2563_v25, %v2595_v32  ;;  %v9179_v53 = vld [vmem:[%s10134_s2] ss:$0 sm:$0xff]  ;;  %v7349_v25 = vld [vmem:[%s10135_s3 + $0x1b8] sm:$0xff]  }
 0x263   : > { %v2625_v28 = vmax.f32 %v2561_v52, %v2593_v44  ;;  %v3404_v10 = vshll.u32 %v9069_v8, 16  ;;  %v2628_v5 = vmax.f32 %v2564_v16, %v2596_v2  ;;  %v9174_v40 = vcombine.low %v3777_v45, %v3780_v54  ;;  %6950 = vmatpush3.bf16.msra.mxu0 %v7347_v34  ;;  %v3253_v45 = vld [vmem:[#allocation2 + $0xa8] sm:$0xf]  ;;  %v3246_v32 = vld [vmem:[#allocation2 + $0x9c] sm:$0xf] }
 0x264   : > { %v2525_v56 = vmul.f32 %v9179_v53, %v2468_v50  ;;  %v3024_v22 = vor.u32 %v3022_v29, %v3021_v61  ;;  %v3026_v36 = vrot.slane %v3021_v61, 4  ;;  %4780 = vmatprep.mubr.bf16.mxu1 %v9169_v43  ;;  %v6123_v30 = vpack.c.bf16 %v2627_v39, %v2627_v39  ;;  %6951 = vmatprep.subr.bf16.mxu0 %v7348_v23  ;;  %v3257_v50 = vld [vmem:[#allocation2 + $0xb0] sm:$0x1]  ;;  %v9219_v39 = vld [vmem:[#allocation2 + $0x2c] sm:$0x1] }
 0x265   : > { %v6121_v13 = vpack.c.bf16 %v2625_v28, %v2625_v28  ;;  %v3414_v33 = vshrl.u32 %v9090_v46, 16  ;;  %v6124_v49 = vpack.c.bf16 %v2628_v5, %v2628_v5  ;;  %4942 = vmatmul.mubr.bf16.gmra.mrb[168].mxu0 %v9174_v40  ;;  %4781 = vmatmul.mubr.bf16.gmra.mrb[136].mxu1 %v8992_v31  ;;  %v3425_v38 = vshrl.u32 %v9171_v12, 16 }
 0x266   : > { %v2562_v0 = vadd.f32 %v9194_v7, %v2525_v56  ;;  %v3025_v41 = vsel %vm8797_vm14, %v3017_v24, %v3024_v22  ;;  %v3237_v42 = vsel %vm8498_vm8, %v3026_v36, %v3236_v4  ;;  %v3062_v3 = vshrl.u32 %v6123_v30, 16 }
 0x267   : > { %v3065_v11 = vshll.u32 %v6123_v30, 16  ;;  %3235 = vst [vmem:[#allocation2 + $0x88] sm:$0xf] %v3025_v41  ;;  %3238 = vst [vmem:[#allocation2 + $0x8c] sm:$0x1] %v3237_v42  ;;  %v3045_v52 = vshrl.u32 %v6121_v13, 16  ;;  %v9212_v58 = vcombine.low %v9171_v12, %v9198_v14  ;;  %6952 = vmatpush3.bf16.msra.mxu0 %v7349_v25  ;;  %v2489_v25 = vadd.f32 %v8969_v9, %v8741_v21 }
 0x268   : > { %v3048_v16 = vshll.u32 %v6121_v13, 16  ;;  %v3070_v17 = vshrl.u32 %v6124_v49, 16  ;;  %v3073_v47 = vshll.u32 %v6124_v49, 16  ;;  %v3064_v37 = vrot.slane %v3062_v3, 7 }
 0x269   : > { %v2594_v24 = vmul.f32 0.01, %v2562_v0  ;;  %v3403_v1 = vrot.slane %v3401_v51, 4  ;;  %v3047_v29 = vrot.slane %v3045_v52, 7  ;;  %v3406_v35 = vrot.slane %v3404_v10, 5  ;;  %4949 = vmatprep.mubr.bf16.mxu0 %v9212_v58  ;;  %v7350_v10 = vld [vmem:[%s10135_s3 + $0x200] sm:$0xff]  }
 0x26a   : > { %v3072_v44 = vrot.slane %v3070_v17, 7  ;;  %v3410_v2 = vshll.u32 %v9090_v46, 16  ;;  %v3067_v54 = vor.u32 %v3065_v11, %v3064_v37  ;;  %v3428_v61 = vshll.u32 %v9171_v12, 16  ;;  %7121 = vmatprep.subr.bf16.mxu1 %v7350_v10 }
 0x26b   : > { %v2626_v62 = vmax.f32 %v2562_v0, %v2594_v24  ;;  %v3416_v28 = vrot.slane %v3414_v33, 4  ;;  %v3068_v4 = vrot.slane %v3064_v37, 4  ;;  %v3050_v5 = vor.u32 %v3048_v16, %v3047_v29  ;;  %v3250_v24 = vld [vmem:[#allocation2 + $0xa4] sm:$0x1] }
 0x26c   : > { %v3075_v51 = vor.u32 %v3073_v47, %v3072_v44  ;;  %v3077_v56 = vrot.slane %v3072_v44, 4  ;;  %v3254_v34 = vsel %vm8788_vm13, %v3067_v54, %v3253_v45  ;;  %v3407_v36 = vor.u32 %v3406_v35, %v3403_v1  ;;  %v9253_v54 = vld [vmem:[#allocation2 + $0x3c] sm:$0xf] }
 0x26d   : > { %v6122_v22 = vpack.c.bf16 %v2626_v62, %v2626_v62  ;;  %v3412_v30 = vrot.slane %v3410_v2, 5  ;;  %3255 = vst [vmem:[#allocation2 + $0xa8] sm:$0xf] %v3254_v34  ;;  %v3247_v13 = vsel %vm8788_vm13, %v3050_v5, %v3246_v32  ;;  %v3420_v49 = vshll.u32 %v9219_v39, 16 }
 0x26e   : > { %v3076_v23 = vsel %vm8797_vm14, %v3068_v4, %v3075_v51  ;;  %v3258_v33 = vsel %vm8498_vm8, %v3077_v56, %v3257_v50  ;;  %v3051_v0 = vrot.slane %v3047_v29, 4  ;;  %3248 = vst [vmem:[#allocation2 + $0x9c] sm:$0xf] %v3247_v13  ;;  %v3408_v42 = vrot.slane %v3407_v36, 4  ;;  %v10246_v56 = vld [vmem:[#allocation4_spill] sm:$0xff] }
 0x26f   : > { %3256 = vst [vmem:[#allocation2 + $0xac] sm:$0xf] %v3076_v23  ;;  %3259 = vst [vmem:[#allocation2 + $0xb0] sm:$0x1] %v3258_v33  ;;  %v3053_v41 = vshrl.u32 %v6122_v22, 16  ;;  %v3417_v3 = vor.u32 %v3416_v28, %v3412_v30  ;;  %v3056_v11 = vshll.u32 %v6122_v22, 16  ;;  %v2481_v52 = vadd.f32 %v8975_v15, %v8735_v19 }
 0x270   : > { %v2492_v16 = vadd.f32 %v8982_v60, %v8748_v20  ;;  %v3413_v47 = vsel %vm7549_vm5, %v3408_v42, %v3412_v30  ;;  %v3422_v45 = vrot.slane %v3420_v49, 5  ;;  %v2530_v1 = vmul.f32 %v9179_v53, %v2489_v25  ;;  %v9274_v49 = vld [vmem:[#allocation2 + $0x38] sm:$0x1] }
 0x271   : > { %v3055_v17 = vrot.slane %v3053_v41, 7  ;;  %v3418_v37 = vrot.slane %v3417_v3, 4  ;;  %v2528_v29 = vmul.f32 %v9179_v53, %v2481_v52  ;;  %v3783_v21 = vrot.slane %v9090_v46, 5 }
 0x272   : > { %v2531_v32 = vmul.f32 %v9179_v53, %v2492_v16  ;;  %v5951_v15 = vrot.slane %v9069_v8, 9  ;;  %v2567_v44 = vadd.f32 %v9194_v7, %v2530_v1  ;;  %v3786_v28 = vrot.slane %v9219_v39, 5  ;;  %v9260_v8 = vld [vmem:[#allocation2 + $0x40] sm:$0xf] }
 0x273   : > { %v3058_v9 = vor.u32 %v3056_v11, %v3055_v17  ;;  %v3060_v19 = vrot.slane %v3055_v17, 4  ;;  %v3423_v20 = vsel %vm7549_vm5, %v3418_v37, %v3422_v45  ;;  %v2565_v35 = vadd.f32 %v9194_v7, %v2528_v29 }
 0x274   : > { %v9248_v60 = vcombine.low %v3413_v47, %v3423_v20  ;;  %v2568_v2 = vadd.f32 %v9194_v7, %v2531_v32  ;;  %v3785_v62 = vrot.slane %v3783_v21, 4  ;;  %v2599_v4 = vmul.f32 0.01, %v2567_v44 }
 0x275   : > { %v3059_v46 = vsel %vm8797_vm14, %v3051_v0, %v3058_v9  ;;  %v3251_v50 = vsel %vm8498_vm8, %v3060_v19, %v3250_v24  ;;  %v2597_v5 = vmul.f32 0.01, %v2565_v35  ;;  %v2484_v10 = vadd.f32 %v8994_v63, %v10246_v56  ;;  %v3267_v9 = vld [vmem:[#allocation2 + $0xc0] sm:$0xf] }
 0x276   : > { %3249 = vst [vmem:[#allocation2 + $0xa0] sm:$0xf] %v3059_v46  ;;  %3252 = vst [vmem:[#allocation2 + $0xa4] sm:$0x1] %v3251_v50  ;;  %4788 = vmatprep.mubr.bf16.mxu1 %v9248_v60  ;;  %v2600_v51 = vmul.f32 0.01, %v2568_v2  ;;  %v3784_v22 = vsel %vm7540_vm4, %v5951_v15, %v3783_v21  ;;  %v3787_v39 = vsel %vm7540_vm4, %v3785_v62, %v3786_v28 }
 0x277   : > { %v3438_v34 = vshrl.u32 %v9198_v14, 16  ;;  %4789 = vmatmul.mubr.bf16.gmra.mrb[140].mxu1 %v9113_v6  ;;  %v3449_v36 = vshrl.u32 %v9253_v54, 16  ;;  %v2631_v30 = vmax.f32 %v2567_v44, %v2599_v4  ;;  %v2629_v13 = vmax.f32 %v2565_v35, %v2597_v5  ;;  %v3260_v15 = vld [vmem:[#allocation2 + $0xb4] sm:$0xf]  ;;  %v3271_v28 = vld [vmem:[#allocation2 + $0xc8] sm:$0x1] }
 0x278   : > { %v2632_v23 = vmax.f32 %v2568_v2, %v2600_v51  ;;  %v9272_v33 = vcombine.low %v3784_v22, %v3787_v39  ;;  %v2529_v63 = vmul.f32 %v9179_v53, %v2484_v10  ;;  %v9279_v0 = vcombine.low %v9253_v54, %v9260_v8 }
 0x279   : > { %v3427_v41 = vrot.slane %v3425_v38, 4  ;;  %v3430_v42 = vrot.slane %v3428_v61, 5  ;;  %v6127_v3 = vpack.c.bf16 %v2631_v30, %v2631_v30  ;;  %v6125_v11 = vpack.c.bf16 %v2629_v13, %v2629_v13 }
 0x27a   : > { %v6128_v25 = vpack.c.bf16 %v2632_v23, %v2632_v23  ;;  %4950 = vmatmul.mubr.bf16.gmra.mrb[172].mxu0 %v9272_v33  ;;  %v3434_v52 = vshll.u32 %v9198_v14, 16  ;;  %v2566_v16 = vadd.f32 %v9194_v7, %v2529_v63  ;;  %v3452_v53 = vshll.u32 %v9253_v54, 16  ;;  %v9298_v23 = vld [vmem:[#allocation2 + $0x48] sm:$0xf]  ;;  %v9300_v63 = vld [vmem:[#allocation2 + $0x4c] sm:$0xf] }
 0x27b   : > { %4957 = vmatprep.mubr.bf16.mxu0 %v9279_v0  ;;  %v3431_v17 = vor.u32 %v3430_v42, %v3427_v41  ;;  %v3444_v47 = vshll.u32 %v9274_v49, 16  ;;  %v3096_v38 = vshrl.u32 %v6127_v3, 16  ;;  %v3079_v37 = vshrl.u32 %v6125_v11, 16 }
 0x27c   : > { %v3462_v61 = vshrl.u32 %v9260_v8, 16  ;;  %v3440_v45 = vrot.slane %v3438_v34, 4  ;;  %v3099_v24 = vshll.u32 %v6127_v3, 16  ;;  %v3082_v1 = vshll.u32 %v6125_v11, 16 }
 0x27d   : > { %v3104_v29 = vshrl.u32 %v6128_v25, 16  ;;  %v2598_v32 = vmul.f32 0.01, %v2566_v16  ;;  %v3098_v21 = vrot.slane %v3096_v38, 7  ;;  %v3081_v19 = vrot.slane %v3079_v37, 7 }
 0x27e   : > { %v3107_v7 = vshll.u32 %v6128_v25, 16  ;;  %v3436_v20 = vrot.slane %v3434_v52, 5  ;;  %v3432_v2 = vrot.slane %v3431_v17, 4  ;;  %v3446_v46 = vrot.slane %v3444_v47, 5  ;;  %v3291_v38 = vld [vmem:[#allocation2 + $0x44] sm:$0x1] }
 0x27f   : > { %v3106_v44 = vrot.slane %v3104_v29, 7  ;;  %v2630_v35 = vmax.f32 %v2566_v16, %v2598_v32  ;;  %v3101_v50 = vor.u32 %v3099_v24, %v3098_v21  ;;  %v3084_v62 = vor.u32 %v3082_v1, %v3081_v19  ;;  %v3264_v37 = vld [vmem:[#allocation2 + $0xbc] sm:$0x1] }
 0x280   : > { %v5952_v4 = vrot.slane %v9171_v12, 9  ;;  %v3790_v5 = vrot.slane %v9198_v14, 5  ;;  %v3102_v51 = vrot.slane %v3098_v21, 4  ;;  %v3085_v39 = vrot.slane %v3081_v19, 4 }
 0x281   : > { %v3109_v56 = vor.u32 %v3107_v7, %v3106_v44  ;;  %v3111_v10 = vrot.slane %v3106_v44, 4  ;;  %v6126_v34 = vpack.c.bf16 %v2630_v35, %v2630_v35  ;;  %v3268_v22 = vsel %vm8788_vm13, %v3101_v50, %v3267_v9 }
 0x282   : > { %v3261_v30 = vsel %vm8788_vm13, %v3084_v62, %v3260_v15  ;;  %v3441_v13 = vor.u32 %v3440_v45, %v3436_v20  ;;  %3269 = vst [vmem:[#allocation2 + $0xc0] sm:$0xf] %v3268_v22  ;;  %v3437_v42 = vsel %vm7549_vm5, %v3432_v2, %v3436_v20  ;;  %v3791_v3 = vsel %vm7540_vm4, %v5952_v4, %v3790_v5  ;;  %v9335_v2 = vld [vmem:[#allocation2 + $0x54] sm:$0xf] }
 0x283   : > { %3262 = vst [vmem:[#allocation2 + $0xb4] sm:$0xf] %v3261_v30  ;;  %v3110_v12 = vsel %vm8797_vm14, %v3102_v51, %v3109_v56  ;;  %v3272_v14 = vsel %vm8498_vm8, %v3111_v10, %v3271_v28  ;;  %v3087_v41 = vshrl.u32 %v6126_v34, 16  ;;  %v3792_v11 = vrot.slane %v3790_v5, 4  ;;  %v3294_v28 = vld [vmem:[#allocation2 + $0x50] sm:$0x1] }
 0x284   : > { %3270 = vst [vmem:[#allocation2 + $0xc4] sm:$0xf] %v3110_v12  ;;  %3273 = vst [vmem:[#allocation2 + $0xc8] sm:$0x1] %v3272_v14  ;;  %v3442_v26 = vrot.slane %v3441_v13, 4  ;;  %v3793_v25 = vrot.slane %v9274_v49, 5  ;;  %v9314_v47 = vcombine.low %v9298_v23, %v9300_v63 }
 0x285   : > { %v3089_v52 = vrot.slane %v3087_v41, 7  ;;  %v3090_v16 = vshll.u32 %v6126_v34, 16  ;;  %v3473_v17 = vshrl.u32 %v9298_v23, 16  ;;  %v3451_v1 = vrot.slane %v3449_v36, 4  ;;  %v9346_v10 = vld [vmem:[#allocation2 + $0x58] sm:$0xf] }
 0x286   : > { %v3447_v45 = vsel %vm7549_vm5, %v3442_v26, %v3446_v46  ;;  %v3794_v24 = vsel %vm7540_vm4, %v3792_v11, %v3793_v25  ;;  %v3454_v49 = vrot.slane %v3452_v53, 5  ;;  %v3458_v7 = vshll.u32 %v9260_v8, 16 }
 0x287   : > { %v3092_v29 = vor.u32 %v3090_v16, %v3089_v52  ;;  %v3094_v32 = vrot.slane %v3089_v52, 4  ;;  %v9322_v21 = vcombine.low %v3437_v42, %v3447_v45  ;;  %v9324_v9 = vcombine.low %v3791_v3, %v3794_v24  ;;  %v9353_v3 = vld [vmem:[#allocation2 + $0x60] sm:$0xf] }
 0x288   : > { %v3455_v19 = vor.u32 %v3454_v49, %v3451_v1  ;;  %v3464_v20 = vrot.slane %v3462_v61, 4  ;;  %v3468_v15 = vshll.u32 %v3291_v38, 16  ;;  %v3476_v36 = vshll.u32 %v9298_v23, 16 }
 0x289   : > { %v3093_v44 = vsel %vm8797_vm14, %v3085_v39, %v3092_v29  ;;  %v3265_v35 = vsel %vm8498_vm8, %v3094_v32, %v3264_v37  ;;  %4796 = vmatprep.mubr.bf16.mxu1 %v9322_v21  ;;  %4958 = vmatmul.mubr.bf16.gmra.mrb[176].mxu0 %v9324_v9  ;;  %v3797_v53 = vrot.slane %v9260_v8, 5  ;;  %v3486_v18 = vshrl.u32 %v9300_v63, 16  ;;  %v3297_v29 = vld [vmem:[#allocation2 + $0x5c] sm:$0x1] }
 0x28a   : > { %3263 = vst [vmem:[#allocation2 + $0xb8] sm:$0xf] %v3093_v44  ;;  %3266 = vst [vmem:[#allocation2 + $0xbc] sm:$0x1] %v3265_v35  ;;  %4797 = vmatmul.mubr.bf16.gmra.mrb[144].mxu1 %v9212_v58  ;;  %4965 = vmatprep.mubr.bf16.mxu0 %v9314_v47  ;;  %v3460_v27 = vrot.slane %v3458_v7, 5  ;;  %v5953_v61 = vrot.slane %v9253_v54, 9  ;;  %v9362_v16 = vcombine.low %v9335_v2, %v9346_v10 }
 0x28b   : > { %v3456_v46 = vrot.slane %v3455_v19, 4  ;;  %v3799_v50 = vrot.slane %v3797_v53, 4  ;;  %v3800_v62 = vrot.slane %v3291_v38, 5  ;;  %v3470_v5 = vrot.slane %v3468_v15, 5  ;;  %v9373_v7 = vld [vmem:[#allocation2 + $0x64] sm:$0xf] }
 0x28c   : > { %v3465_v4 = vor.u32 %v3464_v20, %v3460_v27  ;;  %v3798_v8 = vsel %vm7540_vm4, %v5953_v61, %v3797_v53  ;;  %v3497_v51 = vshrl.u32 %v9335_v2, 16  ;;  %v3475_v34 = vrot.slane %v3473_v17, 4 }
 0x28d   : > { %v3801_v56 = vsel %vm7540_vm4, %v3799_v50, %v3800_v62  ;;  %v3478_v22 = vrot.slane %v3476_v36, 5  ;;  %v3482_v54 = vshll.u32 %v9300_v63, 16  ;;  %v3500_v30 = vshll.u32 %v9335_v2, 16 }
 0x28e   : > { %v3466_v39 = vrot.slane %v3465_v4, 4  ;;  %v3488_v13 = vrot.slane %v3486_v18, 4  ;;  %v3492_v12 = vshll.u32 %v3294_v28, 16  ;;  %v9350_v14 = vcombine.low %v3798_v8, %v3801_v56  ;;  %v9390_v8 = vld [vmem:[#allocation2 + $0x6c] sm:$0xf] }
 0x28f   : > { %v3479_v41 = vor.u32 %v3478_v22, %v3475_v34  ;;  %v3484_v42 = vrot.slane %v3482_v54, 5  ;;  %v3804_v26 = vrot.slane %v9300_v63, 5  ;;  %v3461_v11 = vsel %vm7549_vm5, %v3456_v46, %v3460_v27  ;;  %v3300_v54 = vld [vmem:[#allocation2 + $0x68] sm:$0x1] }
 0x290   : > { %v3471_v25 = vsel %vm7549_vm5, %v3466_v39, %v3470_v5  ;;  %v3510_v52 = vshrl.u32 %v9346_v10, 16  ;;  %v5954_v37 = vrot.slane %v9298_v23, 9  ;;  %v3494_v45 = vrot.slane %v3492_v12, 5 }
 0x291   : > { %v9364_v17 = vcombine.low %v3461_v11, %v3471_v25  ;;  %4966 = vmatmul.mubr.bf16.gmra.mrb[180].mxu0 %v9350_v14  ;;  %v3480_v38 = vrot.slane %v3479_v41, 4  ;;  %v3489_v63 = vor.u32 %v3488_v13, %v3484_v42  ;;  %v3806_v24 = vrot.slane %v3804_v26, 4  ;;  %v9400_v41 = vld [vmem:[#allocation2 + $0x70] sm:$0xf] }
 0x292   : > { %4973 = vmatprep.mubr.bf16.mxu0 %v9362_v16  ;;  %v3807_v1 = vrot.slane %v3294_v28, 5  ;;  %v3521_v49 = vshrl.u32 %v9353_v3, 16  ;;  %v3805_v19 = vsel %vm7540_vm4, %v5954_v37, %v3804_v26  ;;  %v3499_v20 = vrot.slane %v3497_v51, 4 }
 0x293   : > { %4804 = vmatprep.mubr.bf16.mxu1 %v9364_v17  ;;  %v3490_v32 = vrot.slane %v3489_v63, 4  ;;  %v3502_v15 = vrot.slane %v3500_v30, 5  ;;  %v3524_v44 = vshll.u32 %v9353_v3, 16  ;;  %v3506_v35 = vshll.u32 %v9346_v10, 16 }
 0x294   : > { %4805 = vmatmul.mubr.bf16.gmra.mrb[148].mxu1 %v9279_v0  ;;  %v3808_v23 = vsel %vm7540_vm4, %v3806_v24, %v3807_v1  ;;  %v3512_v36 = vrot.slane %v3510_v52, 4  ;;  %v3485_v53 = vsel %vm7549_vm5, %v3480_v38, %v3484_v42  ;;  %v3516_v61 = vshll.u32 %v3297_v29, 16 }
 0x295   : > { %v3495_v18 = vsel %vm7549_vm5, %v3490_v32, %v3494_v45  ;;  %v3503_v27 = vor.u32 %v3502_v15, %v3499_v20  ;;  %v3534_v50 = vshrl.u32 %v9373_v7, 16  ;;  %v3508_v62 = vrot.slane %v3506_v35, 5  ;;  %v9422_v15 = vld [vmem:[#allocation2 + $0x78] sm:$0xf] }
 0x296   : > { %v9384_v46 = vcombine.low %v3485_v53, %v3495_v18  ;;  %v3811_v28 = vrot.slane %v9346_v10, 5  ;;  %v9388_v4 = vcombine.low %v3805_v19, %v3808_v23  ;;  %v9395_v51 = vcombine.low %v9353_v3, %v9373_v7  ;;  %v3303_v23 = vld [vmem:[#allocation2 + $0x74] sm:$0x1] }
 0x297   : > { %v3504_v5 = vrot.slane %v3503_v27, 4  ;;  %v3513_v56 = vor.u32 %v3512_v36, %v3508_v62  ;;  %v5955_v34 = vrot.slane %v9335_v2, 9  ;;  %v3518_v39 = vrot.slane %v3516_v61, 5  ;;  %v9427_v27 = vld [vmem:[#allocation2 + $0x7c] sm:$0xf] }
 0x298   : > { %4812 = vmatprep.mubr.bf16.mxu1 %v9384_v46  ;;  %10247 = vst [vmem:[#allocation5_spill] sm:$0xff] %v9395_v51  ;;  %v3813_v22 = vrot.slane %v3811_v28, 4  ;;  %v3814_v10 = vrot.slane %v3297_v29, 5  ;;  %v3523_v30 = vrot.slane %v3521_v49, 4  ;;  %v3526_v13 = vrot.slane %v3524_v44, 5 }
 0x299   : > { %4974 = vmatmul.mubr.bf16.gmra.mrb[184].mxu0 %v9388_v4  ;;  %v3514_v12 = vrot.slane %v3513_v56, 4  ;;  %v3545_v42 = vshrl.u32 %v9390_v8, 16  ;;  %v3530_v26 = vshll.u32 %v9373_v7, 16  ;;  %v3536_v11 = vrot.slane %v3534_v50, 4 }
 0x29a   : > { %4981 = vmatprep.mubr.bf16.mxu0 %v9395_v51  ;;  %v3509_v2 = vsel %vm7549_vm5, %v3504_v5, %v3508_v62  ;;  %v3548_v25 = vshll.u32 %v9390_v8, 16  ;;  %v3527_v52 = vor.u32 %v3526_v13, %v3523_v30  ;;  %v3540_v38 = vshll.u32 %v3300_v54, 16 }
 0x29b   : > { %v3519_v63 = vsel %vm7549_vm5, %v3514_v12, %v3518_v39  ;;  %v3815_v37 = vsel %vm7540_vm4, %v3813_v22, %v3814_v10  ;;  %v3532_v45 = vrot.slane %v3530_v26, 5  ;;  %v3818_v24 = vrot.slane %v9373_v7, 5 }
 0x29c   : > { %4813 = vmatmul.mubr.bf16.gmra.mrb[152].mxu1 %v9314_v47  ;;  %v9413_v1 = vcombine.low %v3509_v2, %v3519_v63  ;;  %v3558_v49 = vshrl.u32 %v9400_v41, 16  ;;  %v3812_v29 = vsel %vm7540_vm4, %v5955_v34, %v3811_v28  ;;  %v9420_v32 = vcombine.low %v9390_v8, %v9400_v41 }
 0x29d   : > { %v3528_v19 = vrot.slane %v3527_v52, 4  ;;  %v3537_v20 = vor.u32 %v3536_v11, %v3532_v45  ;;  %v9425_v44 = vcombine.low %v3812_v29, %v3815_v37  ;;  %v3542_v7 = vrot.slane %v3540_v38, 5  ;;  %v9451_v38 = vld [vmem:[#allocation2 + $0x88] sm:$0xf] }
 0x29e   : > { %10248 = vst [vmem:[#allocation3_spill] sm:$0xff] %v9420_v32  ;;  %4820 = vmatprep.mubr.bf16.mxu1 %v9413_v1  ;;  %v3821_v35 = vrot.slane %v3300_v54, 5  ;;  %v3547_v36 = vrot.slane %v3545_v42, 4  ;;  %v3820_v18 = vrot.slane %v3818_v24, 4  ;;  %v3550_v61 = vrot.slane %v3548_v25, 5 }
 0x29f   : > { %10249 = vst [vmem:[#allocation7_spill] sm:$0xff] %v9425_v44  ;;  %v3538_v53 = vrot.slane %v3537_v20, 4  ;;  %v3554_v50 = vshll.u32 %v9400_v41, 16  ;;  %v3569_v62 = vshrl.u32 %v9422_v15, 16  ;;  %v3572_v28 = vshll.u32 %v9422_v15, 16 }
 0x2a0   : > { %v3560_v5 = vrot.slane %v3558_v49, 4  ;;  %v3564_v56 = vshll.u32 %v3303_v23, 16  ;;  %v3533_v34 = vsel %vm7549_vm5, %v3528_v19, %v3532_v45  ;;  %v3551_v54 = vor.u32 %v3550_v61, %v3547_v36  ;;  %v9449_v25 = vld [vmem:[#allocation2 + $0x84] sm:$0xf]  ;;  %v3306_v49 = vld [vmem:[#allocation2 + $0x80] sm:$0x1] }
 0x2a1   : > { %4982 = vmatmul.mubr.bf16.gmra.mrb[188].mxu0 %v9425_v44  ;;  %v3543_v22 = vsel %vm7549_vm5, %v3538_v53, %v3542_v7  ;;  %v3556_v39 = vrot.slane %v3554_v50, 5  ;;  %v5956_v30 = vrot.slane %v9353_v3, 9  ;;  %v3582_v13 = vshrl.u32 %v9427_v27, 16 }
 0x2a2   : > { %4989 = vmatprep.mubr.bf16.mxu0 %v9420_v32  ;;  %v9438_v10 = vcombine.low %v3533_v34, %v3543_v22  ;;  %v3822_v12 = vsel %vm7540_vm4, %v3820_v18, %v3821_v35  ;;  %v3825_v26 = vrot.slane %v9400_v41, 5  ;;  %v3566_v2 = vrot.slane %v3564_v56, 5 }
 0x2a3   : > { %v3561_v42 = vor.u32 %v3560_v5, %v3556_v39  ;;  %v3819_v11 = vsel %vm7540_vm4, %v5956_v30, %v3818_v24  ;;  %v3552_v52 = vrot.slane %v3551_v54, 4  ;;  %v3571_v63 = vrot.slane %v3569_v62, 4 }
 0x2a4   : > { %4821 = vmatmul.mubr.bf16.gmra.mrb[156].mxu1 %v9362_v16  ;;  %v3574_v37 = vrot.slane %v3572_v28, 5  ;;  %v9453_v45 = vcombine.low %v3819_v11, %v3822_v12  ;;  %v3578_v29 = vshll.u32 %v9427_v27, 16  ;;  %v3584_v41 = vrot.slane %v3582_v13, 4 }
 0x2a5   : > { %4828 = vmatprep.mubr.bf16.mxu1 %v9438_v10  ;;  %v3562_v3 = vrot.slane %v3561_v42, 4  ;;  %v9458_v19 = vcombine.low %v9422_v15, %v9427_v27  ;;  %v3827_v20 = vrot.slane %v3825_v26, 4  ;;  %v3828_v7 = vrot.slane %v3303_v23, 5  ;;  %v9482_v42 = vld [vmem:[#allocation2 + $0x90] sm:$0xf] }
 0x2a6   : > { %10250 = vst [vmem:[#allocation9_spill] sm:$0xff] %v9453_v45  ;;  %v3593_v35 = vshrl.u32 %v9449_v25, 16  ;;  %v3606_v36 = vshrl.u32 %v9451_v38, 16  ;;  %v3580_v53 = vrot.slane %v3578_v29, 5  ;;  %v3557_v18 = vsel %vm7549_vm5, %v3552_v52, %v3556_v39  ;;  %v9479_v39 = vld [vmem:[#allocation2 + $0x94] sm:$0xf] }
 0x2a7   : > { %10251 = vst [vmem:[#allocation6_spill] sm:$0xff] %v9458_v19  ;;  %v3567_v24 = vsel %vm7549_vm5, %v3562_v3, %v3566_v2  ;;  %v3596_v61 = vshll.u32 %v9449_v25, 16  ;;  %v3575_v50 = vor.u32 %v3574_v37, %v3571_v63  ;;  %v3588_v62 = vshll.u32 %v3306_v49, 16 }
 0x2a8   : > { %v9469_v28 = vcombine.low %v3557_v18, %v3567_v24  ;;  %v5957_v5 = vrot.slane %v9390_v8, 9  ;;  %v3585_v56 = vor.u32 %v3584_v41, %v3580_v53  ;;  %v3829_v23 = vsel %vm7540_vm4, %v3827_v20, %v3828_v7 }
 0x2a9   : > { %4990 = vmatmul.mubr.bf16.gmra.mrb[192].mxu0 %v9453_v45  ;;  %v3832_v34 = vrot.slane %v9427_v27, 5  ;;  %v3602_v30 = vshll.u32 %v9451_v38, 16  ;;  %v3608_v13 = vrot.slane %v3606_v36, 4  ;;  %v3576_v8 = vrot.slane %v3575_v50, 4  ;;  %v3309_v27 = vld [vmem:[#allocation2 + $0x8c] sm:$0x1] }
 0x2aa   : > { %4997 = vmatprep.mubr.bf16.mxu0 %v9458_v19  ;;  %10252 = vst [vmem:[#allocation10_spill] sm:$0xff] %v9469_v28  ;;  %v3826_v22 = vsel %vm7540_vm4, %v5957_v5, %v3825_v26  ;;  %v3586_v54 = vrot.slane %v3585_v56, 4  ;;  %v3590_v12 = vrot.slane %v3588_v62, 5  ;;  %v3595_v11 = vrot.slane %v3593_v35, 4 }
 0x2ab   : > { %v3598_v2 = vrot.slane %v3596_v61, 5  ;;  %v9484_v52 = vcombine.low %v3826_v22, %v3829_v23  ;;  %v3604_v3 = vrot.slane %v3602_v30, 5  ;;  %v9488_v63 = vcombine.low %v9449_v25, %v9451_v38  ;;  %v9510_v22 = vld [vmem:[#allocation2 + $0xa0] sm:$0xf]  ;;  %v9514_v30 = vld [vmem:[#allocation2 + $0x9c] sm:$0xf] }
 0x2ac   : > { %4829 = vmatmul.mubr.bf16.gmra.mrb[160].mxu1 %v9395_v51  ;;  %v3591_v26 = vsel %vm7549_vm5, %v3586_v54, %v3590_v12  ;;  %v3834_v37 = vrot.slane %v3832_v34, 4  ;;  %v3630_v29 = vshrl.u32 %v9479_v39, 16  ;;  %v3835_v41 = vrot.slane %v3306_v49, 5 }
 0x2ad   : > { %4836 = vmatprep.mubr.bf16.mxu1 %v9469_v28  ;;  %10253 = vst [vmem:[#allocation12_spill] sm:$0xff] %v9484_v52  ;;  %10254 = vst [vmem:[#allocation8_spill] sm:$0xff] %v9488_v63  ;;  %v3617_v24 = vshrl.u32 %v9482_v42, 16  ;;  %v3609_v20 = vor.u32 %v3608_v13, %v3604_v3  ;;  %v3581_v7 = vsel %vm7549_vm5, %v3576_v8, %v3580_v53  ;;  %v3620_v35 = vshll.u32 %v9482_v42, 16 }
 0x2ae   : > { %v3599_v36 = vor.u32 %v3598_v2, %v3595_v11  ;;  %v3612_v18 = vshll.u32 %v3309_v27, 16  ;;  %v9499_v61 = vcombine.low %v3581_v7, %v3591_v26  ;;  %v5958_v50 = vrot.slane %v9422_v15, 9  ;;  %v3312_v26 = vld [vmem:[#allocation2 + $0x98] sm:$0x1] }
 0x2af   : > { %v3839_v62 = vrot.slane %v9451_v38, 5  ;;  %v3626_v49 = vshll.u32 %v9479_v39, 16  ;;  %v3836_v5 = vsel %vm7540_vm4, %v3834_v37, %v3835_v41  ;;  %v3610_v56 = vrot.slane %v3609_v20, 4 }
 0x2b0   : > { %10255 = vst [vmem:[#allocation13_spill] sm:$0xff] %v9499_v61  ;;  %v3632_v23 = vrot.slane %v3630_v29, 4  ;;  %v3833_v53 = vsel %vm7540_vm4, %v5958_v50, %v3832_v34  ;;  %v3600_v15 = vrot.slane %v3599_v36, 4  ;;  %v3614_v38 = vrot.slane %v3612_v18, 5 }
 0x2b1   : > { %4998 = vmatmul.mubr.bf16.gmra.mrb[196].mxu0 %v9484_v52  ;;  %v9512_v54 = vrot.slane %v3626_v49, 5  ;;  %v3619_v13 = vrot.slane %v3617_v24, 4  ;;  %v3622_v8 = vrot.slane %v3620_v35, 5  ;;  %v9516_v12 = vcombine.low %v3833_v53, %v3836_v5  ;;  %v9539_v5 = vld [vmem:[#allocation2 + $0xac] sm:$0xf] }
 0x2b2   : > { %5005 = vmatprep.mubr.bf16.mxu0 %v9488_v63  ;;  %v9520_v11 = vcombine.low %v9482_v42, %v9479_v39  ;;  %v3841_v2 = vrot.slane %v3839_v62, 4  ;;  %v3615_v34 = vsel %vm7549_vm5, %v3610_v56, %v3614_v38  ;;  %v3654_v37 = vshrl.u32 %v9510_v22, 16  ;;  %v9542_v53 = vld [vmem:[#allocation2 + $0xa8] sm:$0xf] }
 0x2b3   : > { %10256 = vst [vmem:[#allocation14_spill] sm:$0xff] %v9516_v12  ;;  %v3633_v29 = vor.u32 %v3632_v23, %v9512_v54  ;;  %v3846_v41 = vrot.slane %v9479_v39, 5  ;;  %v3842_v24 = vrot.slane %v3309_v27, 5  ;;  %v3641_v20 = vshrl.u32 %v9514_v30, 16 }
 0x2b4   : > { %4837 = vmatmul.mubr.bf16.gmra.mrb[164].mxu1 %v9420_v32  ;;  %10257 = vst [vmem:[#allocation11_spill] sm:$0xff] %v9520_v11  ;;  %v3644_v7 = vshll.u32 %v9514_v30, 16  ;;  %v3650_v35 = vshll.u32 %v9510_v22, 16  ;;  %v3605_v36 = vsel %vm7549_vm5, %v3600_v15, %v3604_v3  ;;  %v3623_v18 = vor.u32 %v3622_v8, %v3619_v13  ;;  %v6617_v15 = vpop.f32.mrb[128].mxu1  ;;  %v3315_v13 = vld [vmem:[#allocation2 + $0xa4] sm:$0x1] }
 0x2b5   : > { %4844 = vmatprep.mubr.bf16.mxu1 %v9499_v61  ;;  %v3636_v50 = vshll.u32 %v3312_v26, 16  ;;  %v9534_v49 = vcombine.low %v3605_v36, %v3615_v34  ;;  %v5959_v39 = vrot.slane %v9449_v25, 9  ;;  %v3843_v27 = vsel %vm7540_vm4, %v3841_v2, %v3842_v24  ;;  %v6618_v34 = vpop.f32.mrb[129].mxu1 }
 0x2b6   : > { %v3634_v56 = vrot.slane %v3633_v29, 4  ;;  %v3848_v23 = vrot.slane %v3846_v41, 4  ;;  %v9544_v38 = vrot.slane %v3650_v35, 5  ;;  %v3656_v3 = vrot.slane %v3654_v37, 4 }
 0x2b7   : > { %10258 = vst [vmem:[#allocation16_spill] sm:$0xff] %v9534_v49  ;;  %v3840_v25 = vsel %vm7540_vm4, %v5959_v39, %v3839_v62  ;;  %v3643_v8 = vrot.slane %v3641_v20, 4  ;;  %v3646_v2 = vrot.slane %v3644_v7, 5  ;;  %v3624_v24 = vrot.slane %v3623_v18, 4 }
 0x2b8   : > { %v3638_v36 = vrot.slane %v3636_v50, 5  ;;  %v3853_v29 = vrot.slane %v9510_v22, 5  ;;  %v9550_v52 = vcombine.low %v3840_v25, %v3843_v27  ;;  %v9554_v37 = vcombine.low %v9514_v30, %v9510_v22 }
 0x2b9   : > { %5006 = vmatmul.mubr.bf16.gmra.mrb[200].mxu0 %v9516_v12  ;;  %v3849_v12 = vrot.slane %v3312_v26, 5  ;;  %v5960_v35 = vrot.slane %v9482_v42, 9  ;;  %v3678_v62 = vshrl.u32 %v9539_v5, 16  ;;  %v3657_v7 = vor.u32 %v3656_v3, %v9544_v38  ;;  %v9573_v3 = vld [vmem:[#allocation2 + $0xb4] sm:$0xf] }
 0x2ba   : > { %5013 = vmatprep.mubr.bf16.mxu0 %v9520_v11  ;;  %10259 = vst [vmem:[#allocation17_spill] sm:$0xff] %v9550_v52  ;;  %v3639_v20 = vsel %vm7549_vm5, %v3634_v56, %v3638_v36  ;;  %v3674_v18 = vshll.u32 %v9539_v5, 16  ;;  %v3665_v22 = vshrl.u32 %v9542_v53, 16  ;;  %v3647_v50 = vor.u32 %v3646_v2, %v3643_v8 }
 0x2bb   : > { %v3850_v26 = vsel %vm7540_vm4, %v3848_v23, %v3849_v12  ;;  %v3660_v27 = vshll.u32 %v3315_v13, 16  ;;  %v3629_v42 = vsel %vm7549_vm5, %v3624_v24, %v9512_v54  ;;  %v3847_v56 = vsel %vm7540_vm4, %v5960_v35, %v3846_v41  ;;  %v9586_v54 = vld [vmem:[#allocation2 + $0xc4] sm:$0xf]  ;;  %v9589_v35 = vld [vmem:[#allocation2 + $0xb8] sm:$0xf] }
 0x2bc   : > { %4845 = vmatmul.mubr.bf16.gmra.mrb[168].mxu1 %v9458_v19  ;;  %v6620_v19 = vpop.f32.mrb[130].mxu1  ;;  %v3668_v12 = vshll.u32 %v9542_v53, 16  ;;  %v3855_v23 = vrot.slane %v3853_v29, 4  ;;  %v9575_v25 = vcombine.low %v3629_v42, %v3639_v20  ;;  %v9577_v36 = vcombine.low %v3847_v56, %v3850_v26 }
 0x2bd   : > { %4852 = vmatprep.mubr.bf16.mxu1 %v9534_v49  ;;  %v6621_v39 = vpop.f32.mrb[131].mxu1  ;;  %v9581_v8 = vcombine.low %v9542_v53, %v9539_v5  ;;  %v5961_v2 = vrot.slane %v9514_v30, 9  ;;  %v3658_v41 = vrot.slane %v3657_v7, 4  ;;  %v3856_v24 = vrot.slane %v3315_v13, 5 }
 0x2be   : > { %10260 = vst [vmem:[#allocation15_spill] sm:$0xff] %v9575_v25  ;;  %10261 = vst [vmem:[#allocation18_spill] sm:$0xff] %v9577_v36  ;;  %v9591_v20 = vrot.slane %v3674_v18, 5  ;;  %v3680_v26 = vrot.slane %v3678_v62, 4  ;;  %v3648_v42 = vrot.slane %v3647_v50, 4  ;;  %v3662_v56 = vrot.slane %v3660_v27, 5 }
 0x2bf   : > { %v3854_v30 = vsel %vm7540_vm4, %v5961_v2, %v3853_v29  ;;  %v3689_v49 = vshrl.u32 %v9573_v3, 16  ;;  %v3857_v61 = vsel %vm7540_vm4, %v3855_v23, %v3856_v24  ;;  %v3667_v13 = vrot.slane %v3665_v22, 4 }
 0x2c0   : > { %v3670_v7 = vrot.slane %v3668_v12, 5  ;;  %v3692_v62 = vshll.u32 %v9573_v3, 16  ;;  %v3886_v27 = vshrl.u32 %v9586_v54, 16  ;;  %v3663_v29 = vsel %vm7549_vm5, %v3658_v41, %v3662_v56  ;;  %v3324_v56 = vld [vmem:[#allocation2 + $0xc8] sm:$0x1] }
 0x2c1   : > { %5014 = vmatmul.mubr.bf16.gmra.mrb[204].mxu0 %v9550_v52  ;;  %v9584_v52 = vld [vmem:[#allocation2 + $0xc0] sm:$0xf]  ;;  %v3681_v2 = vor.u32 %v3680_v26, %v9591_v20  ;;  %v3698_v23 = vshll.u32 %v9589_v35, 16  ;;  %v9610_v24 = vadd.f32 %v6618_v34, %v6617_v15  ;;  %v3653_v22 = vsel %vm7549_vm5, %v3648_v42, %v9544_v38 }
 0x2c2   : > { %5021 = vmatprep.mubr.bf16.mxu0 %v9554_v37  ;;  %v3873_v18 = vshrl.u32 %v9584_v52, 16  ;;  %v3876_v50 = vshll.u32 %v9584_v52, 16  ;;  %v9616_v12 = vcombine.low %v3854_v30, %v3857_v61  ;;  %v9620_v32 = vcombine.low %v9573_v3, %v9589_v35 }
 0x2c3   : > { %v3671_v26 = vor.u32 %v3670_v7, %v3667_v13  ;;  %v3860_v15 = vrot.slane %v9539_v5, 5  ;;  %v9625_v34 = vadd.f32 %v6621_v39, %v6620_v19  ;;  %v9627_v45 = vcombine.low %v3653_v22, %v3663_v29 }
 0x2c4   : > { %4853 = vmatmul.mubr.bf16.gmra.mrb[172].mxu1 %v9488_v63  ;;  %v9599_v63 = vld [vmem:[#allocation2 + $0xb0] sm:$0x1]  ;;  %v3878_v38 = vrot.slane %v3876_v50, 5  ;;  %v3882_v61 = vshll.u32 %v9586_v54, 16  ;;  %v3888_v42 = vrot.slane %v3886_v27, 4  ;;  %v3682_v30 = vrot.slane %v3681_v2, 4 }
 0x2c5   : > { %4860 = vmatprep.mubr.bf16.mxu1 %v9575_v25  ;;  %v3702_v25 = vshrl.u32 %v9589_v35, 16  ;;  %v3684_v41 = vshll.u32 %v9599_v63, 16  ;;  %10262 = vst [vmem:[#allocation19_spill] sm:$0xff] %v9625_v34  ;;  %v3700_v28 = vrot.slane %v3698_v23, 5  ;;  %v3892_v44 = vshll.u32 %v3324_v56, 16 }
 0x2c6   : > { %v3884_v7 = vrot.slane %v3882_v61, 5  ;;  %v5964_v19 = vrot.slane %v9584_v52, 9  ;;  %v3901_v5 = vrot.slane %v9586_v54, 5  ;;  %v3672_v39 = vrot.slane %v3671_v26, 4  ;;  %v3321_v27 = vld [vmem:[#allocation2 + $0xbc] sm:$0x1] }
 0x2c7   : > { %v3704_v51 = vrot.slane %v3702_v25, 4  ;;  %v3691_v50 = vrot.slane %v3689_v49, 4  ;;  %v3694_v29 = vrot.slane %v3692_v62, 5  ;;  %v3862_v22 = vrot.slane %v3860_v15, 4 }
 0x2c8   : > { %v3902_v25 = vsel %vm7540_vm4, %v5964_v19, %v3901_v5  ;;  %v3903_v23 = vrot.slane %v3901_v5, 4  ;;  %v3863_v26 = vrot.slane %v9599_v63, 5  ;;  %v3677_v61 = vsel %vm7549_vm5, %v3672_v39, %v9591_v20 }
 0x2c9   : > { %5022 = vmatmul.mubr.bf16.gmra.mrb[208].mxu0 %v9577_v36  ;;  %v3875_v36 = vrot.slane %v3873_v18, 4  ;;  %v3686_v18 = vrot.slane %v3684_v41, 5  ;;  %v3894_v41 = vrot.slane %v3892_v44, 5  ;;  %v5962_v63 = vrot.slane %v9542_v53, 9 }
 0x2ca   : > { %5029 = vmatprep.mubr.bf16.mxu0 %v9581_v8  ;;  %v3864_v44 = vsel %vm7540_vm4, %v3862_v22, %v3863_v26 }
 0x2cb   : > { %v3879_v13 = vor.u32 %v3878_v38, %v3875_v36  ;;  %v3687_v2 = vsel %vm7549_vm5, %v3682_v30, %v3686_v18  ;;  %v3705_v36 = vor.u32 %v3704_v51, %v3700_v28  ;;  %v3904_v38 = vrot.slane %v3324_v56, 5 }
 0x2cc   : > { %4861 = vmatmul.mubr.bf16.gmra.mrb[176].mxu1 %v9520_v11  ;;  %v3889_v11 = vor.u32 %v3888_v42, %v3884_v7  ;;  %v3695_v42 = vor.u32 %v3694_v29, %v3691_v50  ;;  %v3708_v30 = vshll.u32 %v3321_v27, 16  ;;  %v9648_v56 = vcombine.low %v3677_v61, %v3687_v2  ;;  %v7352_v61 = vld [vmem:[%s10135_s3 + $0x210] sm:$0xff]  }
 0x2cd   : > { %4868 = vmatprep.mubr.bf16.mxu1 %v9627_v45  ;;  %v3880_v34 = vrot.slane %v3879_v13, 4  ;;  %v3905_v51 = vsel %vm7540_vm4, %v3903_v23, %v3904_v38  ;;  %v3706_v20 = vrot.slane %v3705_v36, 4  ;;  %v3867_v13 = vrot.slane %v9589_v35, 5 }
 0x2ce   : > { %v3890_v62 = vrot.slane %v3889_v11, 4  ;;  %v9653_v11 = vcombine.low %v3902_v25, %v3905_v51  ;;  %v3861_v53 = vsel %vm7540_vm4, %v5962_v63, %v3860_v15  ;;  %v3696_v19 = vrot.slane %v3695_v42, 4  ;;  %v10263_v63 = vld [vmem:[#allocation7_spill] sm:$0xff] }
 0x2cf   : > { %v3885_v49 = vsel %vm7549_vm5, %v3880_v34, %v3884_v7  ;;  %v3710_v5 = vrot.slane %v3708_v30, 5  ;;  %v9664_v39 = vcombine.low %v3861_v53, %v3864_v44  ;;  %v9668_v18 = vcombine.low %v9584_v52, %v9586_v54  ;;  %v10265_v44 = vld [vmem:[#allocation5_spill] sm:$0xff]  ;;  %v10271_v53 = vld [vmem:[#allocation6_spill] sm:$0xff] }
 0x2d0   : > { %v3895_v34 = vsel %vm7549_vm5, %v3890_v62, %v3894_v41  ;;  %v3869_v29 = vrot.slane %v3867_v13, 4  ;;  %v3701_v35 = vsel %vm7549_vm5, %v3696_v19, %v3700_v28  ;;  %v3870_v15 = vrot.slane %v3321_v27, 5  ;;  %v9691_v28 = vld [vmem:[#allocation2 + $0xcc] sm:$0xf]  ;;  %v9695_v27 = vld [vmem:[#allocation2 + $0xd4] sm:$0x1] }
 0x2d1   : > { %5030 = vmatmul.mubr.bf16.gmra.mrb[212].mxu0 %v9616_v12  ;;  %v9659_v7 = vcombine.low %v3885_v49, %v3895_v34  ;;  %v3711_v50 = vsel %vm7549_vm5, %v3706_v20, %v3710_v5  ;;  %v5963_v25 = vrot.slane %v9573_v3, 9  ;;  %v9693_v3 = vld [vmem:[#allocation2 + $0xd0] sm:$0xf]  ;;  %v5965_v36 = vrot.slane %v9691_v28, 9  ;;  %v10272_v5 = vld [vmem:[#allocation16_spill] sm:$0xff] }
 0x2d2   : > { %5037 = vmatprep.mubr.bf16.mxu0 %v9620_v32  ;;  %v9676_v22 = vcombine.low %v3701_v35, %v3711_v50  ;;  %v3871_v52 = vsel %vm7540_vm4, %v3869_v29, %v3870_v15  ;;  %v3935_v23 = vrot.slane %v9693_v3, 5  ;;  %v3938_v38 = vrot.slane %v9695_v27, 5  ;;  %v10266_v20 = vld [vmem:[#allocation10_spill] sm:$0xff] }
 0x2d3   : > { %v3868_v54 = vsel %vm7540_vm4, %v5963_v25, %v3867_v13  ;;  %v10268_v13 = vld [vmem:[#allocation3_spill] sm:$0xff]  ;;  %v10273_v15 = vld [vmem:[#allocation14_spill] sm:$0xff] }
 0x2d4   : > { %4869 = vmatmul.mubr.bf16.gmra.mrb[180].mxu1 %v9554_v37  ;;  %v9685_v2 = vcombine.low %v3868_v54, %v3871_v52  ;;  %v9702_v26 = vsel %vm7540_vm4, %v5965_v36, %v3935_v23  ;;  %v3937_v49 = vrot.slane %v3935_v23, 4  ;;  %v10274_v23 = vld [vmem:[#allocation8_spill] sm:$0xff] }
 0x2d5   : > { %4876 = vmatprep.mubr.bf16.mxu1 %v9648_v56 }
 0x2d6   : > { %v9711_v62 = vsel %vm7540_vm4, %v3937_v49, %v3938_v38  ;;  %v10275_v49 = vld [vmem:[#allocation15_spill] sm:$0xff] }
 0x2d7   : > { %v6019_v41 = vcombine.low %v9702_v26, %v9711_v62 }
 0x2d9   : > { %5038 = vmatmul.mubr.bf16.gmra.mrb[216].mxu0 %v9664_v39 }
 0x2da   : > { %5045 = vmatprep.mubr.bf16.mxu0 %v9668_v18 }
 0x2dc   : > { %4877 = vmatmul.mubr.bf16.gmra.mrb[184].mxu1 %v9581_v8 }
 0x2dd   : > { %4884 = vmatprep.mubr.bf16.mxu1 %v9676_v22 }
 0x2e1   : > { %5046 = vmatmul.mubr.bf16.gmra.mrb[220].mxu0 %v9685_v2 }
 0x2e2   : > { %5247 = vmatprep.mubr.bf16.mxu0 %v9169_v43 }
 0x2e4   : > { %4885 = vmatmul.mubr.bf16.gmra.mrb[188].mxu1 %v9620_v32 }
 0x2e5   : > { %5086 = vmatprep.mubr.bf16.mxu1 %v9108_v48  ;;  %v7351_v48 = vld [vmem:[%s10135_s3 + $0x208] sm:$0xff]  }
 0x2e9   : > { %5248 = vmatmul.mubr.bf16.vlgmr.msra.gmra.mrb[224].mxu0 %v8992_v31  ;;  %v7361_v31 = vld [vmem:[%s10135_s3 + $0x200] sm:$0xff]  }
 0x2ea   : > { %5255 = vmatprep.mubr.bf16.mxu0 %v9248_v60 }
 0x2ec   : > { %5087 = vmatmul.mubr.bf16.vlgmr.msra.gmra.mrb[192].mxu1 %v9073_v59  ;;  %v7354_v59 = vld [vmem:[%s10135_s3 + $0x220] sm:$0xff]  }
 0x2ed   : > { %5094 = vmatprep.mubr.bf16.mxu1 %v9174_v40  ;;  %7122 = vmatpush3.bf16.msra.mxu1 %v7361_v31 }
 0x2ee   : > { %7123 = vmatprep.subr.bf16.mxu1 %v7351_v48 }
 0x2f1   : > { %5256 = vmatmul.mubr.bf16.gmra.mrb[228].mxu0 %v9113_v6  ;;  %7124 = vmatpush3.bf16.msra.mxu1 %v7351_v48  ;;  %v7355_v6 = vld [vmem:[%s10135_s3 + $0x228] sm:$0xff]  }
 0x2f2   : > { %5263 = vmatprep.mubr.bf16.mxu0 %v9322_v21  ;;  %7125 = vmatprep.subr.bf16.mxu1 %v7352_v61 }
 0x2f4   : > { %5095 = vmatmul.mubr.bf16.gmra.mrb[196].mxu1 %v9169_v43  ;;  %v7356_v43 = vld [vmem:[%s10135_s3 + $0x230] sm:$0xff]  }
 0x2f5   : > { %5102 = vmatprep.mubr.bf16.mxu1 %v9272_v33  ;;  %7126 = vmatpush3.bf16.msra.mxu1 %v7352_v61 }
 0x2f6   : > { %7127 = vmatprep.subr.bf16.mxu1 %v7353_v55 }
 0x2f9   : > { %5264 = vmatmul.mubr.bf16.gmra.mrb[232].mxu0 %v9212_v58  ;;  %7128 = vmatpush3.bf16.msra.mxu1 %v7353_v55  ;;  %v7357_v58 = vld [vmem:[%s10135_s3 + $0x238] sm:$0xff]   ;;  %v10276_v55 = vld [vmem:[#allocation17_spill] sm:$0xff] }
 0x2fa   : > { %5271 = vmatprep.mubr.bf16.mxu0 %v9364_v17  ;;  %7129 = vmatprep.subr.bf16.mxu1 %v7354_v59 }
 0x2fc   : > { %5103 = vmatmul.mubr.bf16.gmra.mrb[200].mxu1 %v9248_v60 }
 0x2fd   : > { %5110 = vmatprep.mubr.bf16.mxu1 %v9324_v9  ;;  %7130 = vmatpush3.bf16.msra.mxu1 %v7354_v59  ;;  %v10277_v59 = vld [vmem:[#allocation11_spill] sm:$0xff] }
 0x2fe   : > { %7131 = vmatprep.subr.bf16.mxu1 %v7355_v6 }
 0x301   : > { %5272 = vmatmul.mubr.bf16.gmra.mrb[236].mxu0 %v9279_v0  ;;  %7132 = vmatpush3.bf16.msra.mxu1 %v7355_v6 }
 0x302   : > { %5279 = vmatprep.mubr.bf16.mxu0 %v9384_v46  ;;  %7133 = vmatprep.subr.bf16.mxu1 %v7356_v43 }
 0x304   : > { %5111 = vmatmul.mubr.bf16.gmra.mrb[204].mxu1 %v9322_v21 }
 0x305   : > { %5118 = vmatprep.mubr.bf16.mxu1 %v9350_v14  ;;  %7134 = vmatpush3.bf16.msra.mxu1 %v7356_v43 }
 0x306   : > { %7135 = vmatprep.subr.bf16.mxu1 %v7357_v58 }
 0x309   : > { %5280 = vmatmul.mubr.bf16.gmra.mrb[240].mxu0 %v9314_v47  ;;  %7136 = vmatpush3.bf16.msra.mxu1 %v7357_v58 }
 0x30a   : > { %5287 = vmatprep.mubr.bf16.mxu0 %v9413_v1 }
 0x30c   : > { %5119 = vmatmul.mubr.bf16.gmra.mrb[208].mxu1 %v9364_v17  ;;  %v10264_v17 = vld [vmem:[#allocation19_spill] sm:$0xff] }
 0x30d   : > { %5126 = vmatprep.mubr.bf16.mxu1 %v9388_v4 }
 0x30f   : > { %v6729_v60 = vpop.f32.mrb[160].mxu0 }
 0x310   : > { %v6730_v0 = vpop.f32.mrb[161].mxu0 }
 0x311   : > { %5288 = vmatmul.mubr.bf16.gmra.mrb[244].mxu0 %v9362_v16  ;;  %v6731_v42 = vadd.f32 %v6730_v0, %v6729_v60  ;;  %v6732_v30 = vpop.f32.mrb[162].mxu0  ;;  %v10267_v16 = vld [vmem:[#allocation9_spill] sm:$0xff] }
 0x312   : > { %5295 = vmatprep.mubr.bf16.mxu0 %v9438_v10  ;;  %v6733_v21 = vpop.f32.mrb[163].mxu0 }
 0x313   : > { %v9757_v51 = vadd.f32 %v6731_v42, %v9610_v24  ;;  %v6734_v47 = vadd.f32 %v6733_v21, %v6732_v30  ;;  %v10269_v24 = vld [vmem:[#allocation13_spill] sm:$0xff] }
 0x314   : > { %5127 = vmatmul.mubr.bf16.gmra.mrb[212].mxu1 %v9384_v46  ;;  %v10270_v46 = vld [vmem:[#allocation12_spill] sm:$0xff] }
 0x315   : > { %5134 = vmatprep.mubr.bf16.mxu1 %v10263_v63  ;;  %v9762_v34 = vadd.f32 %v6734_v47, %v10264_v17 }
 0x319   : > { %5296 = vmatmul.mubr.bf16.gmra.mrb[248].mxu0 %v10265_v44  ;;  %v10278_v44 = vld [vmem:[#allocation18_spill] sm:$0xff] }
 0x31a   : > { %5303 = vmatprep.mubr.bf16.mxu0 %v10266_v20 }
 0x31c   : > { %5135 = vmatmul.mubr.bf16.gmra.mrb[216].mxu1 %v9413_v1 }
 0x31d   : > { %5142 = vmatprep.mubr.bf16.mxu1 %v10267_v16 }
 0x321   : > { %5304 = vmatmul.mubr.bf16.gmra.mrb[252].mxu0 %v10268_v13 }
 0x322   : > { %5311 = vmatprep.mubr.bf16.mxu0 %v10269_v24 }
 0x324   : > { %5143 = vmatmul.mubr.bf16.gmra.mrb[220].mxu1 %v9438_v10 }
 0x325   : > { %5150 = vmatprep.mubr.bf16.mxu1 %v10270_v46 }
 0x328   : > { %v6623_v19 = vpop.f32.mrb[132].mxu1 }
 0x329   : > { %5312 = vmatmul.mubr.bf16.gmra.mrb[0].mxu0 %v10271_v53  ;;  %v6624_v50 = vpop.f32.mrb[133].mxu1 }
 0x32a   : > { %5319 = vmatprep.mubr.bf16.mxu0 %v10272_v5  ;;  %v6625_v29 = vadd.f32 %v6624_v50, %v6623_v19  ;;  %v6626_v35 = vpop.f32.mrb[134].mxu1  ;;  %v3907_v19 = vshrl.u32 %v9691_v28, 16  ;;  %v3910_v50 = vshll.u32 %v9691_v28, 16 }
 0x32b   : > { %v6627_v1 = vpop.f32.mrb[135].mxu1 }
 0x32c   : > { %5151 = vmatmul.mubr.bf16.gmra.mrb[224].mxu1 %v10266_v20  ;;  %v6628_v25 = vadd.f32 %v6627_v1, %v6626_v35  ;;  %v3909_v35 = vrot.slane %v3907_v19, 4  ;;  %v3912_v1 = vrot.slane %v3910_v50, 5  ;;  %v6017_v50 = vcombine.low %v9691_v28, %v9693_v3 }
 0x32d   : > { %5158 = vmatprep.mubr.bf16.mxu1 %v10273_v15  ;;  %v6735_v52 = vpop.f32.mrb[164].mxu0 }
 0x32e   : > { %v6736_v54 = vpop.f32.mrb[165].mxu0 }
 0x32f   : > { %v6737_v36 = vadd.f32 %v6736_v54, %v6735_v52  ;;  %v6738_v10 = vpop.f32.mrb[166].mxu0 }
 0x330   : > { %v6739_v38 = vpop.f32.mrb[167].mxu0 }
 0x331   : > { %5320 = vmatmul.mubr.bf16.gmra.mrb[4].mxu0 %v10274_v23  ;;  %v9778_v48 = vadd.f32 %v6737_v36, %v6625_v29  ;;  %v6740_v31 = vadd.f32 %v6739_v38, %v6738_v10  ;;  %v3920_v29 = vshrl.u32 %v9693_v3, 16  ;;  %v3913_v36 = vor.u32 %v3912_v1, %v3909_v35 }
 0x332   : > { %5327 = vmatprep.mubr.bf16.mxu0 %v10275_v49  ;;  %v3926_v23 = vshll.u32 %v9695_v27, 16 }
 0x333   : > { %v9781_v61 = vadd.f32 %v6740_v31, %v6628_v25  ;;  %v3922_v52 = vrot.slane %v3920_v29, 4 }
 0x334   : > { %5159 = vmatmul.mubr.bf16.gmra.mrb[228].mxu1 %v10269_v24 }
 0x335   : > { %5166 = vmatprep.mubr.bf16.mxu1 %v10276_v55 }
 0x338   : > { %v6741_v6 = vpop.f32.mrb[168].mxu0  ;;  %v6629_v43 = vpop.f32.mrb[136].mxu1 }
 0x339   : > { %5328 = vmatmul.mubr.bf16.gmra.mrb[8].mxu0 %v10277_v59  ;;  %v6742_v58 = vpop.f32.mrb[169].mxu0  ;;  %v6630_v60 = vpop.f32.mrb[137].mxu1 }
 0x33a   : > { %5335 = vmatprep.mubr.bf16.mxu0 %v9627_v45  ;;  %v6743_v0 = vadd.f32 %v6742_v58, %v6741_v6  ;;  %v6631_v42 = vadd.f32 %v6630_v60, %v6629_v43  ;;  %v6744_v30 = vpop.f32.mrb[170].mxu0  ;;  %v6632_v21 = vpop.f32.mrb[138].mxu1  ;;  %v3914_v60 = vrot.slane %v3913_v36, 4 }
 0x33b   : > { %v6745_v47 = vpop.f32.mrb[171].mxu0  ;;  %v6633_v17 = vpop.f32.mrb[139].mxu1 }
 0x33c   : > { %5167 = vmatmul.mubr.bf16.gmra.mrb[232].mxu1 %v10272_v5  ;;  %v9788_v20 = vadd.f32 %v6743_v0, %v6631_v42  ;;  %v6746_v13 = vadd.f32 %v6745_v47, %v6744_v30  ;;  %v6634_v24 = vadd.f32 %v6633_v17, %v6632_v21  ;;  %v3916_v5 = vshll.u32 %v9693_v3, 16 }
 0x33d   : > { %5174 = vmatprep.mubr.bf16.mxu1 %v10278_v44  ;;  %v3928_v42 = vrot.slane %v3926_v23, 5 }
 0x33e   : > { %v9790_v53 = vadd.f32 %v6746_v13, %v6634_v24  ;;  %v3918_v25 = vrot.slane %v3916_v5, 5 }
 0x340   : > { %v3923_v10 = vor.u32 %v3922_v52, %v3918_v25  ;;  %v3919_v47 = vsel %vm7549_vm5, %v3914_v60, %v3918_v25 }
 0x341   : > { %5336 = vmatmul.mubr.bf16.gmra.mrb[12].mxu0 %v9554_v37 }
 0x342   : > { %5343 = vmatprep.mubr.bf16.mxu0 %v9648_v56  ;;  %v3924_v0 = vrot.slane %v3923_v10, 4 }
 0x344   : > { %5175 = vmatmul.mubr.bf16.gmra.mrb[236].mxu1 %v10275_v49  ;;  %v3929_v17 = vsel %vm7549_vm5, %v3924_v0, %v3928_v42 }
 0x345   : > { %5182 = vmatprep.mubr.bf16.mxu1 %v9616_v12  ;;  %v6018_v13 = vcombine.low %v3919_v47, %v3929_v17 }
 0x349   : > { %5344 = vmatmul.mubr.bf16.gmra.mrb[16].mxu0 %v9581_v8 }
 0x34a   : > { %5351 = vmatprep.mubr.bf16.mxu0 %v9676_v22  ;;  %v6635_v37 = vpop.f32.mrb[140].mxu1 }
 0x34b   : > { %v6636_v54 = vpop.f32.mrb[141].mxu1 }
 0x34c   : > { %5183 = vmatmul.mubr.bf16.gmra.mrb[240].mxu1 %v9627_v45  ;;  %v6637_v38 = vadd.f32 %v6636_v54, %v6635_v37  ;;  %v6638_v49 = vpop.f32.mrb[142].mxu1 }
 0x34d   : > { %5190 = vmatprep.mubr.bf16.mxu1 %v9664_v39  ;;  %v6747_v31 = vpop.f32.mrb[172].mxu0  ;;  %v6639_v59 = vpop.f32.mrb[143].mxu1 }
 0x34e   : > { %v6748_v6 = vpop.f32.mrb[173].mxu0  ;;  %v6640_v43 = vadd.f32 %v6639_v59, %v6638_v49 }
 0x34f   : > { %v6749_v58 = vadd.f32 %v6748_v6, %v6747_v31  ;;  %v6750_v8 = vpop.f32.mrb[174].mxu0 }
 0x350   : > { %v6751_v30 = vpop.f32.mrb[175].mxu0 }
 0x351   : > { %5352 = vmatmul.mubr.bf16.gmra.mrb[20].mxu0 %v9620_v32  ;;  %v9806_v21 = vadd.f32 %v6749_v58, %v6637_v38  ;;  %v6752_v27 = vadd.f32 %v6751_v30, %v6750_v8 }
 0x352   : > { %5359 = vmatprep.mubr.bf16.mxu0 %v9659_v7 }
 0x353   : > { %v9809_v45 = vadd.f32 %v6752_v27, %v6640_v43 }
 0x354   : > { %5191 = vmatmul.mubr.bf16.gmra.mrb[244].mxu1 %v9648_v56 }
 0x355   : > { %5198 = vmatprep.mubr.bf16.mxu1 %v9685_v2 }
 0x359   : > { %5360 = vmatmul.mubr.bf16.gmra.mrb[24].mxu0 %v9668_v18 }
 0x35a   : > { %5367 = vmatprep.mubr.bf16.mxu0 %v6018_v13 }
 0x35c   : > { %5199 = vmatmul.mubr.bf16.gmra.mrb[248].mxu1 %v9676_v22  ;;  %v6753_v32 = vpop.f32.mrb[176].mxu0 }
 0x35d   : > { %5206 = vmatprep.mubr.bf16.mxu1 %v9653_v11  ;;  %v6641_v24 = vpop.f32.mrb[144].mxu1  ;;  %v6754_v19 = vpop.f32.mrb[177].mxu0 }
 0x35e   : > { %v6755_v57 = vadd.f32 %v6754_v19, %v6753_v32  ;;  %v6642_v5 = vpop.f32.mrb[145].mxu1  ;;  %v6756_v29 = vpop.f32.mrb[178].mxu0 }
 0x35f   : > { %v6643_v56 = vadd.f32 %v6642_v5, %v6641_v24  ;;  %v6644_v35 = vpop.f32.mrb[146].mxu1  ;;  %v6757_v1 = vpop.f32.mrb[179].mxu0 }
 0x360   : > { %v6758_v25 = vadd.f32 %v6757_v1, %v6756_v29  ;;  %v6645_v52 = vpop.f32.mrb[147].mxu1 }
 0x361   : > { %v9822_v18 = vadd.f32 %v6755_v57, %v6643_v56  ;;  %v6646_v37 = vadd.f32 %v6645_v52, %v6644_v35  ;;  %5368 = vmatmul.mubr.bf16.gmra.mrb[28].mxu0 %v6017_v50 }
 0x363   : > { %v9824_v22 = vadd.f32 %v6758_v25, %v6646_v37 }
 0x364   : > { %5207 = vmatmul.mubr.bf16.gmra.mrb[252].mxu1 %v9659_v7  ;;  %v6759_v54 = vpop.f32.mrb[180].mxu0 }
 0x365   : > { %7137 = vmatprep.mubr.bf16.mxu1 %v9174_v40  ;;  %v6760_v28 = vpop.f32.mrb[181].mxu0 }
 0x366   : > { %v6761_v3 = vadd.f32 %v6760_v28, %v6759_v54  ;;  %v6762_v36 = vpop.f32.mrb[182].mxu0 }
 0x367   : > { %v6647_v10 = vpop.f32.mrb[148].mxu1  ;;  %v6763_v23 = vpop.f32.mrb[183].mxu0 }
 0x368   : > { %v6648_v38 = vpop.f32.mrb[149].mxu1  ;;  %v6764_v49 = vadd.f32 %v6763_v23, %v6762_v36 }
 0x369   : > { %v6649_v31 = vadd.f32 %v6648_v38, %v6647_v10  ;;  %v6650_v59 = vpop.f32.mrb[150].mxu1 }
 0x36a   : > { %v6651_v6 = vpop.f32.mrb[151].mxu1 }
 0x36b   : > { %v9828_v43 = vadd.f32 %v6761_v3, %v6649_v31  ;;  %v6652_v58 = vadd.f32 %v6651_v6, %v6650_v59 }
 0x36c   : > { %7138 = vmatmul.mubr.bf16.vlgmr.msra.gmra.mrb[0].mxu1 %v9272_v33  ;;  %v6765_v8 = vpop.f32.mrb[184].mxu0 }
 0x36d   : > { %v9831_v7 = vadd.f32 %v6764_v49, %v6652_v58  ;;  %7141 = vmatprep.mubr.bf16.mxu1 %v9324_v9  ;;  %v6766_v40 = vpop.f32.mrb[185].mxu0 }
 0x36e   : > { %v6767_v60 = vadd.f32 %v6766_v40, %v6765_v8  ;;  %v6768_v0 = vpop.f32.mrb[186].mxu0 }
 0x36f   : > { %v6653_v42 = vpop.f32.mrb[152].mxu1  ;;  %v6769_v30 = vpop.f32.mrb[187].mxu0 }
 0x370   : > { %v6654_v27 = vpop.f32.mrb[153].mxu1  ;;  %v6770_v47 = vadd.f32 %v6769_v30, %v6768_v0 }
 0x371   : > { %v6655_v17 = vadd.f32 %v6654_v27, %v6653_v42  ;;  %v6656_v13 = vpop.f32.mrb[154].mxu1 }
 0x372   : > { %v6657_v32 = vpop.f32.mrb[155].mxu1 }
 0x373   : > { %v9834_v24 = vadd.f32 %v6767_v60, %v6655_v17  ;;  %v6658_v19 = vadd.f32 %v6657_v32, %v6656_v13 }
 0x374   : > { %7142 = vmatmul.mubr.bf16.gmra.mrb[4].mxu1 %v9350_v14  ;;  %v6771_v33 = vpop.f32.mrb[188].mxu0 }
 0x375   : > { %v9837_v50 = vadd.f32 %v6770_v47, %v6658_v19  ;;  %7145 = vmatprep.mubr.bf16.mxu1 %v9388_v4  ;;  %v6772_v9 = vpop.f32.mrb[189].mxu0 }
 0x376   : > { %v6773_v57 = vadd.f32 %v6772_v9, %v6771_v33  ;;  %v6774_v5 = vpop.f32.mrb[190].mxu0 }
 0x377   : > { %v6659_v29 = vpop.f32.mrb[156].mxu1  ;;  %v6775_v56 = vpop.f32.mrb[191].mxu0 }
 0x378   : > { %v6660_v35 = vpop.f32.mrb[157].mxu1  ;;  %v6776_v1 = vadd.f32 %v6775_v56, %v6774_v5 }
 0x379   : > { %v6661_v25 = vadd.f32 %v6660_v35, %v6659_v29  ;;  %v6662_v52 = vpop.f32.mrb[158].mxu1 }
 0x37a   : > { %v6663_v37 = vpop.f32.mrb[159].mxu1 }
 0x37b   : > { %v9840_v54 = vadd.f32 %v6773_v57, %v6661_v25  ;;  %v6664_v28 = vadd.f32 %v6663_v37, %v6662_v52 }
 0x37c   : > { %7146 = vmatmul.mubr.bf16.gmra.mrb[8].mxu1 %v10263_v63  ;;  %v6777_v14 = vpop.f32.mrb[192].mxu0 }
 0x37d   : > { %v9843_v3 = vadd.f32 %v6776_v1, %v6664_v28  ;;  %7149 = vmatprep.mubr.bf16.mxu1 %v10267_v16  ;;  %v6778_v4 = vpop.f32.mrb[193].mxu0 }
 0x37e   : > { %v6779_v36 = vadd.f32 %v6778_v4, %v6777_v14  ;;  %v6780_v10 = vpop.f32.mrb[194].mxu0 }
 0x37f   : > { %v6665_v23 = vpop.f32.mrb[160].mxu1  ;;  %v6781_v38 = vpop.f32.mrb[195].mxu0 }
 0x380   : > { %v6666_v49 = vpop.f32.mrb[161].mxu1  ;;  %v6782_v31 = vadd.f32 %v6781_v38, %v6780_v10 }
 0x381   : > { %v6667_v59 = vadd.f32 %v6666_v49, %v6665_v23  ;;  %v6668_v6 = vpop.f32.mrb[162].mxu1 }
 0x382   : > { %v6669_v58 = vpop.f32.mrb[163].mxu1 }
 0x383   : > { %v9846_v8 = vadd.f32 %v6779_v36, %v6667_v59  ;;  %v6670_v40 = vadd.f32 %v6669_v58, %v6668_v6 }
 0x384   : > { %7150 = vmatmul.mubr.bf16.gmra.mrb[12].mxu1 %v10270_v46  ;;  %v6783_v63 = vpop.f32.mrb[196].mxu0 }
 0x385   : > { %v9849_v60 = vadd.f32 %v6782_v31, %v6670_v40  ;;  %7153 = vmatprep.mubr.bf16.mxu1 %v10273_v15  ;;  %v6784_v16 = vpop.f32.mrb[197].mxu0 }
 0x386   : > { %v6785_v0 = vadd.f32 %v6784_v16, %v6783_v63  ;;  %v6786_v42 = vpop.f32.mrb[198].mxu0 }
 0x387   : > { %v6671_v30 = vpop.f32.mrb[164].mxu1  ;;  %v6787_v27 = vpop.f32.mrb[199].mxu0 }
 0x388   : > { %v6672_v47 = vpop.f32.mrb[165].mxu1  ;;  %v6788_v17 = vadd.f32 %v6787_v27, %v6786_v42 }
 0x389   : > { %v6673_v13 = vadd.f32 %v6672_v47, %v6671_v30  ;;  %v6674_v32 = vpop.f32.mrb[166].mxu1 }
 0x38a   : > { %v6675_v19 = vpop.f32.mrb[167].mxu1 }
 0x38b   : > { %v9852_v33 = vadd.f32 %v6785_v0, %v6673_v13  ;;  %v6676_v9 = vadd.f32 %v6675_v19, %v6674_v32 }
 0x38c   : > { %7154 = vmatmul.mubr.bf16.gmra.mrb[16].mxu1 %v10276_v55  ;;  %v6789_v46 = vpop.f32.mrb[200].mxu0 }
 0x38d   : > { %v9855_v57 = vadd.f32 %v6788_v17, %v6676_v9  ;;  %7157 = vmatprep.mubr.bf16.mxu1 %v10278_v44  ;;  %v6790_v15 = vpop.f32.mrb[201].mxu0 }
 0x38e   : > { %v6791_v5 = vadd.f32 %v6790_v15, %v6789_v46  ;;  %v6792_v29 = vpop.f32.mrb[202].mxu0 }
 0x38f   : > { %v6677_v56 = vpop.f32.mrb[168].mxu1  ;;  %v6793_v35 = vpop.f32.mrb[203].mxu0 }
 0x390   : > { %v6678_v1 = vpop.f32.mrb[169].mxu1  ;;  %v6794_v25 = vadd.f32 %v6793_v35, %v6792_v29 }
 0x391   : > { %v6679_v52 = vadd.f32 %v6678_v1, %v6677_v56  ;;  %v6680_v37 = vpop.f32.mrb[170].mxu1 }
 0x392   : > { %v6681_v28 = vpop.f32.mrb[171].mxu1 }
 0x393   : > { %v9858_v14 = vadd.f32 %v6791_v5, %v6679_v52  ;;  %v6682_v4 = vadd.f32 %v6681_v28, %v6680_v37 }
 0x394   : > { %7158 = vmatmul.mubr.bf16.gmra.mrb[20].mxu1 %v9616_v12  ;;  %v6795_v55 = vpop.f32.mrb[204].mxu0 }
 0x395   : > { %v9861_v36 = vadd.f32 %v6794_v25, %v6682_v4  ;;  %7161 = vmatprep.mubr.bf16.mxu1 %v9664_v39  ;;  %v6796_v44 = vpop.f32.mrb[205].mxu0 }
 0x396   : > { %v6797_v10 = vadd.f32 %v6796_v44, %v6795_v55  ;;  %v6798_v23 = vpop.f32.mrb[206].mxu0 }
 0x397   : > { %v6683_v38 = vpop.f32.mrb[172].mxu1  ;;  %v6799_v49 = vpop.f32.mrb[207].mxu0 }
 0x398   : > { %v6684_v31 = vpop.f32.mrb[173].mxu1  ;;  %v6800_v59 = vadd.f32 %v6799_v49, %v6798_v23 }
 0x399   : > { %v6685_v6 = vadd.f32 %v6684_v31, %v6683_v38  ;;  %v6686_v58 = vpop.f32.mrb[174].mxu1 }
 0x39a   : > { %v6687_v40 = vpop.f32.mrb[175].mxu1 }
 0x39b   : > { %v9864_v63 = vadd.f32 %v6797_v10, %v6685_v6  ;;  %v6688_v16 = vadd.f32 %v6687_v40, %v6686_v58 }
 0x39c   : > { %7162 = vmatmul.mubr.bf16.gmra.mrb[24].mxu1 %v9685_v2  ;;  %v6801_v12 = vpop.f32.mrb[208].mxu0 }
 0x39d   : > { %v9867_v0 = vadd.f32 %v6800_v59, %v6688_v16  ;;  %7165 = vmatprep.mubr.bf16.mxu1 %v9653_v11  ;;  %v6802_v39 = vpop.f32.mrb[209].mxu0 }
 0x39e   : > { %v6803_v42 = vadd.f32 %v6802_v39, %v6801_v12  ;;  %v6804_v30 = vpop.f32.mrb[210].mxu0 }
 0x39f   : > { %v6689_v27 = vpop.f32.mrb[176].mxu1  ;;  %v6805_v47 = vpop.f32.mrb[211].mxu0 }
 0x3a0   : > { %v6690_v17 = vpop.f32.mrb[177].mxu1  ;;  %v6806_v13 = vadd.f32 %v6805_v47, %v6804_v30 }
 0x3a1   : > { %v6691_v32 = vadd.f32 %v6690_v17, %v6689_v27  ;;  %v6692_v19 = vpop.f32.mrb[178].mxu1 }
 0x3a2   : > { %v6693_v9 = vpop.f32.mrb[179].mxu1 }
 0x3a3   : > { %v9870_v46 = vadd.f32 %v6803_v42, %v6691_v32  ;;  %v6694_v15 = vadd.f32 %v6693_v9, %v6692_v19 }
 0x3a4   : > { %7166 = vmatmul.mubr.bf16.gmra.mrb[28].mxu1 %v6019_v41  ;;  %v6807_v2 = vpop.f32.mrb[212].mxu0 }
 0x3a5   : > { %v9875_v5 = vadd.f32 %v6806_v13, %v6694_v15  ;;  %v6808_v11 = vpop.f32.mrb[213].mxu0 }
 0x3a6   : > { %v6809_v29 = vadd.f32 %v6808_v11, %v6807_v2  ;;  %v6810_v56 = vpop.f32.mrb[214].mxu0 }
 0x3a7   : > { %v6695_v35 = vpop.f32.mrb[180].mxu1  ;;  %v6811_v1 = vpop.f32.mrb[215].mxu0 }
 0x3a8   : > { %v6696_v25 = vpop.f32.mrb[181].mxu1  ;;  %v6812_v52 = vadd.f32 %v6811_v1, %v6810_v56 }
 0x3a9   : > { %v6697_v37 = vadd.f32 %v6696_v25, %v6695_v35  ;;  %v6698_v28 = vpop.f32.mrb[182].mxu1 }
 0x3aa   : > { %v6699_v4 = vpop.f32.mrb[183].mxu1 }
 0x3ab   : > { %v9877_v55 = vadd.f32 %v6809_v29, %v6697_v37  ;;  %v6700_v44 = vadd.f32 %v6699_v4, %v6698_v28 }
 0x3ac   : > { %v6813_v10 = vpop.f32.mrb[216].mxu0 }
 0x3ad   : > { %v9879_v23 = vadd.f32 %v6812_v52, %v6700_v44  ;;  %v6814_v26 = vpop.f32.mrb[217].mxu0 }
 0x3ae   : > { %v6815_v62 = vadd.f32 %v6814_v26, %v6813_v10  ;;  %v6816_v41 = vpop.f32.mrb[218].mxu0 }
 0x3af   : > { %v6701_v38 = vpop.f32.mrb[184].mxu1  ;;  %v6817_v49 = vpop.f32.mrb[219].mxu0 }
 0x3b0   : > { %v6702_v31 = vpop.f32.mrb[185].mxu1  ;;  %v6818_v59 = vadd.f32 %v6817_v49, %v6816_v41 }
 0x3b1   : > { %v6703_v6 = vadd.f32 %v6702_v31, %v6701_v38  ;;  %v6704_v58 = vpop.f32.mrb[186].mxu1 }
 0x3b2   : > { %v6705_v40 = vpop.f32.mrb[187].mxu1 }
 0x3b3   : > { %v9881_v16 = vadd.f32 %v6815_v62, %v6703_v6  ;;  %v6706_v12 = vadd.f32 %v6705_v40, %v6704_v58 }
 0x3b4   : > { %v6819_v39 = vpop.f32.mrb[220].mxu0 }
 0x3b5   : > { %v9883_v42 = vadd.f32 %v6818_v59, %v6706_v12  ;;  %v6820_v30 = vpop.f32.mrb[221].mxu0 }
 0x3b6   : > { %v6821_v27 = vadd.f32 %v6820_v30, %v6819_v39  ;;  %v6822_v47 = vpop.f32.mrb[222].mxu0 }
 0x3b7   : > { %v6707_v17 = vpop.f32.mrb[188].mxu1  ;;  %v6823_v13 = vpop.f32.mrb[223].mxu0 }
 0x3b8   : > { %v6708_v32 = vpop.f32.mrb[189].mxu1  ;;  %v6824_v19 = vadd.f32 %v6823_v13, %v6822_v47 }
 0x3b9   : > { %v6709_v9 = vadd.f32 %v6708_v32, %v6707_v17  ;;  %v6710_v15 = vpop.f32.mrb[190].mxu1 }
 0x3ba   : > { %v6711_v2 = vpop.f32.mrb[191].mxu1 }
 0x3bb   : > { %v9885_v11 = vadd.f32 %v6821_v27, %v6709_v9  ;;  %v6712_v29 = vadd.f32 %v6711_v2, %v6710_v15 }
 0x3bc   : > { %v6953_v56 = vpop.f32.mrb[224].mxu0 }
 0x3bd   : > { %v9887_v35 = vadd.f32 %v6824_v19, %v6712_v29  ;;  %v6954_v1 = vpop.f32.mrb[225].mxu0 }
 0x3be   : > { %v6955_v25 = vadd.f32 %v6954_v1, %v6953_v56  ;;  %v6956_v52 = vpop.f32.mrb[226].mxu0 }
 0x3bf   : > { %v6841_v37 = vpop.f32.mrb[192].mxu1  ;;  %v6957_v28 = vpop.f32.mrb[227].mxu0 }
 0x3c0   : > { %v6842_v4 = vpop.f32.mrb[193].mxu1  ;;  %v6958_v44 = vadd.f32 %v6957_v28, %v6956_v52 }
 0x3c1   : > { %v6843_v10 = vadd.f32 %v6842_v4, %v6841_v37  ;;  %v6844_v26 = vpop.f32.mrb[194].mxu1 }
 0x3c2   : > { %v6845_v62 = vpop.f32.mrb[195].mxu1 }
 0x3c3   : > { %v5089_v41 = vadd.f32 %v6843_v10, %v9757_v51  ;;  %v6846_v38 = vadd.f32 %v6845_v62, %v6844_v26 }
 0x3c4   : > { %v6959_v49 = vpop.f32.mrb[228].mxu0 }
 0x3c5   : > { %v5092_v31 = vadd.f32 %v6846_v38, %v9762_v34  ;;  %v6960_v59 = vpop.f32.mrb[229].mxu0  ;;  %v9891_v6 = vadd.f32 %v6955_v25, %v5089_v41 }
 0x3c6   : > { %v6961_v58 = vadd.f32 %v6960_v59, %v6959_v49  ;;  %v6962_v40 = vpop.f32.mrb[230].mxu0 }
 0x3c7   : > { %v6847_v12 = vpop.f32.mrb[196].mxu1  ;;  %v6963_v39 = vpop.f32.mrb[231].mxu0  ;;  %v9893_v30 = vadd.f32 %v6958_v44, %v5092_v31 }
 0x3c8   : > { %v6848_v27 = vpop.f32.mrb[197].mxu1  ;;  %v6964_v47 = vadd.f32 %v6963_v39, %v6962_v40 }
 0x3c9   : > { %v6849_v17 = vadd.f32 %v6848_v27, %v6847_v12  ;;  %v6850_v13 = vpop.f32.mrb[198].mxu1 }
 0x3ca   : > { %v6851_v32 = vpop.f32.mrb[199].mxu1 }
 0x3cb   : > { %v5097_v51 = vadd.f32 %v6849_v17, %v9778_v48  ;;  %v6852_v19 = vadd.f32 %v6851_v32, %v6850_v13 }
 0x3cc   : > { %v6965_v9 = vpop.f32.mrb[232].mxu0 }
 0x3cd   : > { %v5100_v34 = vadd.f32 %v6852_v19, %v9781_v61  ;;  %v6966_v15 = vpop.f32.mrb[233].mxu0  ;;  %v9897_v2 = vadd.f32 %v6961_v58, %v5097_v51 }
 0x3ce   : > { %v6967_v29 = vadd.f32 %v6966_v15, %v6965_v9  ;;  %v6968_v56 = vpop.f32.mrb[234].mxu0 }
 0x3cf   : > { %v6853_v1 = vpop.f32.mrb[200].mxu1  ;;  %v6969_v25 = vpop.f32.mrb[235].mxu0  ;;  %v9899_v52 = vadd.f32 %v6964_v47, %v5100_v34 }
 0x3d0   : > { %v6854_v37 = vpop.f32.mrb[201].mxu1  ;;  %v6970_v28 = vadd.f32 %v6969_v25, %v6968_v56 }
 0x3d1   : > { %v6855_v4 = vadd.f32 %v6854_v37, %v6853_v1  ;;  %v6856_v44 = vpop.f32.mrb[202].mxu1 }
 0x3d2   : > { %v6857_v10 = vpop.f32.mrb[203].mxu1 }
 0x3d3   : > { %v5105_v48 = vadd.f32 %v6855_v4, %v9788_v20  ;;  %v6858_v26 = vadd.f32 %v6857_v10, %v6856_v44 }
 0x3d4   : > { %v6971_v62 = vpop.f32.mrb[236].mxu0 }
 0x3d5   : > { %v5108_v61 = vadd.f32 %v6858_v26, %v9790_v53  ;;  %v6972_v41 = vpop.f32.mrb[237].mxu0  ;;  %v9903_v38 = vadd.f32 %v6967_v29, %v5105_v48 }
 0x3d6   : > { %v6973_v49 = vadd.f32 %v6972_v41, %v6971_v62  ;;  %v6974_v31 = vpop.f32.mrb[238].mxu0 }
 0x3d7   : > { %v6859_v59 = vpop.f32.mrb[204].mxu1  ;;  %v6975_v58 = vpop.f32.mrb[239].mxu0  ;;  %v9905_v40 = vadd.f32 %v6970_v28, %v5108_v61 }
 0x3d8   : > { %v6860_v12 = vpop.f32.mrb[205].mxu1  ;;  %v6976_v39 = vadd.f32 %v6975_v58, %v6974_v31 }
 0x3d9   : > { %v6861_v27 = vadd.f32 %v6860_v12, %v6859_v59  ;;  %v6862_v47 = vpop.f32.mrb[206].mxu1 }
 0x3da   : > { %v6863_v17 = vpop.f32.mrb[207].mxu1 }
 0x3db   : > { %v5113_v20 = vadd.f32 %v6861_v27, %v9806_v21  ;;  %v6864_v13 = vadd.f32 %v6863_v17, %v6862_v47 }
 0x3dc   : > { %v6977_v32 = vpop.f32.mrb[240].mxu0 }
 0x3dd   : > { %v5116_v53 = vadd.f32 %v6864_v13, %v9809_v45  ;;  %v6978_v51 = vpop.f32.mrb[241].mxu0  ;;  %v9909_v19 = vadd.f32 %v6973_v49, %v5113_v20 }
 0x3de   : > { %v6979_v9 = vadd.f32 %v6978_v51, %v6977_v32  ;;  %v6980_v34 = vpop.f32.mrb[242].mxu0 }
 0x3df   : > { %v6865_v15 = vpop.f32.mrb[208].mxu1  ;;  %v6981_v29 = vpop.f32.mrb[243].mxu0  ;;  %v9911_v56 = vadd.f32 %v6976_v39, %v5116_v53 }
 0x3e0   : > { %v6866_v1 = vpop.f32.mrb[209].mxu1  ;;  %v6982_v25 = vadd.f32 %v6981_v29, %v6980_v34 }
 0x3e1   : > { %v6867_v37 = vadd.f32 %v6866_v1, %v6865_v15  ;;  %v6868_v28 = vpop.f32.mrb[210].mxu1 }
 0x3e2   : > { %v6869_v4 = vpop.f32.mrb[211].mxu1 }
 0x3e3   : > { %v5121_v21 = vadd.f32 %v6867_v37, %v9822_v18  ;;  %v6870_v44 = vadd.f32 %v6869_v4, %v6868_v28 }
 0x3e4   : > { %v6983_v10 = vpop.f32.mrb[244].mxu0 }
 0x3e5   : > { %v5124_v45 = vadd.f32 %v6870_v44, %v9824_v22  ;;  %v6984_v48 = vpop.f32.mrb[245].mxu0  ;;  %v9915_v26 = vadd.f32 %v6979_v9, %v5121_v21 }
 0x3e6   : > { %v6985_v62 = vadd.f32 %v6984_v48, %v6983_v10  ;;  %v6986_v61 = vpop.f32.mrb[246].mxu0 }
 0x3e7   : > { %v6871_v41 = vpop.f32.mrb[212].mxu1  ;;  %v6987_v49 = vpop.f32.mrb[247].mxu0  ;;  %v9917_v31 = vadd.f32 %v6982_v25, %v5124_v45 }
 0x3e8   : > { %v6872_v59 = vpop.f32.mrb[213].mxu1  ;;  %v6988_v58 = vadd.f32 %v6987_v49, %v6986_v61 }
 0x3e9   : > { %v6873_v12 = vadd.f32 %v6872_v59, %v6871_v41  ;;  %v6874_v39 = vpop.f32.mrb[214].mxu1 }
 0x3ea   : > { %v6875_v27 = vpop.f32.mrb[215].mxu1 }
 0x3eb   : > { %v5129_v18 = vadd.f32 %v6873_v12, %v9828_v43  ;;  %v6876_v47 = vadd.f32 %v6875_v27, %v6874_v39 }
 0x3ec   : > { %v6989_v17 = vpop.f32.mrb[248].mxu0 }
 0x3ed   : > { %v5132_v22 = vadd.f32 %v6876_v47, %v9831_v7  ;;  %v6990_v20 = vpop.f32.mrb[249].mxu0  ;;  %v9921_v13 = vadd.f32 %v6985_v62, %v5129_v18 }
 0x3ee   : > { %v6991_v32 = vadd.f32 %v6990_v20, %v6989_v17  ;;  %v6992_v53 = vpop.f32.mrb[250].mxu0 }
 0x3ef   : > { %v6877_v51 = vpop.f32.mrb[216].mxu1  ;;  %v6993_v9 = vpop.f32.mrb[251].mxu0  ;;  %v9923_v34 = vadd.f32 %v6988_v58, %v5132_v22 }
 0x3f0   : > { %v6878_v15 = vpop.f32.mrb[217].mxu1  ;;  %v6994_v29 = vadd.f32 %v6993_v9, %v6992_v53 }
 0x3f1   : > { %v6879_v1 = vadd.f32 %v6878_v15, %v6877_v51  ;;  %v6880_v25 = vpop.f32.mrb[218].mxu1 }
 0x3f2   : > { %v6881_v37 = vpop.f32.mrb[219].mxu1 }
 0x3f3   : > { %v5137_v43 = vadd.f32 %v6879_v1, %v9834_v24  ;;  %v6882_v28 = vadd.f32 %v6881_v37, %v6880_v25 }
 0x3f4   : > { %v6995_v4 = vpop.f32.mrb[252].mxu0 }
 0x3f5   : > { %v5140_v7 = vadd.f32 %v6882_v28, %v9837_v50  ;;  %v6996_v21 = vpop.f32.mrb[253].mxu0  ;;  %v9927_v44 = vadd.f32 %v6991_v32, %v5137_v43 }
 0x3f6   : > { %v6997_v10 = vadd.f32 %v6996_v21, %v6995_v4  ;;  %v6998_v45 = vpop.f32.mrb[254].mxu0 }
 0x3f7   : > { %v6883_v48 = vpop.f32.mrb[220].mxu1  ;;  %v6999_v62 = vpop.f32.mrb[255].mxu0  ;;  %v9929_v61 = vadd.f32 %v6994_v29, %v5140_v7 }
 0x3f8   : > { %v6884_v41 = vpop.f32.mrb[221].mxu1  ;;  %v7000_v49 = vadd.f32 %v6999_v62, %v6998_v45 }
 0x3f9   : > { %v6885_v59 = vadd.f32 %v6884_v41, %v6883_v48  ;;  %v6886_v58 = vpop.f32.mrb[222].mxu1 }
 0x3fa   : > { %v6887_v12 = vpop.f32.mrb[223].mxu1 }
 0x3fb   : > { %v5145_v24 = vadd.f32 %v6885_v59, %v9840_v54  ;;  %v6888_v39 = vadd.f32 %v6887_v12, %v6886_v58 }
 0x3fc   : > { %v7001_v27 = vpop.f32.mrb[0].mxu0 }
 0x3fd   : > { %v5148_v50 = vadd.f32 %v6888_v39, %v9843_v3  ;;  %v7002_v18 = vpop.f32.mrb[1].mxu0  ;;  %v9933_v47 = vadd.f32 %v6997_v10, %v5145_v24 }
 0x3fe   : > { %v7003_v17 = vadd.f32 %v7002_v18, %v7001_v27  ;;  %v7004_v22 = vpop.f32.mrb[2].mxu0 }
 0x3ff   : > { %v6889_v20 = vpop.f32.mrb[224].mxu1  ;;  %v7005_v32 = vpop.f32.mrb[3].mxu0  ;;  %v9935_v53 = vadd.f32 %v7000_v49, %v5148_v50 }
 0x400   : > { %v6890_v51 = vpop.f32.mrb[225].mxu1  ;;  %v7006_v9 = vadd.f32 %v7005_v32, %v7004_v22 }
 0x401   : > { %v6891_v15 = vadd.f32 %v6890_v51, %v6889_v20  ;;  %v6892_v29 = vpop.f32.mrb[226].mxu1 }
 0x402   : > { %v6893_v1 = vpop.f32.mrb[227].mxu1 }
 0x403   : > { %v5153_v54 = vadd.f32 %v6891_v15, %v9846_v8  ;;  %v6894_v25 = vadd.f32 %v6893_v1, %v6892_v29 }
 0x404   : > { %v7007_v37 = vpop.f32.mrb[4].mxu0 }
 0x405   : > { %v5156_v3 = vadd.f32 %v6894_v25, %v9849_v60  ;;  %v7008_v43 = vpop.f32.mrb[5].mxu0  ;;  %v9939_v28 = vadd.f32 %v7003_v17, %v5153_v54 }
 0x406   : > { %v7009_v4 = vadd.f32 %v7008_v43, %v7007_v37  ;;  %v7010_v7 = vpop.f32.mrb[6].mxu0 }
 0x407   : > { %v6895_v21 = vpop.f32.mrb[228].mxu1  ;;  %v7011_v10 = vpop.f32.mrb[7].mxu0  ;;  %v9941_v45 = vadd.f32 %v7006_v9, %v5156_v3 }
 0x408   : > { %v6896_v48 = vpop.f32.mrb[229].mxu1  ;;  %v7012_v62 = vadd.f32 %v7011_v10, %v7010_v7 }
 0x409   : > { %v6897_v41 = vadd.f32 %v6896_v48, %v6895_v21  ;;  %v6898_v49 = vpop.f32.mrb[230].mxu1 }
 0x40a   : > { %v6899_v59 = vpop.f32.mrb[231].mxu1 }
 0x40b   : > { %v5161_v8 = vadd.f32 %v6897_v41, %v9852_v33  ;;  %v6900_v58 = vadd.f32 %v6899_v59, %v6898_v49 }
 0x40c   : > { %v7013_v12 = vpop.f32.mrb[8].mxu0 }
 0x40d   : > { %v5164_v60 = vadd.f32 %v6900_v58, %v9855_v57  ;;  %v7014_v24 = vpop.f32.mrb[9].mxu0  ;;  %v9945_v39 = vadd.f32 %v7009_v4, %v5161_v8 }
 0x40e   : > { %v7015_v27 = vadd.f32 %v7014_v24, %v7013_v12  ;;  %v7016_v50 = vpop.f32.mrb[10].mxu0 }
 0x40f   : > { %v6901_v18 = vpop.f32.mrb[232].mxu1  ;;  %v7017_v17 = vpop.f32.mrb[11].mxu0  ;;  %v9947_v22 = vadd.f32 %v7012_v62, %v5164_v60 }
 0x410   : > { %v6902_v20 = vpop.f32.mrb[233].mxu1  ;;  %v7018_v32 = vadd.f32 %v7017_v17, %v7016_v50 }
 0x411   : > { %v6903_v51 = vadd.f32 %v6902_v20, %v6901_v18  ;;  %v6904_v9 = vpop.f32.mrb[234].mxu1 }
 0x412   : > { %v6905_v15 = vpop.f32.mrb[235].mxu1 }
 0x413   : > { %v5169_v33 = vadd.f32 %v6903_v51, %v9858_v14  ;;  %v6906_v29 = vadd.f32 %v6905_v15, %v6904_v9 }
 0x414   : > { %v7019_v1 = vpop.f32.mrb[12].mxu0 }
 0x415   : > { %v5172_v57 = vadd.f32 %v6906_v29, %v9861_v36  ;;  %v7020_v54 = vpop.f32.mrb[13].mxu0  ;;  %v9951_v25 = vadd.f32 %v7015_v27, %v5169_v33 }
 0x416   : > { %v7021_v37 = vadd.f32 %v7020_v54, %v7019_v1  ;;  %v7022_v3 = vpop.f32.mrb[14].mxu0 }
 0x417   : > { %v6907_v43 = vpop.f32.mrb[236].mxu1  ;;  %v7023_v4 = vpop.f32.mrb[15].mxu0  ;;  %v9953_v7 = vadd.f32 %v7018_v32, %v5172_v57 }
 0x418   : > { %v6908_v21 = vpop.f32.mrb[237].mxu1  ;;  %v7024_v10 = vadd.f32 %v7023_v4, %v7022_v3 }
 0x419   : > { %v6909_v48 = vadd.f32 %v6908_v21, %v6907_v43  ;;  %v6910_v62 = vpop.f32.mrb[238].mxu1 }
 0x41a   : > { %v6911_v41 = vpop.f32.mrb[239].mxu1 }
 0x41b   : > { %v5177_v14 = vadd.f32 %v6909_v48, %v9864_v63  ;;  %v6912_v49 = vadd.f32 %v6911_v41, %v6910_v62 }
 0x41c   : > { %v7025_v59 = vpop.f32.mrb[16].mxu0 }
 0x41d   : > { %v5180_v36 = vadd.f32 %v6912_v49, %v9867_v0  ;;  %v7026_v8 = vpop.f32.mrb[17].mxu0  ;;  %v9957_v58 = vadd.f32 %v7021_v37, %v5177_v14 }
 0x41e   : > { %v7027_v12 = vadd.f32 %v7026_v8, %v7025_v59  ;;  %v7028_v60 = vpop.f32.mrb[18].mxu0 }
 0x41f   : > { %v6913_v24 = vpop.f32.mrb[240].mxu1  ;;  %v7029_v27 = vpop.f32.mrb[19].mxu0  ;;  %v9959_v50 = vadd.f32 %v7024_v10, %v5180_v36 }
 0x420   : > { %v6914_v18 = vpop.f32.mrb[241].mxu1  ;;  %v7030_v17 = vadd.f32 %v7029_v27, %v7028_v60 }
 0x421   : > { %v6915_v20 = vadd.f32 %v6914_v18, %v6913_v24  ;;  %v6916_v32 = vpop.f32.mrb[242].mxu1 }
 0x422   : > { %v6917_v51 = vpop.f32.mrb[243].mxu1 }
 0x423   : > { %v5185_v63 = vadd.f32 %v6915_v20, %v9870_v46  ;;  %v6918_v9 = vadd.f32 %v6917_v51, %v6916_v32 }
 0x424   : > { %v7031_v15 = vpop.f32.mrb[20].mxu0 }
 0x425   : > { %v5188_v0 = vadd.f32 %v6918_v9, %v9875_v5  ;;  %v7032_v33 = vpop.f32.mrb[21].mxu0  ;;  %v9963_v29 = vadd.f32 %v7027_v12, %v5185_v63 }
 0x426   : > { %v7033_v1 = vadd.f32 %v7032_v33, %v7031_v15  ;;  %v7034_v57 = vpop.f32.mrb[22].mxu0 }
 0x427   : > { %v6919_v54 = vpop.f32.mrb[244].mxu1  ;;  %v7035_v37 = vpop.f32.mrb[23].mxu0  ;;  %v9965_v3 = vadd.f32 %v7030_v17, %v5188_v0 }
 0x428   : > { %v6920_v43 = vpop.f32.mrb[245].mxu1  ;;  %v7036_v4 = vadd.f32 %v7035_v37, %v7034_v57 }
 0x429   : > { %v6921_v21 = vadd.f32 %v6920_v43, %v6919_v54  ;;  %v6922_v10 = vpop.f32.mrb[246].mxu1 }
 0x42a   : > { %v6923_v48 = vpop.f32.mrb[247].mxu1 }
 0x42b   : > { %v5193_v46 = vadd.f32 %v6921_v21, %v9877_v55  ;;  %v6924_v62 = vadd.f32 %v6923_v48, %v6922_v10 }
 0x42c   : > { %v7037_v41 = vpop.f32.mrb[24].mxu0 }
 0x42d   : > { %v5196_v5 = vadd.f32 %v6924_v62, %v9879_v23  ;;  %v7038_v14 = vpop.f32.mrb[25].mxu0  ;;  %v9969_v49 = vadd.f32 %v7033_v1, %v5193_v46  ;;  %v9986_v62 = vld [vmem:[%s10136_s4] ss:$0 sm:$0xff] }
 0x42e   : > { %v7039_v59 = vadd.f32 %v7038_v14, %v7037_v41  ;;  %v7040_v36 = vpop.f32.mrb[26].mxu0 }
 0x42f   : > { %v6925_v8 = vpop.f32.mrb[248].mxu1  ;;  %v7041_v12 = vpop.f32.mrb[27].mxu0  ;;  %v9971_v60 = vadd.f32 %v7036_v4, %v5196_v5 }
 0x430   : > { %v6926_v24 = vpop.f32.mrb[249].mxu1  ;;  %v7042_v27 = vadd.f32 %v7041_v12, %v7040_v36 }
 0x431   : > { %v6927_v18 = vadd.f32 %v6926_v24, %v6925_v8  ;;  %v6928_v17 = vpop.f32.mrb[250].mxu1 }
 0x432   : > { %v6929_v20 = vpop.f32.mrb[251].mxu1 }
 0x433   : > { %v5201_v55 = vadd.f32 %v6927_v18, %v9881_v16  ;;  %v6930_v32 = vadd.f32 %v6929_v20, %v6928_v17 }
 0x434   : > { %v7043_v51 = vpop.f32.mrb[28].mxu0 }
 0x435   : > { %v5204_v23 = vadd.f32 %v6930_v32, %v9883_v42  ;;  %v7044_v63 = vpop.f32.mrb[29].mxu0  ;;  %v9975_v9 = vadd.f32 %v7039_v59, %v5201_v55 }
 0x436   : > { %v7045_v15 = vadd.f32 %v7044_v63, %v7043_v51  ;;  %v7046_v0 = vpop.f32.mrb[30].mxu0 }
 0x437   : > { %v6931_v33 = vpop.f32.mrb[252].mxu1  ;;  %v7047_v1 = vpop.f32.mrb[31].mxu0  ;;  %v9977_v57 = vadd.f32 %v7042_v27, %v5204_v23 }
 0x438   : > { %v6932_v54 = vpop.f32.mrb[253].mxu1  ;;  %v7048_v37 = vadd.f32 %v7047_v1, %v7046_v0 }
 0x439   : > { %v6933_v43 = vadd.f32 %v6932_v54, %v6931_v33  ;;  %v6934_v4 = vpop.f32.mrb[254].mxu1 }
 0x43a   : > { %v6935_v21 = vpop.f32.mrb[255].mxu1 }
 0x43b   : > { %v5209_v16 = vadd.f32 %v6933_v43, %v9885_v11  ;;  %v6936_v10 = vadd.f32 %v6935_v21, %v6934_v4  ;;  %v9994_v11 = vld [vmem:[%s10136_s4 + $0x1] ss:$0 sm:$0xff] }
 0x43d   : > { %v5212_v42 = vadd.f32 %v6936_v10, %v9887_v35  ;;  %v9981_v48 = vadd.f32 %v7045_v15, %v5209_v16 }
 0x43f   : > { %v7139_v46 = vpop.f32.mrb[0].mxu1  ;;  %v9988_v41 = vadd.f32 %v7048_v37, %v5212_v42 }
 0x440   : > { %v5419_v5 = vadd.f32 %v7139_v46, %v9897_v2  ;;  %v5410_v14 = vpop.f32.mrb[1].mxu1 }
 0x441   : > { %v5411_v35 = vadd.f32 %v5410_v14, %v9891_v6  ;;  %v7140_v59 = vpop.f32.mrb[2].mxu1 }
 0x442   : > { %v5544_v36 = vmul.f32 %v9986_v62, %v5419_v5  ;;  %v5422_v8 = vadd.f32 %v7140_v59, %v9899_v52  ;;  %v5413_v12 = vpop.f32.mrb[3].mxu1 }
 0x443   : > { %v5542_v24 = vmul.f32 %v9986_v62, %v5411_v35  ;;  %v5414_v27 = vadd.f32 %v5413_v12, %v9893_v30 }
 0x444   : > { %v5581_v2 = vadd.f32 %v9994_v11, %v5544_v36  ;;  %v5545_v18 = vmul.f32 %v9986_v62, %v5422_v8 }
 0x445   : > { %v5579_v17 = vadd.f32 %v9994_v11, %v5542_v24  ;;  %v5543_v20 = vmul.f32 %v9986_v62, %v5414_v27 }
 0x446   : > { %v5613_v6 = vmul.f32 0.01, %v5581_v2  ;;  %v5582_v55 = vadd.f32 %v9994_v11, %v5545_v18 }
 0x447   : > { %v5611_v52 = vmul.f32 0.01, %v5579_v17  ;;  %v5580_v30 = vadd.f32 %v9994_v11, %v5543_v20  ;;  %v7143_v32 = vpop.f32.mrb[4].mxu1 }
 0x448   : > { %v5645_v51 = vmax.f32 %v5581_v2, %v5613_v6  ;;  %v5614_v23 = vmul.f32 0.01, %v5582_v55  ;;  %v5435_v63 = vadd.f32 %v7143_v32, %v9909_v19  ;;  %v5426_v15 = vpop.f32.mrb[5].mxu1 }
 0x449   : > { %v5643_v0 = vmax.f32 %v5579_v17, %v5611_v52  ;;  %v5612_v33 = vmul.f32 0.01, %v5580_v30  ;;  %v5427_v1 = vadd.f32 %v5426_v15, %v9903_v38  ;;  %v7144_v54 = vpop.f32.mrb[6].mxu1 }
 0x44a   : > { %5677 = vst [vmem:[%s10010_s12 + $0x10] sm:$0xff] %v5645_v51  ;;  %v5646_v37 = vmax.f32 %v5582_v55, %v5614_v23  ;;  %v5548_v43 = vmul.f32 %v9986_v62, %v5435_v63  ;;  %v5438_v4 = vadd.f32 %v7144_v54, %v9911_v56  ;;  %v5429_v21 = vpop.f32.mrb[7].mxu1 }
 0x44b   : > { %5675 = vst [vmem:[%s10010_s12] sm:$0xff] %v5643_v0  ;;  %v5644_v16 = vmax.f32 %v5580_v30, %v5612_v33  ;;  %v5546_v10 = vmul.f32 %v9986_v62, %v5427_v1  ;;  %v5430_v19 = vadd.f32 %v5429_v21, %v9905_v40 }
 0x44c   : > { %5678 = vst [vmem:[%s10010_s12 + $0x18] sm:$0xff] %v5646_v37  ;;  %v5585_v42 = vadd.f32 %v9994_v11, %v5548_v43  ;;  %v5549_v46 = vmul.f32 %v9986_v62, %v5438_v4 }
 0x44d   : > { %5676 = vst [vmem:[%s10010_s12 + $0x8] sm:$0xff] %v5644_v16  ;;  %v5583_v38 = vadd.f32 %v9994_v11, %v5546_v10  ;;  %v5547_v5 = vmul.f32 %v9986_v62, %v5430_v19 }
 0x44e   : > { %v5617_v14 = vmul.f32 0.01, %v5585_v42  ;;  %v5586_v56 = vadd.f32 %v9994_v11, %v5549_v46 }
 0x44f   : > { %v5615_v35 = vmul.f32 0.01, %v5583_v38  ;;  %v5584_v59 = vadd.f32 %v9994_v11, %v5547_v5  ;;  %v7147_v36 = vpop.f32.mrb[8].mxu1 }
 0x450   : > { %v5649_v40 = vmax.f32 %v5585_v42, %v5617_v14  ;;  %v5618_v8 = vmul.f32 0.01, %v5586_v56  ;;  %v5451_v12 = vadd.f32 %v7147_v36, %v9921_v13  ;;  %v5442_v24 = vpop.f32.mrb[9].mxu1 }
 0x451   : > { %v5647_v27 = vmax.f32 %v5583_v38, %v5615_v35  ;;  %v5616_v2 = vmul.f32 0.01, %v5584_v59  ;;  %v5443_v18 = vadd.f32 %v5442_v24, %v9915_v26  ;;  %v7148_v17 = vpop.f32.mrb[10].mxu1 }
 0x452   : > { %5681 = vst [vmem:[%s10010_s12 + $0x30] sm:$0xff] %v5649_v40  ;;  %v5650_v20 = vmax.f32 %v5586_v56, %v5618_v8  ;;  %v5552_v6 = vmul.f32 %v9986_v62, %v5451_v12  ;;  %v5454_v55 = vadd.f32 %v7148_v17, %v9923_v34  ;;  %v5445_v52 = vpop.f32.mrb[11].mxu1 }
 0x453   : > { %5679 = vst [vmem:[%s10010_s12 + $0x20] sm:$0xff] %v5647_v27  ;;  %v5648_v30 = vmax.f32 %v5584_v59, %v5616_v2  ;;  %v5550_v32 = vmul.f32 %v9986_v62, %v5443_v18  ;;  %v5446_v13 = vadd.f32 %v5445_v52, %v9917_v31 }
 0x454   : > { %5682 = vst [vmem:[%s10010_s12 + $0x38] sm:$0xff] %v5650_v20  ;;  %v5589_v51 = vadd.f32 %v9994_v11, %v5552_v6  ;;  %v5553_v23 = vmul.f32 %v9986_v62, %v5454_v55 }
 0x455   : > { %5680 = vst [vmem:[%s10010_s12 + $0x28] sm:$0xff] %v5648_v30  ;;  %v5587_v26 = vadd.f32 %v9994_v11, %v5550_v32  ;;  %v5551_v63 = vmul.f32 %v9986_v62, %v5446_v13 }
 0x456   : > { %v5621_v15 = vmul.f32 0.01, %v5589_v51  ;;  %v5590_v34 = vadd.f32 %v9994_v11, %v5553_v23 }
 0x457   : > { %v5619_v0 = vmul.f32 0.01, %v5587_v26  ;;  %v5588_v33 = vadd.f32 %v9994_v11, %v5551_v63  ;;  %v7151_v1 = vpop.f32.mrb[12].mxu1 }
 0x458   : > { %v5653_v31 = vmax.f32 %v5589_v51, %v5621_v15  ;;  %v5622_v54 = vmul.f32 0.01, %v5590_v34  ;;  %v5467_v37 = vadd.f32 %v7151_v1, %v9933_v47  ;;  %v5458_v43 = vpop.f32.mrb[13].mxu1 }
 0x459   : > { %v5651_v4 = vmax.f32 %v5587_v26, %v5619_v0  ;;  %v5620_v21 = vmul.f32 0.01, %v5588_v33  ;;  %v5459_v16 = vadd.f32 %v5458_v43, %v9927_v44  ;;  %v7152_v10 = vpop.f32.mrb[14].mxu1 }
 0x45a   : > { %5685 = vst [vmem:[%s10010_s12 + $0x50] sm:$0xff] %v5653_v31  ;;  %v5654_v19 = vmax.f32 %v5590_v34, %v5622_v54  ;;  %v5556_v42 = vmul.f32 %v9986_v62, %v5467_v37  ;;  %v5470_v46 = vadd.f32 %v7152_v10, %v9935_v53  ;;  %v5461_v38 = vpop.f32.mrb[15].mxu1 }
 0x45b   : > { %5683 = vst [vmem:[%s10010_s12 + $0x40] sm:$0xff] %v5651_v4  ;;  %v5652_v5 = vmax.f32 %v5588_v33, %v5620_v21  ;;  %v5554_v14 = vmul.f32 %v9986_v62, %v5459_v16  ;;  %v5462_v47 = vadd.f32 %v5461_v38, %v9929_v61 }
 0x45c   : > { %5686 = vst [vmem:[%s10010_s12 + $0x58] sm:$0xff] %v5654_v19  ;;  %v5593_v56 = vadd.f32 %v9994_v11, %v5556_v42  ;;  %v5557_v35 = vmul.f32 %v9986_v62, %v5470_v46 }
 0x45d   : > { %5684 = vst [vmem:[%s10010_s12 + $0x48] sm:$0xff] %v5652_v5  ;;  %v5591_v44 = vadd.f32 %v9994_v11, %v5554_v14  ;;  %v5555_v59 = vmul.f32 %v9986_v62, %v5462_v47 }
 0x45e   : > { %v5625_v36 = vmul.f32 0.01, %v5593_v56  ;;  %v5594_v53 = vadd.f32 %v9994_v11, %v5557_v35 }
 0x45f   : > { %v5623_v40 = vmul.f32 0.01, %v5591_v44  ;;  %v5592_v8 = vadd.f32 %v9994_v11, %v5555_v59  ;;  %v7155_v12 = vpop.f32.mrb[16].mxu1 }
 0x460   : > { %v5657_v61 = vmax.f32 %v5593_v56, %v5625_v36  ;;  %v5626_v24 = vmul.f32 0.01, %v5594_v53  ;;  %v5483_v27 = vadd.f32 %v7155_v12, %v9945_v39  ;;  %v5474_v2 = vpop.f32.mrb[17].mxu1 }
 0x461   : > { %v5655_v18 = vmax.f32 %v5591_v44, %v5623_v40  ;;  %v5624_v17 = vmul.f32 0.01, %v5592_v8  ;;  %v5475_v20 = vadd.f32 %v5474_v2, %v9939_v28  ;;  %v7156_v6 = vpop.f32.mrb[18].mxu1 }
 0x462   : > { %5689 = vst [vmem:[%s10010_s12 + $0x70] sm:$0xff] %v5657_v61  ;;  %v5658_v55 = vmax.f32 %v5594_v53, %v5626_v24  ;;  %v5560_v52 = vmul.f32 %v9986_v62, %v5483_v27  ;;  %v5486_v30 = vadd.f32 %v7156_v6, %v9947_v22  ;;  %v5477_v32 = vpop.f32.mrb[19].mxu1 }
 0x463   : > { %5687 = vst [vmem:[%s10010_s12 + $0x60] sm:$0xff] %v5655_v18  ;;  %v5656_v13 = vmax.f32 %v5592_v8, %v5624_v17  ;;  %v5558_v51 = vmul.f32 %v9986_v62, %v5475_v20  ;;  %v5478_v39 = vadd.f32 %v5477_v32, %v9941_v45 }
 0x464   : > { %5690 = vst [vmem:[%s10010_s12 + $0x78] sm:$0xff] %v5658_v55  ;;  %v5597_v23 = vadd.f32 %v9994_v11, %v5560_v52  ;;  %v5561_v26 = vmul.f32 %v9986_v62, %v5486_v30 }
 0x465   : > { %5688 = vst [vmem:[%s10010_s12 + $0x68] sm:$0xff] %v5656_v13  ;;  %v5595_v28 = vadd.f32 %v9994_v11, %v5558_v51  ;;  %v5559_v63 = vmul.f32 %v9986_v62, %v5478_v39 }
 0x466   : > { %v5629_v15 = vmul.f32 0.01, %v5597_v23  ;;  %v5598_v22 = vadd.f32 %v9994_v11, %v5561_v26 }
 0x467   : > { %v5627_v34 = vmul.f32 0.01, %v5595_v28  ;;  %v5596_v0 = vadd.f32 %v9994_v11, %v5559_v63  ;;  %v7159_v33 = vpop.f32.mrb[20].mxu1 }
 0x468   : > { %v5661_v45 = vmax.f32 %v5597_v23, %v5629_v15  ;;  %v5630_v1 = vmul.f32 0.01, %v5598_v22  ;;  %v5499_v31 = vadd.f32 %v7159_v33, %v9957_v58  ;;  %v5490_v54 = vpop.f32.mrb[21].mxu1 }
 0x469   : > { %v5659_v37 = vmax.f32 %v5595_v28, %v5627_v34  ;;  %v5628_v43 = vmul.f32 0.01, %v5596_v0  ;;  %v5491_v4 = vadd.f32 %v5490_v54, %v9951_v25  ;;  %v7160_v21 = vpop.f32.mrb[22].mxu1 }
 0x46a   : > { %5693 = vst [vmem:[%s10010_s12 + $0x90] sm:$0xff] %v5661_v45  ;;  %v5662_v16 = vmax.f32 %v5598_v22, %v5630_v1  ;;  %v5564_v10 = vmul.f32 %v9986_v62, %v5499_v31  ;;  %v5502_v19 = vadd.f32 %v7160_v21, %v9959_v50  ;;  %v5493_v42 = vpop.f32.mrb[23].mxu1 }
 0x46b   : > { %5691 = vst [vmem:[%s10010_s12 + $0x80] sm:$0xff] %v5659_v37  ;;  %v5660_v46 = vmax.f32 %v5596_v0, %v5628_v43  ;;  %v5562_v38 = vmul.f32 %v9986_v62, %v5491_v4  ;;  %v5494_v58 = vadd.f32 %v5493_v42, %v9953_v7 }
 0x46c   : > { %5694 = vst [vmem:[%s10010_s12 + $0x98] sm:$0xff] %v5662_v16  ;;  %v5601_v5 = vadd.f32 %v9994_v11, %v5564_v10  ;;  %v5565_v14 = vmul.f32 %v9986_v62, %v5502_v19 }
 0x46d   : > { %5692 = vst [vmem:[%s10010_s12 + $0x88] sm:$0xff] %v5660_v46  ;;  %v5599_v25 = vadd.f32 %v9994_v11, %v5562_v38  ;;  %v5563_v47 = vmul.f32 %v9986_v62, %v5494_v58 }
 0x46e   : > { %v5633_v56 = vmul.f32 0.01, %v5601_v5  ;;  %v5602_v50 = vadd.f32 %v9994_v11, %v5565_v14 }
 0x46f   : > { %v5631_v35 = vmul.f32 0.01, %v5599_v25  ;;  %v5600_v44 = vadd.f32 %v9994_v11, %v5563_v47  ;;  %v7163_v59 = vpop.f32.mrb[24].mxu1 }
 0x470   : > { %v5665_v7 = vmax.f32 %v5601_v5, %v5633_v56  ;;  %v5634_v36 = vmul.f32 0.01, %v5602_v50  ;;  %v5515_v53 = vadd.f32 %v7163_v59, %v9969_v49  ;;  %v5506_v40 = vpop.f32.mrb[25].mxu1 }
 0x471   : > { %v5663_v8 = vmax.f32 %v5599_v25, %v5631_v35  ;;  %v5632_v12 = vmul.f32 0.01, %v5600_v44  ;;  %v5507_v61 = vadd.f32 %v5506_v40, %v9963_v29  ;;  %v7164_v24 = vpop.f32.mrb[26].mxu1 }
 0x472   : > { %5697 = vst [vmem:[%s10010_s12 + $0xb0] sm:$0xff] %v5665_v7  ;;  %v5666_v27 = vmax.f32 %v5602_v50, %v5634_v36  ;;  %v5568_v2 = vmul.f32 %v9986_v62, %v5515_v53  ;;  %v5518_v18 = vadd.f32 %v7164_v24, %v9971_v60  ;;  %v5509_v17 = vpop.f32.mrb[27].mxu1 }
 0x473   : > { %5695 = vst [vmem:[%s10010_s12 + $0xa0] sm:$0xff] %v5663_v8  ;;  %v5664_v20 = vmax.f32 %v5600_v44, %v5632_v12  ;;  %v5566_v6 = vmul.f32 %v9986_v62, %v5507_v61  ;;  %v5510_v49 = vadd.f32 %v5509_v17, %v9965_v3 }
 0x474   : > { %5698 = vst [vmem:[%s10010_s12 + $0xb8] sm:$0xff] %v5666_v27  ;;  %v5605_v55 = vadd.f32 %v9994_v11, %v5568_v2  ;;  %v5569_v52 = vmul.f32 %v9986_v62, %v5518_v18 }
 0x475   : > { %5696 = vst [vmem:[%s10010_s12 + $0xa8] sm:$0xff] %v5664_v20  ;;  %v5603_v29 = vadd.f32 %v9994_v11, %v5566_v6  ;;  %v5567_v30 = vmul.f32 %v9986_v62, %v5510_v49 }
 0x476   : > { %v5637_v32 = vmul.f32 0.01, %v5605_v55  ;;  %v5606_v60 = vadd.f32 %v9994_v11, %v5569_v52 }
 0x477   : > { %v5635_v13 = vmul.f32 0.01, %v5603_v29  ;;  %v5604_v51 = vadd.f32 %v9994_v11, %v5567_v30  ;;  %v7167_v39 = vpop.f32.mrb[28].mxu1 }
 0x478   : > { %v5669_v3 = vmax.f32 %v5605_v55, %v5637_v32  ;;  %v5638_v23 = vmul.f32 0.01, %v5606_v60  ;;  %v5531_v26 = vadd.f32 %v7167_v39, %v9981_v48  ;;  %v5522_v28 = vpop.f32.mrb[29].mxu1 }
 0x479   : > { %v5667_v63 = vmax.f32 %v5603_v29, %v5635_v13  ;;  %v5636_v15 = vmul.f32 0.01, %v5604_v51  ;;  %v5523_v22 = vadd.f32 %v5522_v28, %v9975_v9  ;;  %v7168_v34 = vpop.f32.mrb[30].mxu1 }
 0x47a   : > { %5701 = vst [vmem:[%s10010_s12 + $0xd0] sm:$0xff] %v5669_v3  ;;  %v5670_v0 = vmax.f32 %v5606_v60, %v5638_v23  ;;  %v5572_v33 = vmul.f32 %v9986_v62, %v5531_v26  ;;  %v5534_v45 = vadd.f32 %v7168_v34, %v9988_v41  ;;  %v5525_v1 = vpop.f32.mrb[31].mxu1 }
 0x47b   : > { %5699 = vst [vmem:[%s10010_s12 + $0xc0] sm:$0xff] %v5667_v63  ;;  %v5668_v31 = vmax.f32 %v5604_v51, %v5636_v15  ;;  %v5570_v54 = vmul.f32 %v9986_v62, %v5523_v22  ;;  %v5526_v48 = vadd.f32 %v5525_v1, %v9977_v57 }
 0x47c   : > { %5702 = vst [vmem:[%s10010_s12 + $0xd8] sm:$0xff] %v5670_v0  ;;  %v5609_v37 = vadd.f32 %v9994_v11, %v5572_v33  ;;  %v5573_v9 = vmul.f32 %v9986_v62, %v5534_v45 }
 0x47d   : > { %5700 = vst [vmem:[%s10010_s12 + $0xc8] sm:$0xff] %v5668_v31  ;;  %v5607_v43 = vadd.f32 %v9994_v11, %v5570_v54  ;;  %v5571_v41 = vmul.f32 %v9986_v62, %v5526_v48 }
 0x47e   : > { %v5641_v4 = vmul.f32 0.01, %v5609_v37  ;;  %v5610_v21 = vadd.f32 %v9994_v11, %v5573_v9 }
 0x47f   : > { %v5639_v16 = vmul.f32 0.01, %v5607_v43  ;;  %v5608_v10 = vadd.f32 %v9994_v11, %v5571_v41 }
 0x480   : > { %v5673_v57 = vmax.f32 %v5609_v37, %v5641_v4  ;;  %v5642_v19 = vmul.f32 0.01, %v5610_v21 }
 0x481   : > { %v5671_v42 = vmax.f32 %v5607_v43, %v5639_v16  ;;  %v5640_v46 = vmul.f32 0.01, %v5608_v10 }
 0x482   : > { %5705 = vst [vmem:[%s10010_s12 + $0xf0] sm:$0xff] %v5673_v57  ;;  %v5674_v38 = vmax.f32 %v5610_v21, %v5642_v19 }
 0x483   : > { %5703 = vst [vmem:[%s10010_s12 + $0xe0] sm:$0xff] %v5671_v42  ;;  %v5672_v58 = vmax.f32 %v5608_v10, %v5640_v46 }
 0x484   : > { %5706 = vst [vmem:[%s10010_s12 + $0xf8] sm:$0xff] %v5674_v38 }
 0x485   : > { %5704 = vst [vmem:[%s10010_s12 + $0xe8] sm:$0xff] %v5672_v58 }
 0x486 PF: > { %s15_s18 = sadd.s32 1, %s7368_s18  }
 0x487   : > { %p12_p4 = scmp.ge.s32.totalorder %s15_s18, 4  }
 0x489   :  { %14 = sbr.rel (!%p12_p4) target bundleno = 1 (0x1), region = 72 }

</bundles_post_ra>
